<compile_context>
chip_gen: v7x
topology: tpu7x:2x2x1
jax: 0.10.0
libtpu: 0.0.40
codegen_flags: <defaults>
</compile_context>

<pallas_src>
import functools

import jax
import jax.numpy as jnp
from jax.experimental import pallas as pl
from jax.experimental.pallas import tpu as pltpu

CONV_FILTERS = (256, 64, 8, 1)   # fixed in the module's __init__
NUM_TAPS = 7                     # hexagonal kernel_size=1 -> 7-cell neighbourhood


# ----------------------------------------------------------------------------
# Hexagonal 7-tap neighbourhood, built from zero-filled shifts.
# Works on plain JAX arrays (reference) and on values inside the kernel.
# ----------------------------------------------------------------------------
def _shift_rows_down(x):
    """y[r] = x[r-1] (zero at r=0).  x: (B, H, W, C)."""
    B, H, W, C = x.shape
    z = jnp.zeros((B, 1, W, C), x.dtype)
    return jnp.concatenate([z, x[:, :H - 1]], axis=1)


def _shift_rows_up(x):
    """y[r] = x[r+1] (zero at r=H-1)."""
    B, H, W, C = x.shape
    z = jnp.zeros((B, 1, W, C), x.dtype)
    return jnp.concatenate([x[:, 1:], z], axis=1)


def _shift_cols_right(x):
    """y[c] = x[c-1] (zero at c=0)."""
    B, H, W, C = x.shape
    z = jnp.zeros((B, H, 1, C), x.dtype)
    return jnp.concatenate([z, x[:, :, :W - 1]], axis=2)


def _shift_cols_left(x):
    """y[c] = x[c+1] (zero at c=W-1)."""
    B, H, W, C = x.shape
    z = jnp.zeros((B, H, 1, C), x.dtype)
    return jnp.concatenate([x[:, :, 1:], z], axis=2)


def _hex_taps(x, even_col):
    """7 hexagonal-neighbour views (zero padded at boundaries).

    Order: [up, center, down, left_up, left_lo, right_up, right_lo] — the same
    order the weights are indexed with (and the K-concat order for the MXU).
    """
    up = _shift_rows_down(x)
    down = _shift_rows_up(x)
    xl = _shift_cols_right(x)
    xr = _shift_cols_left(x)
    l_up = jnp.where(even_col, _shift_rows_down(xl), xl)
    l_lo = jnp.where(even_col, xl, _shift_rows_up(xl))
    r_up = jnp.where(even_col, _shift_rows_down(xr), xr)
    r_lo = jnp.where(even_col, xr, _shift_rows_up(xr))
    return (up, x, down, l_up, l_lo, r_up, r_lo)


# ----------------------------------------------------------------------------
# Fused Pallas kernel: all 4 hex blocks + global-mean + tanh, per batch tile.
# ----------------------------------------------------------------------------
def _hex_layer(x, dw_ref, cv_ref, even_col, col_valid, *, f_out, out_relu,
               mxu_dtype):
    """One block: depthwise hex conv + ReLU, then 7-tap hex conv (+ ReLU)."""
    BB, H, Wp, C = x.shape
    act_dtype = x.dtype

    # ---- depthwise hex conv (per-channel weights) + ReLU : pure VPU ----
    dw = dw_ref[...]                                    # (7, 1, C) in act dtype
    taps = _hex_taps(x, even_col)
    z = taps[0] * dw[0].reshape(1, 1, 1, C)
    for t in range(1, NUM_TAPS):
        z = z + taps[t] * dw[t].reshape(1, 1, 1, C)
    z = jnp.maximum(z, 0.0)
    if col_valid is not None:
        z = jnp.where(col_valid, z, 0.0)                # keep padded cols zero
    if f_out != 1:
        z = z.astype(mxu_dtype)                         # cast ONCE, not per tap

    # ---- full hex conv ----
    taps = _hex_taps(z, even_col)
    if f_out == 1:
        # Tiny 8->1 tail: lane-dense VPU path in f32 (avoids an N=1 MXU matmul
        # and 1-lane intermediates); weights arrive pre-reshaped as (7, 1, C).
        cv = cv_ref[...]
        y = taps[0].astype(jnp.float32) * cv[0].reshape(1, 1, 1, C)
        for t in range(1, NUM_TAPS):
            y = y + taps[t].astype(jnp.float32) * cv[t].reshape(1, 1, 1, C)
        y = jnp.sum(y, axis=3, keepdims=True)           # (BB, H, Wp, 1) f32
    else:
        # Single K-concatenated MXU matmul: (M, 7C) @ (7C, F), f32 accumulate.
        M = BB * H * Wp
        lhs = jnp.concatenate(taps, axis=-1).reshape(M, NUM_TAPS * C)
        lhs = lhs.astype(mxu_dtype)                     # no-op if already bf16
        y = jnp.dot(lhs, cv_ref[...], preferred_element_type=jnp.float32)
        y = y.reshape(BB, H, Wp, f_out)
        if out_relu:
            y = jnp.maximum(y, 0.0)
        y = y.astype(act_dtype)

    if col_valid is not None:
        y = jnp.where(col_valid, y, 0.0)
    return y


def _value_head_kernel(x_ref,
                       dw0, cv0, dw1, cv1, dw2, cv2, dw3, cv3,
                       o_ref, *, f_outs, hw_true, w_true, mxu_dtype):
    x = x_ref[...]                                      # (BB, H, Wp, C0)
    BB, H, Wp, _ = x.shape

    # Column-parity mask (hoisted once; reused by every layer / tap build).
    col = jax.lax.broadcasted_iota(jnp.int32, (Wp, 1), 0).reshape(1, 1, Wp, 1)
    even_col = (col & 1) == 0
    col_valid = None if w_true == Wp else (col < w_true)

    weight_refs = ((dw0, cv0), (dw1, cv1), (dw2, cv2), (dw3, cv3))
    for li, (dw_ref, cv_ref) in enumerate(weight_refs):
        x = _hex_layer(x, dw_ref, cv_ref, even_col, col_valid,
                       f_out=f_outs[li],
                       out_relu=(f_outs[li] != 1),
                       mxu_dtype=mxu_dtype)

    # AdaptiveAvgPool3d(1) + Flatten + Tanh == tanh(mean over (C=1, H, W)).
    s = jnp.sum(x, axis=2, keepdims=True)               # (BB, H, 1, 1) f32
    s = jnp.sum(s, axis=1, keepdims=True)               # (BB, 1, 1, 1)
    # Lane-dense store: batch tile on the lane axis -> unmasked vst.
    o_ref[...] = jnp.tanh(s.reshape(1, BB) * (1.0 / float(hw_true)))


# ----------------------------------------------------------------------------
# Per-generation tuning (tile size, VMEM budget, activation / MXU dtypes).
# ----------------------------------------------------------------------------
def _generation_config():
    kind = ""
    try:
        kind = jax.devices()[0].device_kind.lower()
    except Exception:
        pass
    if ("v5 lite" in kind) or ("v5e" in kind) or ("v5lite" in kind):
        # v5e: no bf16 VALU -> keep activations f32; bf16 only feeds the MXU.
        return dict(act_dtype=jnp.float32, mxu_dtype=jnp.bfloat16,
                    target_rows=2048, vmem_limit=96 * 1024 * 1024)
    if "v6" in kind:
        # v6e: native bf16 VPU, 128 MiB VMEM -> bf16 activations, big tiles.
        return dict(act_dtype=jnp.bfloat16, mxu_dtype=jnp.bfloat16,
                    target_rows=4096, vmem_limit=96 * 1024 * 1024)
    if "v7" in kind:
        # v7x: 64 MiB VMEM -> bf16 activations but capped tile + DMA headroom.
        return dict(act_dtype=jnp.bfloat16, mxu_dtype=jnp.bfloat16,
                    target_rows=3072, vmem_limit=48 * 1024 * 1024)
    # Unknown chip: conservative defaults.
    return dict(act_dtype=jnp.bfloat16, mxu_dtype=jnp.bfloat16,
                target_rows=2048, vmem_limit=48 * 1024 * 1024)


def _resident_spec(arr):
    """Full-array block with a constant index_map -> weight stays in VMEM."""
    nd = arr.ndim
    return pl.BlockSpec(arr.shape, lambda b, _nd=nd: (0,) * _nd)


# ----------------------------------------------------------------------------
# Parameters (deterministic synthetic init) and forward pass.
# ----------------------------------------------------------------------------
def init_params(key, width):
    params = []
    c = width
    for li, f in enumerate(CONV_FILTERS):
        k_dw = jax.random.fold_in(key, 2 * li)
        k_cv = jax.random.fold_in(key, 2 * li + 1)
        # depthwise_conv(c -> c, hex kernel_size=1, no bias): 7 taps per channel
        dw = jax.random.normal(k_dw, (NUM_TAPS, c), jnp.float32) / jnp.sqrt(float(NUM_TAPS))
        # hexagdly.Conv2d(c -> f, kernel_size=1, no bias): 7 taps x c_in x f_out
        cv = jax.random.normal(k_cv, (NUM_TAPS, c, f), jnp.float32) / jnp.sqrt(float(NUM_TAPS * c))
        params.append((dw, cv))
        c = f
    return params


def combined_value_head_forward(x_nchw, params, *, act_dtype=None,
                                mxu_dtype=None, target_rows=None,
                                vmem_limit_bytes=None):
    """x_nchw: (B, width, H, W) float32 (PyTorch NCHW).  Returns (B, 1) f32."""
    cfg = _generation_config()
    act_dtype = cfg["act_dtype"] if act_dtype is None else act_dtype
    mxu_dtype = cfg["mxu_dtype"] if mxu_dtype is None else mxu_dtype
    target_rows = cfg["target_rows"] if target_rows is None else target_rows
    vmem_limit_bytes = (cfg["vmem_limit"] if vmem_limit_bytes is None
                        else vmem_limit_bytes)

    x = jnp.transpose(x_nchw, (0, 2, 3, 1)).astype(act_dtype)     # NHWC
    B, H, W, C0 = x.shape

    # Pad W to a multiple of 8 so the in-kernel (BB*H*W, 7C) reshape stays
    # layout-friendly; padded columns are re-zeroed after every layer.
    Wp = ((W + 7) // 8) * 8
    if Wp != W:
        x = jnp.pad(x, ((0, 0), (0, 0), (0, Wp - W), (0, 0)))

    # Batch tile: large enough to amortize the ~0.35us/step overhead, but keep
    # >= 2 grid steps so "parallel" can shard across v7x's two TensorCores.
    bb = max(1, min(max(1, B // 2), max(1, target_rows // (H * Wp))))
    n_tiles = -(-B // bb)
    Bp = n_tiles * bb
    if Bp != B:                                   # no silently dropped tail rows
        x = jnp.pad(x, ((0, Bp - B), (0, 0), (0, 0), (0, 0)))

    f_outs = tuple(cv.shape[-1] for _, cv in params)
    operands = [x]
    in_specs = [pl.BlockSpec((bb, H, Wp, C0), lambda b: (b, 0, 0, 0))]
    for (dw, cv), f in zip(params, f_outs):
        c = dw.shape[-1]
        dw_r = dw.reshape(NUM_TAPS, 1, c).astype(act_dtype)
        operands.append(dw_r)
        in_specs.append(_resident_spec(dw_r))
        if f == 1:
            # 8->1 tail stays on the lane-dense VPU path in f32.
            cv_r = jnp.transpose(cv, (0, 2, 1)).astype(jnp.float32)  # (7,1,c)
        else:
            # Pre-flattened rhs for the K-concatenated MXU matmul, pre-cast.
            cv_r = cv.reshape(NUM_TAPS * c, f).astype(mxu_dtype)     # (7c, f)
        operands.append(cv_r)
        in_specs.append(_resident_spec(cv_r))

    kern = functools.partial(_value_head_kernel, f_outs=f_outs,
                             hw_true=H * W, w_true=W, mxu_dtype=mxu_dtype)
    out = pl.pallas_call(
        kern,
        out_shape=jax.ShapeDtypeStruct((n_tiles, 1, bb), jnp.float32),
        grid=(n_tiles,),
        in_specs=in_specs,
        out_specs=pl.BlockSpec((None, 1, bb), lambda b: (b, 0, 0)),
        compiler_params=pltpu.CompilerParams(
            dimension_semantics=("parallel",),
            vmem_limit_bytes=vmem_limit_bytes),
    )(*operands)
    return out.reshape(Bp, 1)[:B]


def reference_forward(x_nchw, params):
    """Pure-JAX f32 reference with identical semantics (sanity check)."""
    hi = jax.lax.Precision.HIGHEST
    x = jnp.transpose(x_nchw, (0, 2, 3, 1)).astype(jnp.float32)
    B, H, W, _ = x.shape
    even_col = ((jnp.arange(W) & 1) == 0).reshape(1, 1, W, 1)
    for dw, cv in params:
        p = jnp.stack(_hex_taps(x, even_col), axis=3)            # (B,H,W,7,C)
        x = jnp.maximum(jnp.einsum('bhwtc,tc->bhwc', p, dw, precision=hi), 0.0)
        p = jnp.stack(_hex_taps(x, even_col), axis=3)
        y = jnp.einsum('bhwtc,tcf->bhwf', p, cv, precision=hi)
        x = jnp.maximum(y, 0.0) if cv.shape[-1] != 1 else y
    return jnp.tanh(jnp.mean(x, axis=(1, 2, 3))).reshape(B, 1)


if __name__ == "__main__":
    key = jax.random.PRNGKey(0)
    width, B, H, W = 4, 2, 8, 8
    x = jax.random.normal(jax.random.fold_in(key, 123), (B, width, H, W),
                          jnp.float32)
    params = init_params(jax.random.fold_in(key, 7), width)

    ref = reference_forward(x, params)

    # 1) Full-precision path (f32 activations + f32 MXU): tight-ish check.
    fwd_f32 = jax.jit(functools.partial(combined_value_head_forward,
                                        act_dtype=jnp.float32,
                                        mxu_dtype=jnp.float32))
    out_f32 = jax.block_until_ready(fwd_f32(x, params))
    assert out_f32.shape == (B, 1), out_f32.shape
    assert jnp.allclose(out_f32, ref, rtol=2e-2, atol=5e-3), (out_f32, ref)

    # 2) Default fast path (per-generation bf16 MXU / activations): loose check.
    fwd_fast = jax.jit(combined_value_head_forward)
    out_fast = jax.block_until_ready(fwd_fast(x, params))
    assert out_fast.shape == (B, 1), out_fast.shape
    assert jnp.allclose(out_fast, ref, rtol=1e-1, atol=5e-2), (out_fast, ref)

    print("KERNEL_OK")
</pallas_src>

<mosaic_0001>
module attributes {stable_mosaic.version = 11 : i64} {
  func.func @_value_head_kernel(%arg0: i32, %arg1: memref<1x8x8x4xf32, #tpu.memory_space<vmem>>, %arg2: memref<7x1x4xf32, #tpu.memory_space<vmem>>, %arg3: memref<28x256xf32, #tpu.memory_space<vmem>>, %arg4: memref<7x1x256xf32, #tpu.memory_space<vmem>>, %arg5: memref<1792x64xf32, #tpu.memory_space<vmem>>, %arg6: memref<7x1x64xf32, #tpu.memory_space<vmem>>, %arg7: memref<448x8xf32, #tpu.memory_space<vmem>>, %arg8: memref<7x1x8xf32, #tpu.memory_space<vmem>>, %arg9: memref<7x1x8xf32, #tpu.memory_space<vmem>>, %arg10: memref<1x1x1xf32, #tpu.memory_space<vmem>>) attributes {dimension_semantics = [#tpu.dimension_semantics<parallel>], iteration_bounds = array<i64: 2>, scalar_prefetch = 0 : i64, scratch_operands = 0 : i64, tpu.core_type = #tpu.core_type<tc>, window_params = [{transform_indices = @transform_0, window_bounds = array<i64: 1, 8, 8, 4>}, {pipeline_mode = #tpu.pipeline_mode<synchronous>, transform_indices = @transform_1, window_bounds = array<i64: 7, 1, 4>}, {pipeline_mode = #tpu.pipeline_mode<synchronous>, transform_indices = @transform_2, window_bounds = array<i64: 28, 256>}, {pipeline_mode = #tpu.pipeline_mode<synchronous>, transform_indices = @transform_3, window_bounds = array<i64: 7, 1, 256>}, {pipeline_mode = #tpu.pipeline_mode<synchronous>, transform_indices = @transform_4, window_bounds = array<i64: 1792, 64>}, {pipeline_mode = #tpu.pipeline_mode<synchronous>, transform_indices = @transform_5, window_bounds = array<i64: 7, 1, 64>}, {pipeline_mode = #tpu.pipeline_mode<synchronous>, transform_indices = @transform_6, window_bounds = array<i64: 448, 8>}, {pipeline_mode = #tpu.pipeline_mode<synchronous>, transform_indices = @transform_7, window_bounds = array<i64: 7, 1, 8>}, {pipeline_mode = #tpu.pipeline_mode<synchronous>, transform_indices = @transform_8, window_bounds = array<i64: 7, 1, 8>}, {transform_indices = @transform_9, window_bounds = array<i64: 1, 1, 1>}]} {
    %c0 = arith.constant 0 : index
    %c0_0 = arith.constant 0 : index
    %c0_1 = arith.constant 0 : index
    %c0_2 = arith.constant 0 : index
    %0 = vector.load %arg1[%c0, %c0_0, %c0_1, %c0_2] : memref<1x8x8x4xf32, #tpu.memory_space<vmem>>, vector<1x8x8x4xf32>
    %1 = tpu.iota {dimensions = array<i32: 0>} : vector<8x1xi32>
    %2 = vector.shape_cast %1 : vector<8x1xi32> to vector<1x1x8x1xi32>
    %c1_i32 = arith.constant 1 : i32
    %3 = vector.broadcast %c1_i32 : i32 to vector<1x1x8x1xi32>
    %4 = arith.andi %2, %3 : vector<1x1x8x1xi32>
    %c0_i32 = arith.constant 0 : i32
    %5 = vector.broadcast %c0_i32 : i32 to vector<1x1x8x1xi32>
    %6 = arith.cmpi eq, %4, %5 : vector<1x1x8x1xi32>
    %c0_3 = arith.constant 0 : index
    %c0_4 = arith.constant 0 : index
    %c0_5 = arith.constant 0 : index
    %7 = vector.load %arg2[%c0_3, %c0_4, %c0_5] : memref<7x1x4xf32, #tpu.memory_space<vmem>>, vector<7x1x4xf32>
    %cst = arith.constant 0.000000e+00 : f32
    %8 = vector.broadcast %cst : f32 to vector<1x1x8x4xf32>
    %9 = vector.extract_strided_slice %0 {offsets = [0, 0, 0, 0], sizes = [1, 7, 8, 4], strides = [1, 1, 1, 1]} : vector<1x8x8x4xf32> to vector<1x7x8x4xf32>
    %10 = tpu.concatenate %8, %9 in 1 : vector<1x1x8x4xf32>, vector<1x7x8x4xf32> -> vector<1x8x8x4xf32>
    %cst_6 = arith.constant 0.000000e+00 : f32
    %11 = vector.broadcast %cst_6 : f32 to vector<1x1x8x4xf32>
    %12 = vector.extract_strided_slice %0 {offsets = [0, 1, 0, 0], sizes = [1, 7, 8, 4], strides = [1, 1, 1, 1]} : vector<1x8x8x4xf32> to vector<1x7x8x4xf32>
    %13 = tpu.concatenate %12, %11 in 1 : vector<1x7x8x4xf32>, vector<1x1x8x4xf32> -> vector<1x8x8x4xf32>
    %cst_7 = arith.constant 0.000000e+00 : f32
    %14 = vector.broadcast %cst_7 : f32 to vector<1x8x1x4xf32>
    %15 = vector.extract_strided_slice %0 {offsets = [0, 0, 0, 0], sizes = [1, 8, 7, 4], strides = [1, 1, 1, 1]} : vector<1x8x8x4xf32> to vector<1x8x7x4xf32>
    %16 = tpu.concatenate %14, %15 in 2 : vector<1x8x1x4xf32>, vector<1x8x7x4xf32> -> vector<1x8x8x4xf32>
    %cst_8 = arith.constant 0.000000e+00 : f32
    %17 = vector.broadcast %cst_8 : f32 to vector<1x8x1x4xf32>
    %18 = vector.extract_strided_slice %0 {offsets = [0, 0, 1, 0], sizes = [1, 8, 7, 4], strides = [1, 1, 1, 1]} : vector<1x8x8x4xf32> to vector<1x8x7x4xf32>
    %19 = tpu.concatenate %18, %17 in 2 : vector<1x8x7x4xf32>, vector<1x8x1x4xf32> -> vector<1x8x8x4xf32>
    %cst_9 = arith.constant 0.000000e+00 : f32
    %20 = vector.broadcast %cst_9 : f32 to vector<1x1x8x4xf32>
    %21 = vector.extract_strided_slice %16 {offsets = [0, 0, 0, 0], sizes = [1, 7, 8, 4], strides = [1, 1, 1, 1]} : vector<1x8x8x4xf32> to vector<1x7x8x4xf32>
    %22 = tpu.concatenate %20, %21 in 1 : vector<1x1x8x4xf32>, vector<1x7x8x4xf32> -> vector<1x8x8x4xf32>
    %23 = vector.shape_cast %6 : vector<1x1x8x1xi1> to vector<1x1x8x1xi1>
    %24 = vector.broadcast %23 : vector<1x1x8x1xi1> to vector<1x8x8x4xi1>
    %25 = arith.select %24, %22, %16 : vector<1x8x8x4xi1>, vector<1x8x8x4xf32>
    %cst_10 = arith.constant 0.000000e+00 : f32
    %26 = vector.broadcast %cst_10 : f32 to vector<1x1x8x4xf32>
    %27 = vector.extract_strided_slice %16 {offsets = [0, 1, 0, 0], sizes = [1, 7, 8, 4], strides = [1, 1, 1, 1]} : vector<1x8x8x4xf32> to vector<1x7x8x4xf32>
    %28 = tpu.concatenate %27, %26 in 1 : vector<1x7x8x4xf32>, vector<1x1x8x4xf32> -> vector<1x8x8x4xf32>
    %29 = vector.shape_cast %6 : vector<1x1x8x1xi1> to vector<1x1x8x1xi1>
    %30 = vector.broadcast %29 : vector<1x1x8x1xi1> to vector<1x8x8x4xi1>
    %31 = arith.select %30, %16, %28 : vector<1x8x8x4xi1>, vector<1x8x8x4xf32>
    %cst_11 = arith.constant 0.000000e+00 : f32
    %32 = vector.broadcast %cst_11 : f32 to vector<1x1x8x4xf32>
    %33 = vector.extract_strided_slice %19 {offsets = [0, 0, 0, 0], sizes = [1, 7, 8, 4], strides = [1, 1, 1, 1]} : vector<1x8x8x4xf32> to vector<1x7x8x4xf32>
    %34 = tpu.concatenate %32, %33 in 1 : vector<1x1x8x4xf32>, vector<1x7x8x4xf32> -> vector<1x8x8x4xf32>
    %35 = vector.shape_cast %6 : vector<1x1x8x1xi1> to vector<1x1x8x1xi1>
    %36 = vector.broadcast %35 : vector<1x1x8x1xi1> to vector<1x8x8x4xi1>
    %37 = arith.select %36, %34, %19 : vector<1x8x8x4xi1>, vector<1x8x8x4xf32>
    %cst_12 = arith.constant 0.000000e+00 : f32
    %38 = vector.broadcast %cst_12 : f32 to vector<1x1x8x4xf32>
    %39 = vector.extract_strided_slice %19 {offsets = [0, 1, 0, 0], sizes = [1, 7, 8, 4], strides = [1, 1, 1, 1]} : vector<1x8x8x4xf32> to vector<1x7x8x4xf32>
    %40 = tpu.concatenate %39, %38 in 1 : vector<1x7x8x4xf32>, vector<1x1x8x4xf32> -> vector<1x8x8x4xf32>
    %41 = vector.shape_cast %6 : vector<1x1x8x1xi1> to vector<1x1x8x1xi1>
    %42 = vector.broadcast %41 : vector<1x1x8x1xi1> to vector<1x8x8x4xi1>
    %43 = arith.select %42, %19, %40 : vector<1x8x8x4xi1>, vector<1x8x8x4xf32>
    %44 = vector.extract_strided_slice %7 {offsets = [0, 0, 0], sizes = [1, 1, 4], strides = [1, 1, 1]} : vector<7x1x4xf32> to vector<1x1x4xf32>
    %45 = vector.shape_cast %44 : vector<1x1x4xf32> to vector<1x4xf32>
    %46 = vector.shape_cast %45 : vector<1x4xf32> to vector<1x1x1x4xf32>
    %47 = vector.broadcast %46 : vector<1x1x1x4xf32> to vector<1x8x8x4xf32>
    %48 = arith.mulf %10, %47 : vector<1x8x8x4xf32>
    %49 = vector.extract_strided_slice %7 {offsets = [1, 0, 0], sizes = [1, 1, 4], strides = [1, 1, 1]} : vector<7x1x4xf32> to vector<1x1x4xf32>
    %50 = vector.shape_cast %49 : vector<1x1x4xf32> to vector<1x4xf32>
    %51 = vector.shape_cast %50 : vector<1x4xf32> to vector<1x1x1x4xf32>
    %52 = vector.broadcast %51 : vector<1x1x1x4xf32> to vector<1x8x8x4xf32>
    %53 = arith.mulf %0, %52 : vector<1x8x8x4xf32>
    %54 = arith.addf %48, %53 : vector<1x8x8x4xf32>
    %55 = vector.extract_strided_slice %7 {offsets = [2, 0, 0], sizes = [1, 1, 4], strides = [1, 1, 1]} : vector<7x1x4xf32> to vector<1x1x4xf32>
    %56 = vector.shape_cast %55 : vector<1x1x4xf32> to vector<1x4xf32>
    %57 = vector.shape_cast %56 : vector<1x4xf32> to vector<1x1x1x4xf32>
    %58 = vector.broadcast %57 : vector<1x1x1x4xf32> to vector<1x8x8x4xf32>
    %59 = arith.mulf %13, %58 : vector<1x8x8x4xf32>
    %60 = arith.addf %54, %59 : vector<1x8x8x4xf32>
    %61 = vector.extract_strided_slice %7 {offsets = [3, 0, 0], sizes = [1, 1, 4], strides = [1, 1, 1]} : vector<7x1x4xf32> to vector<1x1x4xf32>
    %62 = vector.shape_cast %61 : vector<1x1x4xf32> to vector<1x4xf32>
    %63 = vector.shape_cast %62 : vector<1x4xf32> to vector<1x1x1x4xf32>
    %64 = vector.broadcast %63 : vector<1x1x1x4xf32> to vector<1x8x8x4xf32>
    %65 = arith.mulf %25, %64 : vector<1x8x8x4xf32>
    %66 = arith.addf %60, %65 : vector<1x8x8x4xf32>
    %67 = vector.extract_strided_slice %7 {offsets = [4, 0, 0], sizes = [1, 1, 4], strides = [1, 1, 1]} : vector<7x1x4xf32> to vector<1x1x4xf32>
    %68 = vector.shape_cast %67 : vector<1x1x4xf32> to vector<1x4xf32>
    %69 = vector.shape_cast %68 : vector<1x4xf32> to vector<1x1x1x4xf32>
    %70 = vector.broadcast %69 : vector<1x1x1x4xf32> to vector<1x8x8x4xf32>
    %71 = arith.mulf %31, %70 : vector<1x8x8x4xf32>
    %72 = arith.addf %66, %71 : vector<1x8x8x4xf32>
    %73 = vector.extract_strided_slice %7 {offsets = [5, 0, 0], sizes = [1, 1, 4], strides = [1, 1, 1]} : vector<7x1x4xf32> to vector<1x1x4xf32>
    %74 = vector.shape_cast %73 : vector<1x1x4xf32> to vector<1x4xf32>
    %75 = vector.shape_cast %74 : vector<1x4xf32> to vector<1x1x1x4xf32>
    %76 = vector.broadcast %75 : vector<1x1x1x4xf32> to vector<1x8x8x4xf32>
    %77 = arith.mulf %37, %76 : vector<1x8x8x4xf32>
    %78 = arith.addf %72, %77 : vector<1x8x8x4xf32>
    %79 = vector.extract_strided_slice %7 {offsets = [6, 0, 0], sizes = [1, 1, 4], strides = [1, 1, 1]} : vector<7x1x4xf32> to vector<1x1x4xf32>
    %80 = vector.shape_cast %79 : vector<1x1x4xf32> to vector<1x4xf32>
    %81 = vector.shape_cast %80 : vector<1x4xf32> to vector<1x1x1x4xf32>
    %82 = vector.broadcast %81 : vector<1x1x1x4xf32> to vector<1x8x8x4xf32>
    %83 = arith.mulf %43, %82 : vector<1x8x8x4xf32>
    %84 = arith.addf %78, %83 : vector<1x8x8x4xf32>
    %cst_13 = arith.constant 0.000000e+00 : f32
    %85 = vector.broadcast %cst_13 : f32 to vector<1x8x8x4xf32>
    %86 = arith.maximumf %84, %85 : vector<1x8x8x4xf32>
    %cst_14 = arith.constant 0.000000e+00 : f32
    %87 = vector.broadcast %cst_14 : f32 to vector<1x1x8x4xf32>
    %88 = vector.extract_strided_slice %86 {offsets = [0, 0, 0, 0], sizes = [1, 7, 8, 4], strides = [1, 1, 1, 1]} : vector<1x8x8x4xf32> to vector<1x7x8x4xf32>
    %89 = tpu.concatenate %87, %88 in 1 : vector<1x1x8x4xf32>, vector<1x7x8x4xf32> -> vector<1x8x8x4xf32>
    %cst_15 = arith.constant 0.000000e+00 : f32
    %90 = vector.broadcast %cst_15 : f32 to vector<1x1x8x4xf32>
    %91 = vector.extract_strided_slice %86 {offsets = [0, 1, 0, 0], sizes = [1, 7, 8, 4], strides = [1, 1, 1, 1]} : vector<1x8x8x4xf32> to vector<1x7x8x4xf32>
    %92 = tpu.concatenate %91, %90 in 1 : vector<1x7x8x4xf32>, vector<1x1x8x4xf32> -> vector<1x8x8x4xf32>
    %cst_16 = arith.constant 0.000000e+00 : f32
    %93 = vector.broadcast %cst_16 : f32 to vector<1x8x1x4xf32>
    %94 = vector.extract_strided_slice %86 {offsets = [0, 0, 0, 0], sizes = [1, 8, 7, 4], strides = [1, 1, 1, 1]} : vector<1x8x8x4xf32> to vector<1x8x7x4xf32>
    %95 = tpu.concatenate %93, %94 in 2 : vector<1x8x1x4xf32>, vector<1x8x7x4xf32> -> vector<1x8x8x4xf32>
    %cst_17 = arith.constant 0.000000e+00 : f32
    %96 = vector.broadcast %cst_17 : f32 to vector<1x8x1x4xf32>
    %97 = vector.extract_strided_slice %86 {offsets = [0, 0, 1, 0], sizes = [1, 8, 7, 4], strides = [1, 1, 1, 1]} : vector<1x8x8x4xf32> to vector<1x8x7x4xf32>
    %98 = tpu.concatenate %97, %96 in 2 : vector<1x8x7x4xf32>, vector<1x8x1x4xf32> -> vector<1x8x8x4xf32>
    %cst_18 = arith.constant 0.000000e+00 : f32
    %99 = vector.broadcast %cst_18 : f32 to vector<1x1x8x4xf32>
    %100 = vector.extract_strided_slice %95 {offsets = [0, 0, 0, 0], sizes = [1, 7, 8, 4], strides = [1, 1, 1, 1]} : vector<1x8x8x4xf32> to vector<1x7x8x4xf32>
    %101 = tpu.concatenate %99, %100 in 1 : vector<1x1x8x4xf32>, vector<1x7x8x4xf32> -> vector<1x8x8x4xf32>
    %102 = vector.shape_cast %6 : vector<1x1x8x1xi1> to vector<1x1x8x1xi1>
    %103 = vector.broadcast %102 : vector<1x1x8x1xi1> to vector<1x8x8x4xi1>
    %104 = arith.select %103, %101, %95 : vector<1x8x8x4xi1>, vector<1x8x8x4xf32>
    %cst_19 = arith.constant 0.000000e+00 : f32
    %105 = vector.broadcast %cst_19 : f32 to vector<1x1x8x4xf32>
    %106 = vector.extract_strided_slice %95 {offsets = [0, 1, 0, 0], sizes = [1, 7, 8, 4], strides = [1, 1, 1, 1]} : vector<1x8x8x4xf32> to vector<1x7x8x4xf32>
    %107 = tpu.concatenate %106, %105 in 1 : vector<1x7x8x4xf32>, vector<1x1x8x4xf32> -> vector<1x8x8x4xf32>
    %108 = vector.shape_cast %6 : vector<1x1x8x1xi1> to vector<1x1x8x1xi1>
    %109 = vector.broadcast %108 : vector<1x1x8x1xi1> to vector<1x8x8x4xi1>
    %110 = arith.select %109, %95, %107 : vector<1x8x8x4xi1>, vector<1x8x8x4xf32>
    %cst_20 = arith.constant 0.000000e+00 : f32
    %111 = vector.broadcast %cst_20 : f32 to vector<1x1x8x4xf32>
    %112 = vector.extract_strided_slice %98 {offsets = [0, 0, 0, 0], sizes = [1, 7, 8, 4], strides = [1, 1, 1, 1]} : vector<1x8x8x4xf32> to vector<1x7x8x4xf32>
    %113 = tpu.concatenate %111, %112 in 1 : vector<1x1x8x4xf32>, vector<1x7x8x4xf32> -> vector<1x8x8x4xf32>
    %114 = vector.shape_cast %6 : vector<1x1x8x1xi1> to vector<1x1x8x1xi1>
    %115 = vector.broadcast %114 : vector<1x1x8x1xi1> to vector<1x8x8x4xi1>
    %116 = arith.select %115, %113, %98 : vector<1x8x8x4xi1>, vector<1x8x8x4xf32>
    %cst_21 = arith.constant 0.000000e+00 : f32
    %117 = vector.broadcast %cst_21 : f32 to vector<1x1x8x4xf32>
    %118 = vector.extract_strided_slice %98 {offsets = [0, 1, 0, 0], sizes = [1, 7, 8, 4], strides = [1, 1, 1, 1]} : vector<1x8x8x4xf32> to vector<1x7x8x4xf32>
    %119 = tpu.concatenate %118, %117 in 1 : vector<1x7x8x4xf32>, vector<1x1x8x4xf32> -> vector<1x8x8x4xf32>
    %120 = vector.shape_cast %6 : vector<1x1x8x1xi1> to vector<1x1x8x1xi1>
    %121 = vector.broadcast %120 : vector<1x1x8x1xi1> to vector<1x8x8x4xi1>
    %122 = arith.select %121, %98, %119 : vector<1x8x8x4xi1>, vector<1x8x8x4xf32>
    %123 = tpu.concatenate %89, %86, %92, %104, %110, %116, %122 in 3 : vector<1x8x8x4xf32>, vector<1x8x8x4xf32>, vector<1x8x8x4xf32>, vector<1x8x8x4xf32>, vector<1x8x8x4xf32>, vector<1x8x8x4xf32>, vector<1x8x8x4xf32> -> vector<1x8x8x28xf32>
    %124 = vector.shape_cast %123 : vector<1x8x8x28xf32> to vector<64x28xf32>
    %c0_22 = arith.constant 0 : index
    %c0_23 = arith.constant 0 : index
    %125 = vector.load %arg3[%c0_22, %c0_23] : memref<28x256xf32, #tpu.memory_space<vmem>>, vector<28x256xf32>
    %cst_24 = arith.constant dense<0.000000e+00> : vector<64x256xf32>
    %126 = tpu.matmul %124, %125, %cst_24 {dimension_numbers = #tpu.dot_dimension_numbers<[1], [0], [0], [1], [0, 0, 1, 1], [], []>} : vector<64x28xf32>, vector<28x256xf32>, vector<64x256xf32> -> vector<64x256xf32>
    %127 = vector.shape_cast %126 : vector<64x256xf32> to vector<1x8x8x256xf32>
    %cst_25 = arith.constant 0.000000e+00 : f32
    %128 = vector.broadcast %cst_25 : f32 to vector<1x8x8x256xf32>
    %129 = arith.maximumf %127, %128 : vector<1x8x8x256xf32>
    %c0_26 = arith.constant 0 : index
    %c0_27 = arith.constant 0 : index
    %c0_28 = arith.constant 0 : index
    %130 = vector.load %arg4[%c0_26, %c0_27, %c0_28] : memref<7x1x256xf32, #tpu.memory_space<vmem>>, vector<7x1x256xf32>
    %cst_29 = arith.constant 0.000000e+00 : f32
    %131 = vector.broadcast %cst_29 : f32 to vector<1x1x8x256xf32>
    %132 = vector.extract_strided_slice %129 {offsets = [0, 0, 0, 0], sizes = [1, 7, 8, 256], strides = [1, 1, 1, 1]} : vector<1x8x8x256xf32> to vector<1x7x8x256xf32>
    %133 = tpu.concatenate %131, %132 in 1 : vector<1x1x8x256xf32>, vector<1x7x8x256xf32> -> vector<1x8x8x256xf32>
    %cst_30 = arith.constant 0.000000e+00 : f32
    %134 = vector.broadcast %cst_30 : f32 to vector<1x1x8x256xf32>
    %135 = vector.extract_strided_slice %129 {offsets = [0, 1, 0, 0], sizes = [1, 7, 8, 256], strides = [1, 1, 1, 1]} : vector<1x8x8x256xf32> to vector<1x7x8x256xf32>
    %136 = tpu.concatenate %135, %134 in 1 : vector<1x7x8x256xf32>, vector<1x1x8x256xf32> -> vector<1x8x8x256xf32>
    %cst_31 = arith.constant 0.000000e+00 : f32
    %137 = vector.broadcast %cst_31 : f32 to vector<1x8x1x256xf32>
    %138 = vector.extract_strided_slice %129 {offsets = [0, 0, 0, 0], sizes = [1, 8, 7, 256], strides = [1, 1, 1, 1]} : vector<1x8x8x256xf32> to vector<1x8x7x256xf32>
    %139 = tpu.concatenate %137, %138 in 2 : vector<1x8x1x256xf32>, vector<1x8x7x256xf32> -> vector<1x8x8x256xf32>
    %cst_32 = arith.constant 0.000000e+00 : f32
    %140 = vector.broadcast %cst_32 : f32 to vector<1x8x1x256xf32>
    %141 = vector.extract_strided_slice %129 {offsets = [0, 0, 1, 0], sizes = [1, 8, 7, 256], strides = [1, 1, 1, 1]} : vector<1x8x8x256xf32> to vector<1x8x7x256xf32>
    %142 = tpu.concatenate %141, %140 in 2 : vector<1x8x7x256xf32>, vector<1x8x1x256xf32> -> vector<1x8x8x256xf32>
    %cst_33 = arith.constant 0.000000e+00 : f32
    %143 = vector.broadcast %cst_33 : f32 to vector<1x1x8x256xf32>
    %144 = vector.extract_strided_slice %139 {offsets = [0, 0, 0, 0], sizes = [1, 7, 8, 256], strides = [1, 1, 1, 1]} : vector<1x8x8x256xf32> to vector<1x7x8x256xf32>
    %145 = tpu.concatenate %143, %144 in 1 : vector<1x1x8x256xf32>, vector<1x7x8x256xf32> -> vector<1x8x8x256xf32>
    %146 = vector.shape_cast %6 : vector<1x1x8x1xi1> to vector<1x1x8x1xi1>
    %147 = vector.broadcast %146 : vector<1x1x8x1xi1> to vector<1x8x8x256xi1>
    %148 = arith.select %147, %145, %139 : vector<1x8x8x256xi1>, vector<1x8x8x256xf32>
    %cst_34 = arith.constant 0.000000e+00 : f32
    %149 = vector.broadcast %cst_34 : f32 to vector<1x1x8x256xf32>
    %150 = vector.extract_strided_slice %139 {offsets = [0, 1, 0, 0], sizes = [1, 7, 8, 256], strides = [1, 1, 1, 1]} : vector<1x8x8x256xf32> to vector<1x7x8x256xf32>
    %151 = tpu.concatenate %150, %149 in 1 : vector<1x7x8x256xf32>, vector<1x1x8x256xf32> -> vector<1x8x8x256xf32>
    %152 = vector.shape_cast %6 : vector<1x1x8x1xi1> to vector<1x1x8x1xi1>
    %153 = vector.broadcast %152 : vector<1x1x8x1xi1> to vector<1x8x8x256xi1>
    %154 = arith.select %153, %139, %151 : vector<1x8x8x256xi1>, vector<1x8x8x256xf32>
    %cst_35 = arith.constant 0.000000e+00 : f32
    %155 = vector.broadcast %cst_35 : f32 to vector<1x1x8x256xf32>
    %156 = vector.extract_strided_slice %142 {offsets = [0, 0, 0, 0], sizes = [1, 7, 8, 256], strides = [1, 1, 1, 1]} : vector<1x8x8x256xf32> to vector<1x7x8x256xf32>
    %157 = tpu.concatenate %155, %156 in 1 : vector<1x1x8x256xf32>, vector<1x7x8x256xf32> -> vector<1x8x8x256xf32>
    %158 = vector.shape_cast %6 : vector<1x1x8x1xi1> to vector<1x1x8x1xi1>
    %159 = vector.broadcast %158 : vector<1x1x8x1xi1> to vector<1x8x8x256xi1>
    %160 = arith.select %159, %157, %142 : vector<1x8x8x256xi1>, vector<1x8x8x256xf32>
    %cst_36 = arith.constant 0.000000e+00 : f32
    %161 = vector.broadcast %cst_36 : f32 to vector<1x1x8x256xf32>
    %162 = vector.extract_strided_slice %142 {offsets = [0, 1, 0, 0], sizes = [1, 7, 8, 256], strides = [1, 1, 1, 1]} : vector<1x8x8x256xf32> to vector<1x7x8x256xf32>
    %163 = tpu.concatenate %162, %161 in 1 : vector<1x7x8x256xf32>, vector<1x1x8x256xf32> -> vector<1x8x8x256xf32>
    %164 = vector.shape_cast %6 : vector<1x1x8x1xi1> to vector<1x1x8x1xi1>
    %165 = vector.broadcast %164 : vector<1x1x8x1xi1> to vector<1x8x8x256xi1>
    %166 = arith.select %165, %142, %163 : vector<1x8x8x256xi1>, vector<1x8x8x256xf32>
    %167 = vector.extract_strided_slice %130 {offsets = [0, 0, 0], sizes = [1, 1, 256], strides = [1, 1, 1]} : vector<7x1x256xf32> to vector<1x1x256xf32>
    %168 = vector.shape_cast %167 : vector<1x1x256xf32> to vector<1x256xf32>
    %169 = vector.shape_cast %168 : vector<1x256xf32> to vector<1x1x1x256xf32>
    %170 = vector.broadcast %169 : vector<1x1x1x256xf32> to vector<1x8x8x256xf32>
    %171 = arith.mulf %133, %170 : vector<1x8x8x256xf32>
    %172 = vector.extract_strided_slice %130 {offsets = [1, 0, 0], sizes = [1, 1, 256], strides = [1, 1, 1]} : vector<7x1x256xf32> to vector<1x1x256xf32>
    %173 = vector.shape_cast %172 : vector<1x1x256xf32> to vector<1x256xf32>
    %174 = vector.shape_cast %173 : vector<1x256xf32> to vector<1x1x1x256xf32>
    %175 = vector.broadcast %174 : vector<1x1x1x256xf32> to vector<1x8x8x256xf32>
    %176 = arith.mulf %129, %175 : vector<1x8x8x256xf32>
    %177 = arith.addf %171, %176 : vector<1x8x8x256xf32>
    %178 = vector.extract_strided_slice %130 {offsets = [2, 0, 0], sizes = [1, 1, 256], strides = [1, 1, 1]} : vector<7x1x256xf32> to vector<1x1x256xf32>
    %179 = vector.shape_cast %178 : vector<1x1x256xf32> to vector<1x256xf32>
    %180 = vector.shape_cast %179 : vector<1x256xf32> to vector<1x1x1x256xf32>
    %181 = vector.broadcast %180 : vector<1x1x1x256xf32> to vector<1x8x8x256xf32>
    %182 = arith.mulf %136, %181 : vector<1x8x8x256xf32>
    %183 = arith.addf %177, %182 : vector<1x8x8x256xf32>
    %184 = vector.extract_strided_slice %130 {offsets = [3, 0, 0], sizes = [1, 1, 256], strides = [1, 1, 1]} : vector<7x1x256xf32> to vector<1x1x256xf32>
    %185 = vector.shape_cast %184 : vector<1x1x256xf32> to vector<1x256xf32>
    %186 = vector.shape_cast %185 : vector<1x256xf32> to vector<1x1x1x256xf32>
    %187 = vector.broadcast %186 : vector<1x1x1x256xf32> to vector<1x8x8x256xf32>
    %188 = arith.mulf %148, %187 : vector<1x8x8x256xf32>
    %189 = arith.addf %183, %188 : vector<1x8x8x256xf32>
    %190 = vector.extract_strided_slice %130 {offsets = [4, 0, 0], sizes = [1, 1, 256], strides = [1, 1, 1]} : vector<7x1x256xf32> to vector<1x1x256xf32>
    %191 = vector.shape_cast %190 : vector<1x1x256xf32> to vector<1x256xf32>
    %192 = vector.shape_cast %191 : vector<1x256xf32> to vector<1x1x1x256xf32>
    %193 = vector.broadcast %192 : vector<1x1x1x256xf32> to vector<1x8x8x256xf32>
    %194 = arith.mulf %154, %193 : vector<1x8x8x256xf32>
    %195 = arith.addf %189, %194 : vector<1x8x8x256xf32>
    %196 = vector.extract_strided_slice %130 {offsets = [5, 0, 0], sizes = [1, 1, 256], strides = [1, 1, 1]} : vector<7x1x256xf32> to vector<1x1x256xf32>
    %197 = vector.shape_cast %196 : vector<1x1x256xf32> to vector<1x256xf32>
    %198 = vector.shape_cast %197 : vector<1x256xf32> to vector<1x1x1x256xf32>
    %199 = vector.broadcast %198 : vector<1x1x1x256xf32> to vector<1x8x8x256xf32>
    %200 = arith.mulf %160, %199 : vector<1x8x8x256xf32>
    %201 = arith.addf %195, %200 : vector<1x8x8x256xf32>
    %202 = vector.extract_strided_slice %130 {offsets = [6, 0, 0], sizes = [1, 1, 256], strides = [1, 1, 1]} : vector<7x1x256xf32> to vector<1x1x256xf32>
    %203 = vector.shape_cast %202 : vector<1x1x256xf32> to vector<1x256xf32>
    %204 = vector.shape_cast %203 : vector<1x256xf32> to vector<1x1x1x256xf32>
    %205 = vector.broadcast %204 : vector<1x1x1x256xf32> to vector<1x8x8x256xf32>
    %206 = arith.mulf %166, %205 : vector<1x8x8x256xf32>
    %207 = arith.addf %201, %206 : vector<1x8x8x256xf32>
    %cst_37 = arith.constant 0.000000e+00 : f32
    %208 = vector.broadcast %cst_37 : f32 to vector<1x8x8x256xf32>
    %209 = arith.maximumf %207, %208 : vector<1x8x8x256xf32>
    %cst_38 = arith.constant 0.000000e+00 : f32
    %210 = vector.broadcast %cst_38 : f32 to vector<1x1x8x256xf32>
    %211 = vector.extract_strided_slice %209 {offsets = [0, 0, 0, 0], sizes = [1, 7, 8, 256], strides = [1, 1, 1, 1]} : vector<1x8x8x256xf32> to vector<1x7x8x256xf32>
    %212 = tpu.concatenate %210, %211 in 1 : vector<1x1x8x256xf32>, vector<1x7x8x256xf32> -> vector<1x8x8x256xf32>
    %cst_39 = arith.constant 0.000000e+00 : f32
    %213 = vector.broadcast %cst_39 : f32 to vector<1x1x8x256xf32>
    %214 = vector.extract_strided_slice %209 {offsets = [0, 1, 0, 0], sizes = [1, 7, 8, 256], strides = [1, 1, 1, 1]} : vector<1x8x8x256xf32> to vector<1x7x8x256xf32>
    %215 = tpu.concatenate %214, %213 in 1 : vector<1x7x8x256xf32>, vector<1x1x8x256xf32> -> vector<1x8x8x256xf32>
    %cst_40 = arith.constant 0.000000e+00 : f32
    %216 = vector.broadcast %cst_40 : f32 to vector<1x8x1x256xf32>
    %217 = vector.extract_strided_slice %209 {offsets = [0, 0, 0, 0], sizes = [1, 8, 7, 256], strides = [1, 1, 1, 1]} : vector<1x8x8x256xf32> to vector<1x8x7x256xf32>
    %218 = tpu.concatenate %216, %217 in 2 : vector<1x8x1x256xf32>, vector<1x8x7x256xf32> -> vector<1x8x8x256xf32>
    %cst_41 = arith.constant 0.000000e+00 : f32
    %219 = vector.broadcast %cst_41 : f32 to vector<1x8x1x256xf32>
    %220 = vector.extract_strided_slice %209 {offsets = [0, 0, 1, 0], sizes = [1, 8, 7, 256], strides = [1, 1, 1, 1]} : vector<1x8x8x256xf32> to vector<1x8x7x256xf32>
    %221 = tpu.concatenate %220, %219 in 2 : vector<1x8x7x256xf32>, vector<1x8x1x256xf32> -> vector<1x8x8x256xf32>
    %cst_42 = arith.constant 0.000000e+00 : f32
    %222 = vector.broadcast %cst_42 : f32 to vector<1x1x8x256xf32>
    %223 = vector.extract_strided_slice %218 {offsets = [0, 0, 0, 0], sizes = [1, 7, 8, 256], strides = [1, 1, 1, 1]} : vector<1x8x8x256xf32> to vector<1x7x8x256xf32>
    %224 = tpu.concatenate %222, %223 in 1 : vector<1x1x8x256xf32>, vector<1x7x8x256xf32> -> vector<1x8x8x256xf32>
    %225 = vector.shape_cast %6 : vector<1x1x8x1xi1> to vector<1x1x8x1xi1>
    %226 = vector.broadcast %225 : vector<1x1x8x1xi1> to vector<1x8x8x256xi1>
    %227 = arith.select %226, %224, %218 : vector<1x8x8x256xi1>, vector<1x8x8x256xf32>
    %cst_43 = arith.constant 0.000000e+00 : f32
    %228 = vector.broadcast %cst_43 : f32 to vector<1x1x8x256xf32>
    %229 = vector.extract_strided_slice %218 {offsets = [0, 1, 0, 0], sizes = [1, 7, 8, 256], strides = [1, 1, 1, 1]} : vector<1x8x8x256xf32> to vector<1x7x8x256xf32>
    %230 = tpu.concatenate %229, %228 in 1 : vector<1x7x8x256xf32>, vector<1x1x8x256xf32> -> vector<1x8x8x256xf32>
    %231 = vector.shape_cast %6 : vector<1x1x8x1xi1> to vector<1x1x8x1xi1>
    %232 = vector.broadcast %231 : vector<1x1x8x1xi1> to vector<1x8x8x256xi1>
    %233 = arith.select %232, %218, %230 : vector<1x8x8x256xi1>, vector<1x8x8x256xf32>
    %cst_44 = arith.constant 0.000000e+00 : f32
    %234 = vector.broadcast %cst_44 : f32 to vector<1x1x8x256xf32>
    %235 = vector.extract_strided_slice %221 {offsets = [0, 0, 0, 0], sizes = [1, 7, 8, 256], strides = [1, 1, 1, 1]} : vector<1x8x8x256xf32> to vector<1x7x8x256xf32>
    %236 = tpu.concatenate %234, %235 in 1 : vector<1x1x8x256xf32>, vector<1x7x8x256xf32> -> vector<1x8x8x256xf32>
    %237 = vector.shape_cast %6 : vector<1x1x8x1xi1> to vector<1x1x8x1xi1>
    %238 = vector.broadcast %237 : vector<1x1x8x1xi1> to vector<1x8x8x256xi1>
    %239 = arith.select %238, %236, %221 : vector<1x8x8x256xi1>, vector<1x8x8x256xf32>
    %cst_45 = arith.constant 0.000000e+00 : f32
    %240 = vector.broadcast %cst_45 : f32 to vector<1x1x8x256xf32>
    %241 = vector.extract_strided_slice %221 {offsets = [0, 1, 0, 0], sizes = [1, 7, 8, 256], strides = [1, 1, 1, 1]} : vector<1x8x8x256xf32> to vector<1x7x8x256xf32>
    %242 = tpu.concatenate %241, %240 in 1 : vector<1x7x8x256xf32>, vector<1x1x8x256xf32> -> vector<1x8x8x256xf32>
    %243 = vector.shape_cast %6 : vector<1x1x8x1xi1> to vector<1x1x8x1xi1>
    %244 = vector.broadcast %243 : vector<1x1x8x1xi1> to vector<1x8x8x256xi1>
    %245 = arith.select %244, %221, %242 : vector<1x8x8x256xi1>, vector<1x8x8x256xf32>
    %246 = tpu.concatenate %212, %209, %215, %227, %233, %239, %245 in 3 : vector<1x8x8x256xf32>, vector<1x8x8x256xf32>, vector<1x8x8x256xf32>, vector<1x8x8x256xf32>, vector<1x8x8x256xf32>, vector<1x8x8x256xf32>, vector<1x8x8x256xf32> -> vector<1x8x8x1792xf32>
    %247 = vector.shape_cast %246 : vector<1x8x8x1792xf32> to vector<64x1792xf32>
    %c0_46 = arith.constant 0 : index
    %c0_47 = arith.constant 0 : index
    %248 = vector.load %arg5[%c0_46, %c0_47] : memref<1792x64xf32, #tpu.memory_space<vmem>>, vector<1792x64xf32>
    %cst_48 = arith.constant dense<0.000000e+00> : vector<64x64xf32>
    %249 = tpu.matmul %247, %248, %cst_48 {dimension_numbers = #tpu.dot_dimension_numbers<[1], [0], [0], [1], [0, 0, 1, 1], [], []>} : vector<64x1792xf32>, vector<1792x64xf32>, vector<64x64xf32> -> vector<64x64xf32>
    %250 = vector.shape_cast %249 : vector<64x64xf32> to vector<1x8x8x64xf32>
    %cst_49 = arith.constant 0.000000e+00 : f32
    %251 = vector.broadcast %cst_49 : f32 to vector<1x8x8x64xf32>
    %252 = arith.maximumf %250, %251 : vector<1x8x8x64xf32>
    %c0_50 = arith.constant 0 : index
    %c0_51 = arith.constant 0 : index
    %c0_52 = arith.constant 0 : index
    %253 = vector.load %arg6[%c0_50, %c0_51, %c0_52] : memref<7x1x64xf32, #tpu.memory_space<vmem>>, vector<7x1x64xf32>
    %cst_53 = arith.constant 0.000000e+00 : f32
    %254 = vector.broadcast %cst_53 : f32 to vector<1x1x8x64xf32>
    %255 = vector.extract_strided_slice %252 {offsets = [0, 0, 0, 0], sizes = [1, 7, 8, 64], strides = [1, 1, 1, 1]} : vector<1x8x8x64xf32> to vector<1x7x8x64xf32>
    %256 = tpu.concatenate %254, %255 in 1 : vector<1x1x8x64xf32>, vector<1x7x8x64xf32> -> vector<1x8x8x64xf32>
    %cst_54 = arith.constant 0.000000e+00 : f32
    %257 = vector.broadcast %cst_54 : f32 to vector<1x1x8x64xf32>
    %258 = vector.extract_strided_slice %252 {offsets = [0, 1, 0, 0], sizes = [1, 7, 8, 64], strides = [1, 1, 1, 1]} : vector<1x8x8x64xf32> to vector<1x7x8x64xf32>
    %259 = tpu.concatenate %258, %257 in 1 : vector<1x7x8x64xf32>, vector<1x1x8x64xf32> -> vector<1x8x8x64xf32>
    %cst_55 = arith.constant 0.000000e+00 : f32
    %260 = vector.broadcast %cst_55 : f32 to vector<1x8x1x64xf32>
    %261 = vector.extract_strided_slice %252 {offsets = [0, 0, 0, 0], sizes = [1, 8, 7, 64], strides = [1, 1, 1, 1]} : vector<1x8x8x64xf32> to vector<1x8x7x64xf32>
    %262 = tpu.concatenate %260, %261 in 2 : vector<1x8x1x64xf32>, vector<1x8x7x64xf32> -> vector<1x8x8x64xf32>
    %cst_56 = arith.constant 0.000000e+00 : f32
    %263 = vector.broadcast %cst_56 : f32 to vector<1x8x1x64xf32>
    %264 = vector.extract_strided_slice %252 {offsets = [0, 0, 1, 0], sizes = [1, 8, 7, 64], strides = [1, 1, 1, 1]} : vector<1x8x8x64xf32> to vector<1x8x7x64xf32>
    %265 = tpu.concatenate %264, %263 in 2 : vector<1x8x7x64xf32>, vector<1x8x1x64xf32> -> vector<1x8x8x64xf32>
    %cst_57 = arith.constant 0.000000e+00 : f32
    %266 = vector.broadcast %cst_57 : f32 to vector<1x1x8x64xf32>
    %267 = vector.extract_strided_slice %262 {offsets = [0, 0, 0, 0], sizes = [1, 7, 8, 64], strides = [1, 1, 1, 1]} : vector<1x8x8x64xf32> to vector<1x7x8x64xf32>
    %268 = tpu.concatenate %266, %267 in 1 : vector<1x1x8x64xf32>, vector<1x7x8x64xf32> -> vector<1x8x8x64xf32>
    %269 = vector.shape_cast %6 : vector<1x1x8x1xi1> to vector<1x1x8x1xi1>
    %270 = vector.broadcast %269 : vector<1x1x8x1xi1> to vector<1x8x8x64xi1>
    %271 = arith.select %270, %268, %262 : vector<1x8x8x64xi1>, vector<1x8x8x64xf32>
    %cst_58 = arith.constant 0.000000e+00 : f32
    %272 = vector.broadcast %cst_58 : f32 to vector<1x1x8x64xf32>
    %273 = vector.extract_strided_slice %262 {offsets = [0, 1, 0, 0], sizes = [1, 7, 8, 64], strides = [1, 1, 1, 1]} : vector<1x8x8x64xf32> to vector<1x7x8x64xf32>
    %274 = tpu.concatenate %273, %272 in 1 : vector<1x7x8x64xf32>, vector<1x1x8x64xf32> -> vector<1x8x8x64xf32>
    %275 = vector.shape_cast %6 : vector<1x1x8x1xi1> to vector<1x1x8x1xi1>
    %276 = vector.broadcast %275 : vector<1x1x8x1xi1> to vector<1x8x8x64xi1>
    %277 = arith.select %276, %262, %274 : vector<1x8x8x64xi1>, vector<1x8x8x64xf32>
    %cst_59 = arith.constant 0.000000e+00 : f32
    %278 = vector.broadcast %cst_59 : f32 to vector<1x1x8x64xf32>
    %279 = vector.extract_strided_slice %265 {offsets = [0, 0, 0, 0], sizes = [1, 7, 8, 64], strides = [1, 1, 1, 1]} : vector<1x8x8x64xf32> to vector<1x7x8x64xf32>
    %280 = tpu.concatenate %278, %279 in 1 : vector<1x1x8x64xf32>, vector<1x7x8x64xf32> -> vector<1x8x8x64xf32>
    %281 = vector.shape_cast %6 : vector<1x1x8x1xi1> to vector<1x1x8x1xi1>
    %282 = vector.broadcast %281 : vector<1x1x8x1xi1> to vector<1x8x8x64xi1>
    %283 = arith.select %282, %280, %265 : vector<1x8x8x64xi1>, vector<1x8x8x64xf32>
    %cst_60 = arith.constant 0.000000e+00 : f32
    %284 = vector.broadcast %cst_60 : f32 to vector<1x1x8x64xf32>
    %285 = vector.extract_strided_slice %265 {offsets = [0, 1, 0, 0], sizes = [1, 7, 8, 64], strides = [1, 1, 1, 1]} : vector<1x8x8x64xf32> to vector<1x7x8x64xf32>
    %286 = tpu.concatenate %285, %284 in 1 : vector<1x7x8x64xf32>, vector<1x1x8x64xf32> -> vector<1x8x8x64xf32>
    %287 = vector.shape_cast %6 : vector<1x1x8x1xi1> to vector<1x1x8x1xi1>
    %288 = vector.broadcast %287 : vector<1x1x8x1xi1> to vector<1x8x8x64xi1>
    %289 = arith.select %288, %265, %286 : vector<1x8x8x64xi1>, vector<1x8x8x64xf32>
    %290 = vector.extract_strided_slice %253 {offsets = [0, 0, 0], sizes = [1, 1, 64], strides = [1, 1, 1]} : vector<7x1x64xf32> to vector<1x1x64xf32>
    %291 = vector.shape_cast %290 : vector<1x1x64xf32> to vector<1x64xf32>
    %292 = vector.shape_cast %291 : vector<1x64xf32> to vector<1x1x1x64xf32>
    %293 = vector.broadcast %292 : vector<1x1x1x64xf32> to vector<1x8x8x64xf32>
    %294 = arith.mulf %256, %293 : vector<1x8x8x64xf32>
    %295 = vector.extract_strided_slice %253 {offsets = [1, 0, 0], sizes = [1, 1, 64], strides = [1, 1, 1]} : vector<7x1x64xf32> to vector<1x1x64xf32>
    %296 = vector.shape_cast %295 : vector<1x1x64xf32> to vector<1x64xf32>
    %297 = vector.shape_cast %296 : vector<1x64xf32> to vector<1x1x1x64xf32>
    %298 = vector.broadcast %297 : vector<1x1x1x64xf32> to vector<1x8x8x64xf32>
    %299 = arith.mulf %252, %298 : vector<1x8x8x64xf32>
    %300 = arith.addf %294, %299 : vector<1x8x8x64xf32>
    %301 = vector.extract_strided_slice %253 {offsets = [2, 0, 0], sizes = [1, 1, 64], strides = [1, 1, 1]} : vector<7x1x64xf32> to vector<1x1x64xf32>
    %302 = vector.shape_cast %301 : vector<1x1x64xf32> to vector<1x64xf32>
    %303 = vector.shape_cast %302 : vector<1x64xf32> to vector<1x1x1x64xf32>
    %304 = vector.broadcast %303 : vector<1x1x1x64xf32> to vector<1x8x8x64xf32>
    %305 = arith.mulf %259, %304 : vector<1x8x8x64xf32>
    %306 = arith.addf %300, %305 : vector<1x8x8x64xf32>
    %307 = vector.extract_strided_slice %253 {offsets = [3, 0, 0], sizes = [1, 1, 64], strides = [1, 1, 1]} : vector<7x1x64xf32> to vector<1x1x64xf32>
    %308 = vector.shape_cast %307 : vector<1x1x64xf32> to vector<1x64xf32>
    %309 = vector.shape_cast %308 : vector<1x64xf32> to vector<1x1x1x64xf32>
    %310 = vector.broadcast %309 : vector<1x1x1x64xf32> to vector<1x8x8x64xf32>
    %311 = arith.mulf %271, %310 : vector<1x8x8x64xf32>
    %312 = arith.addf %306, %311 : vector<1x8x8x64xf32>
    %313 = vector.extract_strided_slice %253 {offsets = [4, 0, 0], sizes = [1, 1, 64], strides = [1, 1, 1]} : vector<7x1x64xf32> to vector<1x1x64xf32>
    %314 = vector.shape_cast %313 : vector<1x1x64xf32> to vector<1x64xf32>
    %315 = vector.shape_cast %314 : vector<1x64xf32> to vector<1x1x1x64xf32>
    %316 = vector.broadcast %315 : vector<1x1x1x64xf32> to vector<1x8x8x64xf32>
    %317 = arith.mulf %277, %316 : vector<1x8x8x64xf32>
    %318 = arith.addf %312, %317 : vector<1x8x8x64xf32>
    %319 = vector.extract_strided_slice %253 {offsets = [5, 0, 0], sizes = [1, 1, 64], strides = [1, 1, 1]} : vector<7x1x64xf32> to vector<1x1x64xf32>
    %320 = vector.shape_cast %319 : vector<1x1x64xf32> to vector<1x64xf32>
    %321 = vector.shape_cast %320 : vector<1x64xf32> to vector<1x1x1x64xf32>
    %322 = vector.broadcast %321 : vector<1x1x1x64xf32> to vector<1x8x8x64xf32>
    %323 = arith.mulf %283, %322 : vector<1x8x8x64xf32>
    %324 = arith.addf %318, %323 : vector<1x8x8x64xf32>
    %325 = vector.extract_strided_slice %253 {offsets = [6, 0, 0], sizes = [1, 1, 64], strides = [1, 1, 1]} : vector<7x1x64xf32> to vector<1x1x64xf32>
    %326 = vector.shape_cast %325 : vector<1x1x64xf32> to vector<1x64xf32>
    %327 = vector.shape_cast %326 : vector<1x64xf32> to vector<1x1x1x64xf32>
    %328 = vector.broadcast %327 : vector<1x1x1x64xf32> to vector<1x8x8x64xf32>
    %329 = arith.mulf %289, %328 : vector<1x8x8x64xf32>
    %330 = arith.addf %324, %329 : vector<1x8x8x64xf32>
    %cst_61 = arith.constant 0.000000e+00 : f32
    %331 = vector.broadcast %cst_61 : f32 to vector<1x8x8x64xf32>
    %332 = arith.maximumf %330, %331 : vector<1x8x8x64xf32>
    %cst_62 = arith.constant 0.000000e+00 : f32
    %333 = vector.broadcast %cst_62 : f32 to vector<1x1x8x64xf32>
    %334 = vector.extract_strided_slice %332 {offsets = [0, 0, 0, 0], sizes = [1, 7, 8, 64], strides = [1, 1, 1, 1]} : vector<1x8x8x64xf32> to vector<1x7x8x64xf32>
    %335 = tpu.concatenate %333, %334 in 1 : vector<1x1x8x64xf32>, vector<1x7x8x64xf32> -> vector<1x8x8x64xf32>
    %cst_63 = arith.constant 0.000000e+00 : f32
    %336 = vector.broadcast %cst_63 : f32 to vector<1x1x8x64xf32>
    %337 = vector.extract_strided_slice %332 {offsets = [0, 1, 0, 0], sizes = [1, 7, 8, 64], strides = [1, 1, 1, 1]} : vector<1x8x8x64xf32> to vector<1x7x8x64xf32>
    %338 = tpu.concatenate %337, %336 in 1 : vector<1x7x8x64xf32>, vector<1x1x8x64xf32> -> vector<1x8x8x64xf32>
    %cst_64 = arith.constant 0.000000e+00 : f32
    %339 = vector.broadcast %cst_64 : f32 to vector<1x8x1x64xf32>
    %340 = vector.extract_strided_slice %332 {offsets = [0, 0, 0, 0], sizes = [1, 8, 7, 64], strides = [1, 1, 1, 1]} : vector<1x8x8x64xf32> to vector<1x8x7x64xf32>
    %341 = tpu.concatenate %339, %340 in 2 : vector<1x8x1x64xf32>, vector<1x8x7x64xf32> -> vector<1x8x8x64xf32>
    %cst_65 = arith.constant 0.000000e+00 : f32
    %342 = vector.broadcast %cst_65 : f32 to vector<1x8x1x64xf32>
    %343 = vector.extract_strided_slice %332 {offsets = [0, 0, 1, 0], sizes = [1, 8, 7, 64], strides = [1, 1, 1, 1]} : vector<1x8x8x64xf32> to vector<1x8x7x64xf32>
    %344 = tpu.concatenate %343, %342 in 2 : vector<1x8x7x64xf32>, vector<1x8x1x64xf32> -> vector<1x8x8x64xf32>
    %cst_66 = arith.constant 0.000000e+00 : f32
    %345 = vector.broadcast %cst_66 : f32 to vector<1x1x8x64xf32>
    %346 = vector.extract_strided_slice %341 {offsets = [0, 0, 0, 0], sizes = [1, 7, 8, 64], strides = [1, 1, 1, 1]} : vector<1x8x8x64xf32> to vector<1x7x8x64xf32>
    %347 = tpu.concatenate %345, %346 in 1 : vector<1x1x8x64xf32>, vector<1x7x8x64xf32> -> vector<1x8x8x64xf32>
    %348 = vector.shape_cast %6 : vector<1x1x8x1xi1> to vector<1x1x8x1xi1>
    %349 = vector.broadcast %348 : vector<1x1x8x1xi1> to vector<1x8x8x64xi1>
    %350 = arith.select %349, %347, %341 : vector<1x8x8x64xi1>, vector<1x8x8x64xf32>
    %cst_67 = arith.constant 0.000000e+00 : f32
    %351 = vector.broadcast %cst_67 : f32 to vector<1x1x8x64xf32>
    %352 = vector.extract_strided_slice %341 {offsets = [0, 1, 0, 0], sizes = [1, 7, 8, 64], strides = [1, 1, 1, 1]} : vector<1x8x8x64xf32> to vector<1x7x8x64xf32>
    %353 = tpu.concatenate %352, %351 in 1 : vector<1x7x8x64xf32>, vector<1x1x8x64xf32> -> vector<1x8x8x64xf32>
    %354 = vector.shape_cast %6 : vector<1x1x8x1xi1> to vector<1x1x8x1xi1>
    %355 = vector.broadcast %354 : vector<1x1x8x1xi1> to vector<1x8x8x64xi1>
    %356 = arith.select %355, %341, %353 : vector<1x8x8x64xi1>, vector<1x8x8x64xf32>
    %cst_68 = arith.constant 0.000000e+00 : f32
    %357 = vector.broadcast %cst_68 : f32 to vector<1x1x8x64xf32>
    %358 = vector.extract_strided_slice %344 {offsets = [0, 0, 0, 0], sizes = [1, 7, 8, 64], strides = [1, 1, 1, 1]} : vector<1x8x8x64xf32> to vector<1x7x8x64xf32>
    %359 = tpu.concatenate %357, %358 in 1 : vector<1x1x8x64xf32>, vector<1x7x8x64xf32> -> vector<1x8x8x64xf32>
    %360 = vector.shape_cast %6 : vector<1x1x8x1xi1> to vector<1x1x8x1xi1>
    %361 = vector.broadcast %360 : vector<1x1x8x1xi1> to vector<1x8x8x64xi1>
    %362 = arith.select %361, %359, %344 : vector<1x8x8x64xi1>, vector<1x8x8x64xf32>
    %cst_69 = arith.constant 0.000000e+00 : f32
    %363 = vector.broadcast %cst_69 : f32 to vector<1x1x8x64xf32>
    %364 = vector.extract_strided_slice %344 {offsets = [0, 1, 0, 0], sizes = [1, 7, 8, 64], strides = [1, 1, 1, 1]} : vector<1x8x8x64xf32> to vector<1x7x8x64xf32>
    %365 = tpu.concatenate %364, %363 in 1 : vector<1x7x8x64xf32>, vector<1x1x8x64xf32> -> vector<1x8x8x64xf32>
    %366 = vector.shape_cast %6 : vector<1x1x8x1xi1> to vector<1x1x8x1xi1>
    %367 = vector.broadcast %366 : vector<1x1x8x1xi1> to vector<1x8x8x64xi1>
    %368 = arith.select %367, %344, %365 : vector<1x8x8x64xi1>, vector<1x8x8x64xf32>
    %369 = tpu.concatenate %335, %332, %338, %350, %356, %362, %368 in 3 : vector<1x8x8x64xf32>, vector<1x8x8x64xf32>, vector<1x8x8x64xf32>, vector<1x8x8x64xf32>, vector<1x8x8x64xf32>, vector<1x8x8x64xf32>, vector<1x8x8x64xf32> -> vector<1x8x8x448xf32>
    %370 = vector.shape_cast %369 : vector<1x8x8x448xf32> to vector<64x448xf32>
    %c0_70 = arith.constant 0 : index
    %c0_71 = arith.constant 0 : index
    %371 = vector.load %arg7[%c0_70, %c0_71] : memref<448x8xf32, #tpu.memory_space<vmem>>, vector<448x8xf32>
    %cst_72 = arith.constant dense<0.000000e+00> : vector<64x8xf32>
    %372 = tpu.matmul %370, %371, %cst_72 {dimension_numbers = #tpu.dot_dimension_numbers<[1], [0], [0], [1], [0, 0, 1, 1], [], []>} : vector<64x448xf32>, vector<448x8xf32>, vector<64x8xf32> -> vector<64x8xf32>
    %373 = vector.shape_cast %372 : vector<64x8xf32> to vector<1x8x8x8xf32>
    %cst_73 = arith.constant 0.000000e+00 : f32
    %374 = vector.broadcast %cst_73 : f32 to vector<1x8x8x8xf32>
    %375 = arith.maximumf %373, %374 : vector<1x8x8x8xf32>
    %c0_74 = arith.constant 0 : index
    %c0_75 = arith.constant 0 : index
    %c0_76 = arith.constant 0 : index
    %376 = vector.load %arg8[%c0_74, %c0_75, %c0_76] : memref<7x1x8xf32, #tpu.memory_space<vmem>>, vector<7x1x8xf32>
    %cst_77 = arith.constant 0.000000e+00 : f32
    %377 = vector.broadcast %cst_77 : f32 to vector<1x1x8x8xf32>
    %378 = vector.extract_strided_slice %375 {offsets = [0, 0, 0, 0], sizes = [1, 7, 8, 8], strides = [1, 1, 1, 1]} : vector<1x8x8x8xf32> to vector<1x7x8x8xf32>
    %379 = tpu.concatenate %377, %378 in 1 : vector<1x1x8x8xf32>, vector<1x7x8x8xf32> -> vector<1x8x8x8xf32>
    %cst_78 = arith.constant 0.000000e+00 : f32
    %380 = vector.broadcast %cst_78 : f32 to vector<1x1x8x8xf32>
    %381 = vector.extract_strided_slice %375 {offsets = [0, 1, 0, 0], sizes = [1, 7, 8, 8], strides = [1, 1, 1, 1]} : vector<1x8x8x8xf32> to vector<1x7x8x8xf32>
    %382 = tpu.concatenate %381, %380 in 1 : vector<1x7x8x8xf32>, vector<1x1x8x8xf32> -> vector<1x8x8x8xf32>
    %cst_79 = arith.constant 0.000000e+00 : f32
    %383 = vector.broadcast %cst_79 : f32 to vector<1x8x1x8xf32>
    %384 = vector.extract_strided_slice %375 {offsets = [0, 0, 0, 0], sizes = [1, 8, 7, 8], strides = [1, 1, 1, 1]} : vector<1x8x8x8xf32> to vector<1x8x7x8xf32>
    %385 = tpu.concatenate %383, %384 in 2 : vector<1x8x1x8xf32>, vector<1x8x7x8xf32> -> vector<1x8x8x8xf32>
    %cst_80 = arith.constant 0.000000e+00 : f32
    %386 = vector.broadcast %cst_80 : f32 to vector<1x8x1x8xf32>
    %387 = vector.extract_strided_slice %375 {offsets = [0, 0, 1, 0], sizes = [1, 8, 7, 8], strides = [1, 1, 1, 1]} : vector<1x8x8x8xf32> to vector<1x8x7x8xf32>
    %388 = tpu.concatenate %387, %386 in 2 : vector<1x8x7x8xf32>, vector<1x8x1x8xf32> -> vector<1x8x8x8xf32>
    %cst_81 = arith.constant 0.000000e+00 : f32
    %389 = vector.broadcast %cst_81 : f32 to vector<1x1x8x8xf32>
    %390 = vector.extract_strided_slice %385 {offsets = [0, 0, 0, 0], sizes = [1, 7, 8, 8], strides = [1, 1, 1, 1]} : vector<1x8x8x8xf32> to vector<1x7x8x8xf32>
    %391 = tpu.concatenate %389, %390 in 1 : vector<1x1x8x8xf32>, vector<1x7x8x8xf32> -> vector<1x8x8x8xf32>
    %392 = vector.shape_cast %6 : vector<1x1x8x1xi1> to vector<1x1x8x1xi1>
    %393 = vector.broadcast %392 : vector<1x1x8x1xi1> to vector<1x8x8x8xi1>
    %394 = arith.select %393, %391, %385 : vector<1x8x8x8xi1>, vector<1x8x8x8xf32>
    %cst_82 = arith.constant 0.000000e+00 : f32
    %395 = vector.broadcast %cst_82 : f32 to vector<1x1x8x8xf32>
    %396 = vector.extract_strided_slice %385 {offsets = [0, 1, 0, 0], sizes = [1, 7, 8, 8], strides = [1, 1, 1, 1]} : vector<1x8x8x8xf32> to vector<1x7x8x8xf32>
    %397 = tpu.concatenate %396, %395 in 1 : vector<1x7x8x8xf32>, vector<1x1x8x8xf32> -> vector<1x8x8x8xf32>
    %398 = vector.shape_cast %6 : vector<1x1x8x1xi1> to vector<1x1x8x1xi1>
    %399 = vector.broadcast %398 : vector<1x1x8x1xi1> to vector<1x8x8x8xi1>
    %400 = arith.select %399, %385, %397 : vector<1x8x8x8xi1>, vector<1x8x8x8xf32>
    %cst_83 = arith.constant 0.000000e+00 : f32
    %401 = vector.broadcast %cst_83 : f32 to vector<1x1x8x8xf32>
    %402 = vector.extract_strided_slice %388 {offsets = [0, 0, 0, 0], sizes = [1, 7, 8, 8], strides = [1, 1, 1, 1]} : vector<1x8x8x8xf32> to vector<1x7x8x8xf32>
    %403 = tpu.concatenate %401, %402 in 1 : vector<1x1x8x8xf32>, vector<1x7x8x8xf32> -> vector<1x8x8x8xf32>
    %404 = vector.shape_cast %6 : vector<1x1x8x1xi1> to vector<1x1x8x1xi1>
    %405 = vector.broadcast %404 : vector<1x1x8x1xi1> to vector<1x8x8x8xi1>
    %406 = arith.select %405, %403, %388 : vector<1x8x8x8xi1>, vector<1x8x8x8xf32>
    %cst_84 = arith.constant 0.000000e+00 : f32
    %407 = vector.broadcast %cst_84 : f32 to vector<1x1x8x8xf32>
    %408 = vector.extract_strided_slice %388 {offsets = [0, 1, 0, 0], sizes = [1, 7, 8, 8], strides = [1, 1, 1, 1]} : vector<1x8x8x8xf32> to vector<1x7x8x8xf32>
    %409 = tpu.concatenate %408, %407 in 1 : vector<1x7x8x8xf32>, vector<1x1x8x8xf32> -> vector<1x8x8x8xf32>
    %410 = vector.shape_cast %6 : vector<1x1x8x1xi1> to vector<1x1x8x1xi1>
    %411 = vector.broadcast %410 : vector<1x1x8x1xi1> to vector<1x8x8x8xi1>
    %412 = arith.select %411, %388, %409 : vector<1x8x8x8xi1>, vector<1x8x8x8xf32>
    %413 = vector.extract_strided_slice %376 {offsets = [0, 0, 0], sizes = [1, 1, 8], strides = [1, 1, 1]} : vector<7x1x8xf32> to vector<1x1x8xf32>
    %414 = vector.shape_cast %413 : vector<1x1x8xf32> to vector<1x8xf32>
    %415 = vector.shape_cast %414 : vector<1x8xf32> to vector<1x1x1x8xf32>
    %416 = vector.broadcast %415 : vector<1x1x1x8xf32> to vector<1x8x8x8xf32>
    %417 = arith.mulf %379, %416 : vector<1x8x8x8xf32>
    %418 = vector.extract_strided_slice %376 {offsets = [1, 0, 0], sizes = [1, 1, 8], strides = [1, 1, 1]} : vector<7x1x8xf32> to vector<1x1x8xf32>
    %419 = vector.shape_cast %418 : vector<1x1x8xf32> to vector<1x8xf32>
    %420 = vector.shape_cast %419 : vector<1x8xf32> to vector<1x1x1x8xf32>
    %421 = vector.broadcast %420 : vector<1x1x1x8xf32> to vector<1x8x8x8xf32>
    %422 = arith.mulf %375, %421 : vector<1x8x8x8xf32>
    %423 = arith.addf %417, %422 : vector<1x8x8x8xf32>
    %424 = vector.extract_strided_slice %376 {offsets = [2, 0, 0], sizes = [1, 1, 8], strides = [1, 1, 1]} : vector<7x1x8xf32> to vector<1x1x8xf32>
    %425 = vector.shape_cast %424 : vector<1x1x8xf32> to vector<1x8xf32>
    %426 = vector.shape_cast %425 : vector<1x8xf32> to vector<1x1x1x8xf32>
    %427 = vector.broadcast %426 : vector<1x1x1x8xf32> to vector<1x8x8x8xf32>
    %428 = arith.mulf %382, %427 : vector<1x8x8x8xf32>
    %429 = arith.addf %423, %428 : vector<1x8x8x8xf32>
    %430 = vector.extract_strided_slice %376 {offsets = [3, 0, 0], sizes = [1, 1, 8], strides = [1, 1, 1]} : vector<7x1x8xf32> to vector<1x1x8xf32>
    %431 = vector.shape_cast %430 : vector<1x1x8xf32> to vector<1x8xf32>
    %432 = vector.shape_cast %431 : vector<1x8xf32> to vector<1x1x1x8xf32>
    %433 = vector.broadcast %432 : vector<1x1x1x8xf32> to vector<1x8x8x8xf32>
    %434 = arith.mulf %394, %433 : vector<1x8x8x8xf32>
    %435 = arith.addf %429, %434 : vector<1x8x8x8xf32>
    %436 = vector.extract_strided_slice %376 {offsets = [4, 0, 0], sizes = [1, 1, 8], strides = [1, 1, 1]} : vector<7x1x8xf32> to vector<1x1x8xf32>
    %437 = vector.shape_cast %436 : vector<1x1x8xf32> to vector<1x8xf32>
    %438 = vector.shape_cast %437 : vector<1x8xf32> to vector<1x1x1x8xf32>
    %439 = vector.broadcast %438 : vector<1x1x1x8xf32> to vector<1x8x8x8xf32>
    %440 = arith.mulf %400, %439 : vector<1x8x8x8xf32>
    %441 = arith.addf %435, %440 : vector<1x8x8x8xf32>
    %442 = vector.extract_strided_slice %376 {offsets = [5, 0, 0], sizes = [1, 1, 8], strides = [1, 1, 1]} : vector<7x1x8xf32> to vector<1x1x8xf32>
    %443 = vector.shape_cast %442 : vector<1x1x8xf32> to vector<1x8xf32>
    %444 = vector.shape_cast %443 : vector<1x8xf32> to vector<1x1x1x8xf32>
    %445 = vector.broadcast %444 : vector<1x1x1x8xf32> to vector<1x8x8x8xf32>
    %446 = arith.mulf %406, %445 : vector<1x8x8x8xf32>
    %447 = arith.addf %441, %446 : vector<1x8x8x8xf32>
    %448 = vector.extract_strided_slice %376 {offsets = [6, 0, 0], sizes = [1, 1, 8], strides = [1, 1, 1]} : vector<7x1x8xf32> to vector<1x1x8xf32>
    %449 = vector.shape_cast %448 : vector<1x1x8xf32> to vector<1x8xf32>
    %450 = vector.shape_cast %449 : vector<1x8xf32> to vector<1x1x1x8xf32>
    %451 = vector.broadcast %450 : vector<1x1x1x8xf32> to vector<1x8x8x8xf32>
    %452 = arith.mulf %412, %451 : vector<1x8x8x8xf32>
    %453 = arith.addf %447, %452 : vector<1x8x8x8xf32>
    %cst_85 = arith.constant 0.000000e+00 : f32
    %454 = vector.broadcast %cst_85 : f32 to vector<1x8x8x8xf32>
    %455 = arith.maximumf %453, %454 : vector<1x8x8x8xf32>
    %cst_86 = arith.constant 0.000000e+00 : f32
    %456 = vector.broadcast %cst_86 : f32 to vector<1x1x8x8xf32>
    %457 = vector.extract_strided_slice %455 {offsets = [0, 0, 0, 0], sizes = [1, 7, 8, 8], strides = [1, 1, 1, 1]} : vector<1x8x8x8xf32> to vector<1x7x8x8xf32>
    %458 = tpu.concatenate %456, %457 in 1 : vector<1x1x8x8xf32>, vector<1x7x8x8xf32> -> vector<1x8x8x8xf32>
    %cst_87 = arith.constant 0.000000e+00 : f32
    %459 = vector.broadcast %cst_87 : f32 to vector<1x1x8x8xf32>
    %460 = vector.extract_strided_slice %455 {offsets = [0, 1, 0, 0], sizes = [1, 7, 8, 8], strides = [1, 1, 1, 1]} : vector<1x8x8x8xf32> to vector<1x7x8x8xf32>
    %461 = tpu.concatenate %460, %459 in 1 : vector<1x7x8x8xf32>, vector<1x1x8x8xf32> -> vector<1x8x8x8xf32>
    %cst_88 = arith.constant 0.000000e+00 : f32
    %462 = vector.broadcast %cst_88 : f32 to vector<1x8x1x8xf32>
    %463 = vector.extract_strided_slice %455 {offsets = [0, 0, 0, 0], sizes = [1, 8, 7, 8], strides = [1, 1, 1, 1]} : vector<1x8x8x8xf32> to vector<1x8x7x8xf32>
    %464 = tpu.concatenate %462, %463 in 2 : vector<1x8x1x8xf32>, vector<1x8x7x8xf32> -> vector<1x8x8x8xf32>
    %cst_89 = arith.constant 0.000000e+00 : f32
    %465 = vector.broadcast %cst_89 : f32 to vector<1x8x1x8xf32>
    %466 = vector.extract_strided_slice %455 {offsets = [0, 0, 1, 0], sizes = [1, 8, 7, 8], strides = [1, 1, 1, 1]} : vector<1x8x8x8xf32> to vector<1x8x7x8xf32>
    %467 = tpu.concatenate %466, %465 in 2 : vector<1x8x7x8xf32>, vector<1x8x1x8xf32> -> vector<1x8x8x8xf32>
    %cst_90 = arith.constant 0.000000e+00 : f32
    %468 = vector.broadcast %cst_90 : f32 to vector<1x1x8x8xf32>
    %469 = vector.extract_strided_slice %464 {offsets = [0, 0, 0, 0], sizes = [1, 7, 8, 8], strides = [1, 1, 1, 1]} : vector<1x8x8x8xf32> to vector<1x7x8x8xf32>
    %470 = tpu.concatenate %468, %469 in 1 : vector<1x1x8x8xf32>, vector<1x7x8x8xf32> -> vector<1x8x8x8xf32>
    %471 = vector.shape_cast %6 : vector<1x1x8x1xi1> to vector<1x1x8x1xi1>
    %472 = vector.broadcast %471 : vector<1x1x8x1xi1> to vector<1x8x8x8xi1>
    %473 = arith.select %472, %470, %464 : vector<1x8x8x8xi1>, vector<1x8x8x8xf32>
    %cst_91 = arith.constant 0.000000e+00 : f32
    %474 = vector.broadcast %cst_91 : f32 to vector<1x1x8x8xf32>
    %475 = vector.extract_strided_slice %464 {offsets = [0, 1, 0, 0], sizes = [1, 7, 8, 8], strides = [1, 1, 1, 1]} : vector<1x8x8x8xf32> to vector<1x7x8x8xf32>
    %476 = tpu.concatenate %475, %474 in 1 : vector<1x7x8x8xf32>, vector<1x1x8x8xf32> -> vector<1x8x8x8xf32>
    %477 = vector.shape_cast %6 : vector<1x1x8x1xi1> to vector<1x1x8x1xi1>
    %478 = vector.broadcast %477 : vector<1x1x8x1xi1> to vector<1x8x8x8xi1>
    %479 = arith.select %478, %464, %476 : vector<1x8x8x8xi1>, vector<1x8x8x8xf32>
    %cst_92 = arith.constant 0.000000e+00 : f32
    %480 = vector.broadcast %cst_92 : f32 to vector<1x1x8x8xf32>
    %481 = vector.extract_strided_slice %467 {offsets = [0, 0, 0, 0], sizes = [1, 7, 8, 8], strides = [1, 1, 1, 1]} : vector<1x8x8x8xf32> to vector<1x7x8x8xf32>
    %482 = tpu.concatenate %480, %481 in 1 : vector<1x1x8x8xf32>, vector<1x7x8x8xf32> -> vector<1x8x8x8xf32>
    %483 = vector.shape_cast %6 : vector<1x1x8x1xi1> to vector<1x1x8x1xi1>
    %484 = vector.broadcast %483 : vector<1x1x8x1xi1> to vector<1x8x8x8xi1>
    %485 = arith.select %484, %482, %467 : vector<1x8x8x8xi1>, vector<1x8x8x8xf32>
    %cst_93 = arith.constant 0.000000e+00 : f32
    %486 = vector.broadcast %cst_93 : f32 to vector<1x1x8x8xf32>
    %487 = vector.extract_strided_slice %467 {offsets = [0, 1, 0, 0], sizes = [1, 7, 8, 8], strides = [1, 1, 1, 1]} : vector<1x8x8x8xf32> to vector<1x7x8x8xf32>
    %488 = tpu.concatenate %487, %486 in 1 : vector<1x7x8x8xf32>, vector<1x1x8x8xf32> -> vector<1x8x8x8xf32>
    %489 = vector.shape_cast %6 : vector<1x1x8x1xi1> to vector<1x1x8x1xi1>
    %490 = vector.broadcast %489 : vector<1x1x8x1xi1> to vector<1x8x8x8xi1>
    %491 = arith.select %490, %467, %488 : vector<1x8x8x8xi1>, vector<1x8x8x8xf32>
    %c0_94 = arith.constant 0 : index
    %c0_95 = arith.constant 0 : index
    %c0_96 = arith.constant 0 : index
    %492 = vector.load %arg9[%c0_94, %c0_95, %c0_96] : memref<7x1x8xf32, #tpu.memory_space<vmem>>, vector<7x1x8xf32>
    %493 = vector.extract_strided_slice %492 {offsets = [0, 0, 0], sizes = [1, 1, 8], strides = [1, 1, 1]} : vector<7x1x8xf32> to vector<1x1x8xf32>
    %494 = vector.shape_cast %493 : vector<1x1x8xf32> to vector<1x8xf32>
    %495 = vector.shape_cast %494 : vector<1x8xf32> to vector<1x1x1x8xf32>
    %496 = vector.broadcast %495 : vector<1x1x1x8xf32> to vector<1x8x8x8xf32>
    %497 = arith.mulf %458, %496 : vector<1x8x8x8xf32>
    %498 = vector.extract_strided_slice %492 {offsets = [1, 0, 0], sizes = [1, 1, 8], strides = [1, 1, 1]} : vector<7x1x8xf32> to vector<1x1x8xf32>
    %499 = vector.shape_cast %498 : vector<1x1x8xf32> to vector<1x8xf32>
    %500 = vector.shape_cast %499 : vector<1x8xf32> to vector<1x1x1x8xf32>
    %501 = vector.broadcast %500 : vector<1x1x1x8xf32> to vector<1x8x8x8xf32>
    %502 = arith.mulf %455, %501 : vector<1x8x8x8xf32>
    %503 = arith.addf %497, %502 : vector<1x8x8x8xf32>
    %504 = vector.extract_strided_slice %492 {offsets = [2, 0, 0], sizes = [1, 1, 8], strides = [1, 1, 1]} : vector<7x1x8xf32> to vector<1x1x8xf32>
    %505 = vector.shape_cast %504 : vector<1x1x8xf32> to vector<1x8xf32>
    %506 = vector.shape_cast %505 : vector<1x8xf32> to vector<1x1x1x8xf32>
    %507 = vector.broadcast %506 : vector<1x1x1x8xf32> to vector<1x8x8x8xf32>
    %508 = arith.mulf %461, %507 : vector<1x8x8x8xf32>
    %509 = arith.addf %503, %508 : vector<1x8x8x8xf32>
    %510 = vector.extract_strided_slice %492 {offsets = [3, 0, 0], sizes = [1, 1, 8], strides = [1, 1, 1]} : vector<7x1x8xf32> to vector<1x1x8xf32>
    %511 = vector.shape_cast %510 : vector<1x1x8xf32> to vector<1x8xf32>
    %512 = vector.shape_cast %511 : vector<1x8xf32> to vector<1x1x1x8xf32>
    %513 = vector.broadcast %512 : vector<1x1x1x8xf32> to vector<1x8x8x8xf32>
    %514 = arith.mulf %473, %513 : vector<1x8x8x8xf32>
    %515 = arith.addf %509, %514 : vector<1x8x8x8xf32>
    %516 = vector.extract_strided_slice %492 {offsets = [4, 0, 0], sizes = [1, 1, 8], strides = [1, 1, 1]} : vector<7x1x8xf32> to vector<1x1x8xf32>
    %517 = vector.shape_cast %516 : vector<1x1x8xf32> to vector<1x8xf32>
    %518 = vector.shape_cast %517 : vector<1x8xf32> to vector<1x1x1x8xf32>
    %519 = vector.broadcast %518 : vector<1x1x1x8xf32> to vector<1x8x8x8xf32>
    %520 = arith.mulf %479, %519 : vector<1x8x8x8xf32>
    %521 = arith.addf %515, %520 : vector<1x8x8x8xf32>
    %522 = vector.extract_strided_slice %492 {offsets = [5, 0, 0], sizes = [1, 1, 8], strides = [1, 1, 1]} : vector<7x1x8xf32> to vector<1x1x8xf32>
    %523 = vector.shape_cast %522 : vector<1x1x8xf32> to vector<1x8xf32>
    %524 = vector.shape_cast %523 : vector<1x8xf32> to vector<1x1x1x8xf32>
    %525 = vector.broadcast %524 : vector<1x1x1x8xf32> to vector<1x8x8x8xf32>
    %526 = arith.mulf %485, %525 : vector<1x8x8x8xf32>
    %527 = arith.addf %521, %526 : vector<1x8x8x8xf32>
    %528 = vector.extract_strided_slice %492 {offsets = [6, 0, 0], sizes = [1, 1, 8], strides = [1, 1, 1]} : vector<7x1x8xf32> to vector<1x1x8xf32>
    %529 = vector.shape_cast %528 : vector<1x1x8xf32> to vector<1x8xf32>
    %530 = vector.shape_cast %529 : vector<1x8xf32> to vector<1x1x1x8xf32>
    %531 = vector.broadcast %530 : vector<1x1x1x8xf32> to vector<1x8x8x8xf32>
    %532 = arith.mulf %491, %531 : vector<1x8x8x8xf32>
    %533 = arith.addf %527, %532 : vector<1x8x8x8xf32>
    %cst_97 = arith.constant dense<0.000000e+00> : vector<1x8x8xf32>
    %534 = vector.multi_reduction <add>, %533, %cst_97 [3] : vector<1x8x8x8xf32> to vector<1x8x8xf32>
    %535 = vector.shape_cast %534 : vector<1x8x8xf32> to vector<1x8x8x1xf32>
    %cst_98 = arith.constant dense<0.000000e+00> : vector<1x8x1xf32>
    %536 = vector.multi_reduction <add>, %535, %cst_98 [2] : vector<1x8x8x1xf32> to vector<1x8x1xf32>
    %537 = vector.shape_cast %536 : vector<1x8x1xf32> to vector<1x8x1x1xf32>
    %cst_99 = arith.constant dense<0.000000e+00> : vector<1x1x1xf32>
    %538 = vector.multi_reduction <add>, %537, %cst_99 [1] : vector<1x8x1x1xf32> to vector<1x1x1xf32>
    %539 = vector.shape_cast %538 : vector<1x1x1xf32> to vector<1x1x1x1xf32>
    %540 = vector.shape_cast %539 : vector<1x1x1x1xf32> to vector<1x1xf32>
    %cst_100 = arith.constant 1.562500e-02 : f32
    %541 = vector.broadcast %cst_100 : f32 to vector<1x1xf32>
    %542 = arith.mulf %540, %541 : vector<1x1xf32>
    %543 = math.tanh %542 : vector<1x1xf32>
    %c0_101 = arith.constant 0 : index
    %c0_102 = arith.constant 0 : index
    %c0_103 = arith.constant 0 : index
    %544 = vector.load %arg10[%c0_101, %c0_102, %c0_103] : memref<1x1x1xf32, #tpu.memory_space<vmem>>, vector<1x1x1xf32>
    %545 = vector.shape_cast %544 : vector<1x1x1xf32> to vector<1x1xf32>
    %546 = vector.shape_cast %543 : vector<1x1xf32> to vector<1x1x1xf32>
    tpu.vector_store %arg10[%c0_101, %c0_102, %c0_103], %546 {strides = array<i32>} : memref<1x1x1xf32, #tpu.memory_space<vmem>>, vector<1x1x1xf32>,
    return
  }
  func.func @transform_0(%arg0: i32) -> (i32, i32, i32, i32) {
    %c0_i32 = arith.constant 0 : i32
    %c0_i32_0 = arith.constant 0 : i32
    %c0_i32_1 = arith.constant 0 : i32
    %c0_i32_2 = arith.constant 0 : i32
    return %arg0, %c0_i32, %c0_i32_0, %c0_i32_1 : i32, i32, i32, i32
  }
  func.func @transform_1(%arg0: i32) -> (i32, i32, i32) {
    %c0_i32 = arith.constant 0 : i32
    %c0_i32_0 = arith.constant 0 : i32
    %c0_i32_1 = arith.constant 0 : i32
    %c0_i32_2 = arith.constant 0 : i32
    return %c0_i32, %c0_i32_0, %c0_i32_1 : i32, i32, i32
  }
  func.func @transform_2(%arg0: i32) -> (i32, i32) {
    %c0_i32 = arith.constant 0 : i32
    %c0_i32_0 = arith.constant 0 : i32
    %c0_i32_1 = arith.constant 0 : i32
    return %c0_i32, %c0_i32_0 : i32, i32
  }
  func.func @transform_3(%arg0: i32) -> (i32, i32, i32) {
    %c0_i32 = arith.constant 0 : i32
    %c0_i32_0 = arith.constant 0 : i32
    %c0_i32_1 = arith.constant 0 : i32
    %c0_i32_2 = arith.constant 0 : i32
    return %c0_i32, %c0_i32_0, %c0_i32_1 : i32, i32, i32
  }
  func.func @transform_4(%arg0: i32) -> (i32, i32) {
    %c0_i32 = arith.constant 0 : i32
    %c0_i32_0 = arith.constant 0 : i32
    %c0_i32_1 = arith.constant 0 : i32
    return %c0_i32, %c0_i32_0 : i32, i32
  }
  func.func @transform_5(%arg0: i32) -> (i32, i32, i32) {
    %c0_i32 = arith.constant 0 : i32
    %c0_i32_0 = arith.constant 0 : i32
    %c0_i32_1 = arith.constant 0 : i32
    %c0_i32_2 = arith.constant 0 : i32
    return %c0_i32, %c0_i32_0, %c0_i32_1 : i32, i32, i32
  }
  func.func @transform_6(%arg0: i32) -> (i32, i32) {
    %c0_i32 = arith.constant 0 : i32
    %c0_i32_0 = arith.constant 0 : i32
    %c0_i32_1 = arith.constant 0 : i32
    return %c0_i32, %c0_i32_0 : i32, i32
  }
  func.func @transform_7(%arg0: i32) -> (i32, i32, i32) {
    %c0_i32 = arith.constant 0 : i32
    %c0_i32_0 = arith.constant 0 : i32
    %c0_i32_1 = arith.constant 0 : i32
    %c0_i32_2 = arith.constant 0 : i32
    return %c0_i32, %c0_i32_0, %c0_i32_1 : i32, i32, i32
  }
  func.func @transform_8(%arg0: i32) -> (i32, i32, i32) {
    %c0_i32 = arith.constant 0 : i32
    %c0_i32_0 = arith.constant 0 : i32
    %c0_i32_1 = arith.constant 0 : i32
    %c0_i32_2 = arith.constant 0 : i32
    return %c0_i32, %c0_i32_0, %c0_i32_1 : i32, i32, i32
  }
  func.func @transform_9(%arg0: i32) -> (i32, i32, i32) {
    %c0_i32 = arith.constant 0 : i32
    %c0_i32_0 = arith.constant 0 : i32
    %c0_i32_1 = arith.constant 0 : i32
    return %arg0, %c0_i32, %c0_i32_0 : i32, i32, i32
  }
}

</mosaic_0001>

<bundles_post_ra>
// kernel: combined_value_head_forward.1
= control target key start
LH: loop header
LB: loop body
LE: loop exit
PB: predicated region body
PF: predicated region fallthrough
CT: control target
= control target key end

     0   :  { %s4880_s30 = smov 0   ;;  %s8248_s0 = inlined_call_operand.vmem [shape: f32[2,8,8,4], index: 0, kind: input, shape index: {}]   ;;  %s8249_s1 = inlined_call_operand.vmem [shape: f32[7,1,4], index: 1, kind: input, shape index: {}]   ;;  %s8250_s2 = inlined_call_operand.vmem [shape: f32[28,256], index: 2, kind: input, shape index: {}]   ;;  %s8251_s3 = inlined_call_operand.vmem [shape: f32[7,1,256], index: 3, kind: input, shape index: {}]   ;;  %s8252_s4 = inlined_call_operand.vmem [shape: f32[1792,64], index: 4, kind: input, shape index: {}]   ;;  %s8253_s5 = inlined_call_operand.vmem [shape: f32[7,1,64], index: 5, kind: input, shape index: {}]   ;;  %s8254_s6 = inlined_call_operand.vmem [shape: f32[448,8], index: 6, kind: input, shape index: {}]   ;;  %s8255_s7 = inlined_call_operand.vmem [shape: f32[7,1,8], index: 7, kind: input, shape index: {}]   ;;  %s8256_s8 = inlined_call_operand.vmem [shape: f32[7,1,8], index: 8, kind: input, shape index: {}]   ;;  %s8257_s9 = inlined_call_operand.vmem [shape: f32[2,1,1], index: 9, kind: output, shape index: {}]  }
   0x1 LB: > { %s3916_s10 = sadd.s32 4294967295, %s4818_s30   ;;  %p3920_p0 = scmp.ge.s32.totalorder %s4818_s30, 1  ;;  %s4818_s30 = sphi %s4880_s30, %s19_s30  }
   0x2   : > { %p287_p1 = scmp.lt.s32.totalorder %s4818_s30, 3 }
   0x4   : > { %p288_p2 = pnand %p3920_p0, %p287_p1 }
   0x6   : > { %291 = sbr.rel (%p288_p2) target bundleno = 1441 (0x5a1), region = 56 }
   0xd   : > { %p321_p3 = scmp.lt.s32.totalorder %s3916_s10, 1  ;;  %v337_v0 = vlaneseq  ;;  %v4895_v2 = vld [vmem:[%s8249_s1] ss:$0 sm:$0xff]  ;;  %v8258_v4 = vmov 0.0   ;;  %v4909_v5 = vld [vmem:[%s8249_s1 + $0x1] ss:$0 sm:$0xff] }
   0xe   : > { %975 = vmatprep.mubr.f32.mxu0 %v8258_v4  ;;  %1932 = vmatprep.mubr.f32.mxu1 %v8258_v4  ;;  %vm372_vm0 = vcmask 1040384   ;;  %vm397_vm2 = vcmask 1046528   ;;  %v432_v10 = vmul.f32 0.0, %v4895_v2  ;;  %v4925_v15 = vld [vmem:[%s8249_s1 + $0x2] ss:$0 sm:$0xff]  ;;  %s4821_s29 = smov 4  }
   0xf   : > { %s8405_s10 = smov (!%p321_p3, %s3916_s10), 1  ;;  %v4890_v1 = vshrl.u32 %v337_v0, 7  ;;  %v4933_v20 = vld [vmem:[%s8249_s1 + $0x3] ss:$0 sm:$0xff]  ;;  %v4942_v25 = vld [vmem:[%s8249_s1 + $0x4] ss:$0 sm:$0xff] }
  0x10   : > { %s3987_s13 = sshll.u32 %s8405_s10, 6  ;;  %v4947_v26 = vld [vmem:[%s8249_s1 + $0x5] ss:$0 sm:$0xff]  ;;  %v4959_v31 = vld [vmem:[%s8249_s1 + $0x6] ss:$0 sm:$0xff]  ;;  %s4822_s11 = smov 8  }
  0x11   : > { %v339_v3 = vand.u32 1, %v4890_v1  ;;  %s4904_s16 = scalar_lea.vmem %s8248_s0, %s3987_s13  ;;  %s4823_s12 = smov 12   ;;  %vm904_vm3 = vcmask 1043456   ;;  %vm4827_vm4 = vmmov 1   ;;  %vm817_vm6 = vcmask 31744  }
  0x12   : > { %v329_v6 = vld [vmem:[%s4904_s16] sm:$0xff]  ;;  %v330_v7 = vld [vmem:[%s4904_s16 + $0x8] sm:$0xff]  ;;  %v4914_v8 = vld [vmem:[%s4904_s16 + $0x10] sm:$0xff]  ;;  %s4824_s13 = smov 16   ;;  %s4825_s14 = smov 20   ;;  %vm826_vm7 = vcmask 64512  }
  0x13   : > { %vm4916_vm1 = vcmp.eq.s32.totalorder %v339_v3, 0  ;;  %v356_v11 = vrot.slane %v329_v6, 7  ;;  %v357_v12 = vrot.slane %v330_v7, 7  ;;  %v358_v13 = vrot.slane %v4914_v8, 7  ;;  %v4971_v40 = vld [vmem:[%s4904_s16 + $0x18] sm:$0xff]  ;;  %v4979_v48 = vld [vmem:[%s4904_s16 + $0x20] sm:$0xff]  ;;  %vm4441_vm5 = vmpackc.low %vm904_vm3, %vm4827_vm4 }
  0x14   : > { %v381_v14 = vrot.slane %v329_v6, 1  ;;  %v382_v16 = vrot.slane %v330_v7, 1  ;;  %v433_v17 = vmul.f32 %v4895_v2, %v329_v6  ;;  %v446_v18 = vmul.f32 %v4909_v5, %v329_v6  ;;  %s4826_s15 = smov 24   ;;  %vm3940_vm13 = vmneg %vm4916_vm1  ;;  %s4829_s25 = smov 64  }
  0x15   : > { %v447_v19 = vmul.f32 %v4909_v5, %v330_v7  ;;  %v373_v21 = vsel %vm372_vm0, 0.0, %v356_v11  ;;  %v374_v22 = vsel %vm372_vm0, 0.0, %v357_v12  ;;  %v375_v23 = vsel %vm372_vm0, 0.0, %v358_v13 }
  0x16   : > { %v398_v24 = vsel %vm397_vm2, %v381_v14, 0.0  ;;  %v399_v27 = vsel %vm397_vm2, %v382_v16, 0.0  ;;  %v408_v28 = vsel %vm4916_vm1, 0.0, %v373_v21  ;;  %v409_v29 = vsel %vm4916_vm1, %v373_v21, %v374_v22 }
  0x17   : > { %v410_v30 = vsel %vm4916_vm1, %v374_v22, %v375_v23  ;;  %v417_v32 = vsel %vm4916_vm1, 0.0, %v398_v24  ;;  %v418_v33 = vsel %vm4916_vm1, %v398_v24, %v399_v27  ;;  %v454_v34 = vadd.f32 %v446_v18, %v432_v10 }
  0x18   : > { %v455_v35 = vadd.f32 %v447_v19, %v433_v17  ;;  %v468_v36 = vmul.f32 %v4925_v15, %v330_v7  ;;  %v469_v37 = vmul.f32 %v4925_v15, %v4914_v8  ;;  %v490_v38 = vmul.f32 %v4933_v20, %v408_v28 }
  0x19   : > { %v491_v39 = vmul.f32 %v4933_v20, %v409_v29  ;;  %v512_v41 = vmul.f32 %v4942_v25, %v409_v29  ;;  %v513_v42 = vmul.f32 %v4942_v25, %v410_v30  ;;  %v534_v43 = vmul.f32 %v4947_v26, %v417_v32 }
  0x1a   : > { %v476_v44 = vadd.f32 %v468_v36, %v454_v34  ;;  %v477_v45 = vadd.f32 %v469_v37, %v455_v35  ;;  %v535_v46 = vmul.f32 %v4947_v26, %v418_v33  ;;  %v556_v47 = vmul.f32 %v4959_v31, %v418_v33 }
  0x1b   : > { %v383_v49 = vrot.slane %v4914_v8, 1  ;;  %v359_v50 = vrot.slane %v4971_v40, 7  ;;  %v384_v51 = vrot.slane %v4971_v40, 1  ;;  %v434_v52 = vmul.f32 %v4895_v2, %v330_v7 }
  0x1c   : > { %v498_v53 = vadd.f32 %v490_v38, %v476_v44  ;;  %v499_v54 = vadd.f32 %v491_v39, %v477_v45  ;;  %v448_v55 = vmul.f32 %v4909_v5, %v4914_v8  ;;  %v470_v56 = vmul.f32 %v4925_v15, %v4971_v40  ;;  %v5029_v45 = vld [vmem:[%s4904_s16 + $0x28] sm:$0xff] }
  0x1d   : > { %v400_v57 = vsel %vm397_vm2, %v383_v49, 0.0  ;;  %v376_v58 = vsel %vm372_vm0, 0.0, %v359_v50  ;;  %v401_v59 = vsel %vm397_vm2, %v384_v51, 0.0  ;;  %v360_v60 = vrot.slane %v4979_v48, 7 }
  0x1e   : > { %v520_v61 = vadd.f32 %v512_v41, %v498_v53  ;;  %v521_v62 = vadd.f32 %v513_v42, %v499_v54  ;;  %v419_v63 = vsel %vm4916_vm1, %v399_v27, %v400_v57  ;;  %v411_v0 = vsel %vm4916_vm1, %v375_v23, %v376_v58 }
  0x1f   : > { %v492_v3 = vmul.f32 %v4933_v20, %v410_v30  ;;  %v557_v6 = vmul.f32 %v4959_v31, %v419_v63  ;;  %v456_v7 = vadd.f32 %v448_v55, %v434_v52  ;;  %v420_v12 = vsel %vm4916_vm1, %v400_v57, %v401_v59 }
  0x20   : > { %v542_v10 = vadd.f32 %v534_v43, %v520_v61  ;;  %v543_v11 = vadd.f32 %v535_v46, %v521_v62  ;;  %v514_v14 = vmul.f32 %v4942_v25, %v411_v0  ;;  %v435_v16 = vmul.f32 %v4895_v2, %v4914_v8 }
  0x21   : > { %v478_v13 = vadd.f32 %v470_v56, %v456_v7  ;;  %v377_v19 = vsel %vm372_vm0, 0.0, %v360_v60  ;;  %v449_v21 = vmul.f32 %v4909_v5, %v4971_v40  ;;  %v536_v23 = vmul.f32 %v4947_v26, %v419_v63 }
  0x22   : > { %v564_v17 = vadd.f32 %v556_v47, %v542_v10  ;;  %v565_v18 = vadd.f32 %v557_v6, %v543_v11  ;;  %v385_v24 = vrot.slane %v4979_v48, 1  ;;  %v471_v27 = vmul.f32 %v4925_v15, %v4979_v48 }
  0x23   : > { %v500_v22 = vadd.f32 %v492_v3, %v478_v13  ;;  %v457_v8 = vadd.f32 %v449_v21, %v435_v16  ;;  %v412_v32 = vsel %vm4916_vm1, %v376_v58, %v377_v19  ;;  %v558_v35 = vmul.f32 %v4959_v31, %v420_v12 }
  0x24   : > { %v5011_v28 = vmax.f32 %v564_v17, 0.0  ;;  %v5013_v29 = vmax.f32 %v565_v18, 0.0  ;;  %v493_v36 = vmul.f32 %v4933_v20, %v411_v0  ;;  %v402_v38 = vsel %vm397_vm2, %v385_v24, 0.0  ;;  %v5078_v18 = vld [vmem:[%s4904_s16 + $0x38] sm:$0xff] }
  0x25   : > { %v522_v30 = vadd.f32 %v514_v14, %v500_v22  ;;  %v479_v39 = vadd.f32 %v471_v27, %v457_v8  ;;  %v515_v44 = vmul.f32 %v4942_v25, %v412_v32  ;;  %v537_v50 = vmul.f32 %v4947_v26, %v420_v12  ;;  %v335_v12 = vld [vmem:[%s4904_s16 + $0x30] sm:$0xff] }
  0x26   : > { %654 = vrot.lane.b32.xlu0 %v5011_v28, %s4821_s29  ;;  %v588_v33 = vrot.slane %v5011_v28, 7  ;;  %v589_v34 = vrot.slane %v5013_v29, 7  ;;  %v612_v43 = vrot.slane %v5011_v28, 1  ;;  %v421_v52 = vsel %vm4916_vm1, %v401_v59, %v402_v38 }
  0x27   : > { %v544_v37 = vadd.f32 %v536_v23, %v522_v30  ;;  %v501_v49 = vadd.f32 %v493_v36, %v479_v39  ;;  %v361_v53 = vrot.slane %v5029_v45, 7  ;;  %v436_v54 = vmul.f32 %v4895_v2, %v4971_v40 }
  0x28   : > { %v604_v41 = vsel %vm372_vm0, 0.0, %v588_v33  ;;  %v605_v42 = vsel %vm372_vm0, 0.0, %v589_v34  ;;  %v628_v55 = vsel %vm397_vm2, %v612_v43, 0.0  ;;  %v613_v56 = vrot.slane %v5013_v29, 1 }
  0x29   : > { %v636_v46 = vsel %vm4916_vm1, 0.0, %v604_v41  ;;  %v566_v47 = vadd.f32 %v558_v35, %v544_v37  ;;  %v5039_v51 = vsel %vm4916_vm1, %v604_v41, %v605_v42  ;;  %v523_v57 = vadd.f32 %v515_v44, %v501_v49 }
  0x2a   : > { %679 = vrot.lane.b32.xlu0 %v5013_v29, %s4822_s11  ;;  %711 = vrot.lane.b32.xlu1 %v636_v46, %s4823_s12  ;;  %v450_v58 = vmul.f32 %v4909_v5, %v4979_v48  ;;  %v472_v60 = vmul.f32 %v4925_v15, %v5029_v45  ;;  %v559_v61 = vmul.f32 %v4959_v31, %v421_v52  ;;  %v645_v63 = vsel %vm4916_vm1, 0.0, %v628_v55 }
  0x2b   : > { %v5056_v40 = vmax.f32 %v566_v47, 0.0  ;;  %v545_v59 = vadd.f32 %v537_v50, %v523_v57  ;;  %v378_v0 = vsel %vm372_vm0, 0.0, %v361_v53  ;;  %v386_v3 = vrot.slane %v5029_v45, 1 }
  0x2c   : > { %v458_v62 = vadd.f32 %v450_v58, %v436_v54  ;;  %v629_v6 = vsel %vm397_vm2, %v613_v56, 0.0  ;;  %v494_v11 = vmul.f32 %v4933_v20, %v412_v32  ;;  %v413_v14 = vsel %vm4916_vm1, %v377_v19, %v378_v0 }
  0x2d   : > { %v590_v7 = vrot.slane %v5056_v40, 7  ;;  %v567_v13 = vadd.f32 %v559_v61, %v545_v59  ;;  %v646_v16 = vsel %vm4916_vm1, %v628_v55, %v629_v6  ;;  %v5075_v17 = vsel %vm397_vm2, %v386_v3, 0.0 }
  0x2e   : > { %656 = vrot.lane.b32.xlu0 %v5013_v29, %s4821_s29  ;;  %736 = vrot.lane.b32.xlu1 %v5039_v51, %s4824_s13  ;;  %v480_v10 = vadd.f32 %v472_v60, %v458_v62  ;;  %v362_v22 = vrot.slane %v335_v12, 7  ;;  %v437_v23 = vmul.f32 %v4895_v2, %v4979_v48  ;;  %v451_v24 = vmul.f32 %v4909_v5, %v5029_v45  ;;  %v872_v62 = vld [vmem:[%s8250_s2 + $0x8] sm:$0xff] }
  0x2f   : > { %v5081_v21 = vsel %vm372_vm0, 0.0, %v590_v7  ;;  %v516_v19 = vmul.f32 %v4942_v25, %v413_v14  ;;  %v5091_v8 = vmax.f32 %v567_v13, 0.0  ;;  %v363_v30 = vrot.slane %v5078_v18, 7  ;;  %v871_v7 = vld [vmem:[%s8250_s2] sm:$0xff] }
  0x30   : > { %v502_v27 = vadd.f32 %v494_v11, %v480_v10  ;;  %v638_v48 = vsel %vm4916_vm1, %v605_v42, %v5081_v21  ;;  %v614_v32 = vrot.slane %v5056_v40, 1  ;;  %v422_v33 = vsel %vm4916_vm1, %v402_v38, %v5075_v17  ;;  %v873_v10 = vld [vmem:[%s8250_s2 + $0x10] sm:$0xff] }
  0x31   : > { %v379_v34 = vsel %vm372_vm0, 0.0, %v362_v22  ;;  %v459_v35 = vadd.f32 %v451_v24, %v437_v23  ;;  %v473_v36 = vmul.f32 %v4925_v15, %v335_v12  ;;  %v538_v39 = vmul.f32 %v4947_v26, %v421_v52  ;;  %v876_v24 = vld [vmem:[%s8250_s2 + $0x28] sm:$0xff] }
  0x32   : > { %681 = vrot.lane.b32.xlu0 %v5056_v40, %s4822_s11  ;;  %768 = vrot.lane.b32.xlu1 %v645_v63, %s4825_s14  ;;  %v524_v37 = vadd.f32 %v516_v19, %v502_v27  ;;  %v388_v41 = vrot.slane %v5078_v18, 1  ;;  %v560_v42 = vmul.f32 %v4959_v31, %v422_v33  ;;  %v380_v43 = vsel %vm372_vm0, 0.0, %v363_v30  ;;  %v878_v27 = vld [vmem:[%s8250_s2 + $0x38] sm:$0xf]  ;;  %v875_v30 = vld [vmem:[%s8250_s2 + $0x20] sm:$0xff] }
  0x33   : > { %v475_v38 = vmul.f32 0.0, %v4925_v15  ;;  %v5112_v44 = vsel %vm397_vm2, %v614_v32, 0.0  ;;  %v591_v46 = vrot.slane %v5091_v8, 7  ;;  %v387_v47 = vrot.slane %v335_v12, 1  ;;  %v877_v32 = vld [vmem:[%s8250_s2 + $0x30] sm:$0xf] }
  0x34   : > { %v5117_v49 = vsel %vm4916_vm1, %v378_v0, %v379_v34  ;;  %v481_v50 = vadd.f32 %v473_v36, %v459_v35  ;;  %v495_v52 = vmul.f32 %v4933_v20, %v413_v14  ;;  %v439_v53 = vmul.f32 %v4895_v2, %v335_v12 }
  0x35   : > { %v453_v54 = vmul.f32 %v4909_v5, %v5078_v18  ;;  %v546_v55 = vadd.f32 %v538_v39, %v524_v37  ;;  %v405_v56 = vsel %vm397_vm2, %v388_v41, 0.0  ;;  %v5126_v57 = vsel %vm4916_vm1, %v379_v34, %v380_v43 }
  0x36   : > { %658 = vrot.lane.b32.xlu0 %v5056_v40, %s4821_s29  ;;  %793 = vrot.lane.b32.xlu1 %v646_v16, %s4826_s15  ;;  %v416_v58 = vsel %vm4916_vm1, %v380_v43, 0.0  ;;  %v647_v60 = vsel %vm4916_vm1, %v629_v6, %v5112_v44  ;;  %v497_v61 = vmul.f32 %v4933_v20, %v5126_v57  ;;  %v5142_v63 = vsel %vm372_vm0, 0.0, %v591_v46  ;;  %v874_v6 = vld [vmem:[%s8250_s2 + $0x18] sm:$0xff] }
  0x37   : > { %v461_v59 = vadd.f32 %v453_v54, %v439_v53  ;;  %v404_v0 = vsel %vm397_vm2, %v387_v47, 0.0  ;;  %v438_v3 = vmul.f32 %v4895_v2, %v5029_v45  ;;  %v452_v13 = vmul.f32 %v4909_v5, %v335_v12 }
  0x38   : > { %v5160_v11 = vsel %vm4916_vm1, %v404_v0, %v405_v56  ;;  %v519_v2 = vmul.f32 %v4942_v25, %v416_v58  ;;  %v568_v45 = vadd.f32 %v560_v42, %v546_v55  ;;  %v425_v22 = vsel %vm4916_vm1, %v405_v56, 0.0 }
  0x39   : > { %v483_v14 = vadd.f32 %v475_v38, %v461_v59  ;;  %v541_v23 = vmul.f32 %v4947_v26, %v5160_v11  ;;  %v4436_v12 = vpack.c.bf16 %v874_v6, %v872_v62  ;;  %v4438_v19 = vpack.c.bf16 %v873_v10, %v871_v7 }
  0x3a   : > { %683 = vrot.lane.b32.xlu0 %v5091_v8, %s4822_s11  ;;  %738 = vrot.lane.b32.xlu1 %v638_v48, %s4824_s13  ;;  %v639_v34 = vsel %vm4916_vm1, %v5081_v21, %v5142_v63  ;;  %v615_v35 = vrot.slane %v5091_v8, 1  ;;  %v563_v37 = vmul.f32 %v4959_v31, %v425_v22  ;;  %v4440_v39 = vpack.c.bf16 %v878_v27, %v876_v24 }
  0x3b   : > { %v505_v5 = vadd.f32 %v497_v61, %v483_v14  ;;  %4437 = vmatprep.subr.bf16.mxu0 %v4436_v12  ;;  %v539_v41 = vmul.f32 %v4947_v26, %v422_v33  ;;  %v460_v42 = vadd.f32 %v452_v13, %v438_v3  ;;  %v4443_v43 = vpack.c.bf16 %v877_v32, %v875_v30  ;;  %v1661_v30 = vld [vmem:[%s8252_s4 + $0x88] sm:$0xff] }
  0x3c   : > { %4439 = vmatpush1.bf16.msra.mxu0 %v4438_v19  ;;  %v5195_v21 = vmax.f32 %v568_v45, 0.0  ;;  %v474_v38 = vmul.f32 %v4925_v15, %v5078_v18  ;;  %v631_v33 = vsel %vm397_vm2, %v615_v35, 0.0  ;;  %v496_v18 = vmul.f32 %v4933_v20, %v5117_v49  ;;  %v1660_v19 = vld [vmem:[%s8252_s4 + $0x80] sm:$0xff]  ;;  %v1645_v35 = vld [vmem:[%s8252_s4 + $0x8] sm:$0xff] }
  0x3d   : > { %v527_v36 = vadd.f32 %v519_v2, %v505_v5  ;;  %4442 = vmatprep.subr.msk.bf16.mxu0 %vm4441_vm5, %v4440_v39  ;;  %v648_v54 = vsel %vm4916_vm1, %v5112_v44, %v631_v33  ;;  %v1663_v39 = vld [vmem:[%s8252_s4 + $0x98] sm:$0xff]  ;;  %vm835_vm8 = vcmask 97280   ;;  %vm844_vm9 = vcmask 130048  }
  0x3e   : > { %713 = vrot.lane.b32.xlu0 %v5039_v51, %s4823_s12  ;;  %770 = vrot.lane.b32.xlu1 %v646_v16, %s4825_s14  ;;  %v517_v51 = vmul.f32 %v4942_v25, %v5117_v49  ;;  %v503_v16 = vadd.f32 %v495_v52, %v481_v50  ;;  %v592_v47 = vrot.slane %v5195_v21, 7  ;;  %v482_v15 = vadd.f32 %v474_v38, %v460_v42  ;;  %v1693_v42 = vld [vmem:[%s8252_s4 + $0x188] sm:$0xff] }
  0x3f   : > { %v549_v46 = vadd.f32 %v541_v23, %v527_v36  ;;  %v616_v20 = vrot.slane %v5195_v21, 1  ;;  %v1662_v36 = vld [vmem:[%s8252_s4 + $0x90] sm:$0xff]  ;;  %vm853_vm10 = vcmask 162816   ;;  %vm862_vm11 = vcmask 195584  }
  0x40   : > { %4445 = vmatpush1.bf16.msk.msra.mxu0 %vm4441_vm5, %v4443_v43  ;;  %v608_v55 = vsel %vm372_vm0, 0.0, %v592_v47  ;;  %v504_v58 = vadd.f32 %v496_v18, %v482_v15  ;;  %v4450_v43 = vpack.c.bf16 %v1663_v39, %v1662_v36  ;;  %vm879_vm12 = vcmask 228352  }
  0x41   : > { %v571_v50 = vadd.f32 %v563_v37, %v549_v46  ;;  %v640_v59 = vsel %vm4916_vm1, %v5142_v63, %v608_v55  ;;  %v632_v62 = vsel %vm397_vm2, %v616_v20, 0.0  ;;  %v562_v63 = vmul.f32 %v4959_v31, %v5160_v11 }
  0x42   : > { %715 = vrot.lane.b32.xlu0 %v638_v48, %s4823_s12  ;;  %795 = vrot.lane.b32.xlu1 %v647_v60, %s4826_s15  ;;  %v423_v48 = vsel %vm4916_vm1, %v5075_v17, %v404_v0  ;;  %v525_v17 = vadd.f32 %v517_v51, %v503_v16  ;;  %v649_v0 = vsel %vm4916_vm1, %v631_v33, %v632_v62  ;;  %vm3008_vm14 = vcmask 523264  }
  0x43   : > { %v561_v52 = vmul.f32 %v4959_v31, %v423_v48  ;;  %v540_v61 = vmul.f32 %v4947_v26, %v423_v48  ;;  %v579_v45 = vmax.f32 %v571_v50, 0.0  ;;  %v1644_v48 = vld [vmem:[%s8252_s4] sm:$0xff]  ;;  %vm7736_vm15 = vmneg %vm3008_vm14 }
  0x44   : > { %v547_v53 = vadd.f32 %v539_v41, %v525_v17  ;;  %v4448_v37 = vpack.c.bf16 %v1645_v35, %v1644_v48  ;;  %v1692_v41 = vld [vmem:[%s8252_s4 + $0x180] sm:$0xff] }
  0x45   : > { %v595_v22 = vrot.slane %v579_v45, 7  ;;  %v619_v5 = vrot.slane %v579_v45, 1  ;;  %v4478_v17 = vpack.c.bf16 %v1693_v42, %v1692_v41 }
  0x46   : > { %660 = vrot.lane.b32.xlu0 %v5091_v8, %s4821_s29  ;;  %740 = vrot.lane.b32.xlu1 %v639_v34, %s4824_s13  ;;  %v569_v56 = vadd.f32 %v561_v52, %v547_v53 }
  0x47   : > { %v611_v24 = vsel %vm372_vm0, 0.0, %v595_v22  ;;  %v635_v12 = vsel %vm397_vm2, %v619_v5, 0.0  ;;  %4479 = vmatprep.subr.bf16.mxu0 %v4478_v17 }
  0x48   : > { %v5223_v44 = vmax.f32 %v569_v56, 0.0  ;;  %v644_v38 = vsel %vm4916_vm1, %v611_v24, 0.0  ;;  %v653_v46 = vsel %vm4916_vm1, %v635_v12, 0.0 }
  0x4a   : > { %685 = vrot.lane.b32.xlu0 %v5195_v21, %s4822_s11  ;;  %772 = vrot.lane.b32.xlu1 %v647_v60, %s4825_s14  ;;  %v518_v60 = vmul.f32 %v4942_v25, %v5126_v57  ;;  %v593_v25 = vrot.slane %v5223_v44, 7  ;;  %v617_v6 = vrot.slane %v5223_v44, 1 }
  0x4c   : > { %v526_v49 = vadd.f32 %v518_v60, %v504_v58  ;;  %v609_v51 = vsel %vm372_vm0, 0.0, %v593_v25  ;;  %v633_v7 = vsel %vm397_vm2, %v617_v6, 0.0 }
  0x4d   : > { %v641_v3 = vsel %vm4916_vm1, %v608_v55, %v609_v51  ;;  %v650_v11 = vsel %vm4916_vm1, %v632_v62, %v633_v7 }
  0x4e   : > { %717 = vrot.lane.b32.xlu0 %v639_v34, %s4823_s12  ;;  %797 = vrot.lane.b32.xlu1 %v648_v54, %s4826_s15  ;;  %v548_v57 = vadd.f32 %v540_v61, %v526_v49  ;;  %v4446_v34 = vpack.c.bf16 %v1661_v30, %v1660_v19 }
  0x50   : > { %v570_v26 = vadd.f32 %v562_v63, %v548_v57  ;;  %4447 = vmatprep.subr.bf16.mxu1 %v4446_v34 }
  0x51   : > { %4449 = vmatpush3.bf16.msra.mxu1 %v4448_v37 }
  0x52   : > { %662 = vrot.lane.b32.xlu0 %v5195_v21, %s4821_s29  ;;  %742 = vrot.lane.b32.xlu1 %v640_v59, %s4824_s13  ;;  %v5244_v31 = vmax.f32 %v570_v26, 0.0 }
  0x53   : > { %4451 = vmatprep.subr.bf16.mxu1 %v4450_v43 }
  0x54   : > { %v594_v10 = vrot.slane %v5244_v31, 7  ;;  %v618_v2 = vrot.slane %v5244_v31, 1 }
  0x56   : > { %687 = vrot.lane.b32.xlu0 %v5223_v44, %s4822_s11  ;;  %774 = vrot.lane.b32.xlu1 %v648_v54, %s4825_s14  ;;  %v610_v13 = vsel %vm372_vm0, 0.0, %v594_v10  ;;  %v634_v16 = vsel %vm397_vm2, %v618_v2, 0.0 }
  0x57   : > { %v642_v14 = vsel %vm4916_vm1, %v609_v51, %v610_v13  ;;  %v651_v23 = vsel %vm4916_vm1, %v633_v7, %v634_v16  ;;  %v643_v27 = vsel %vm4916_vm1, %v610_v13, %v611_v24  ;;  %v652_v32 = vsel %vm4916_vm1, %v634_v16, %v635_v12 }
  0x5a   : > { %719 = vrot.lane.b32.xlu0 %v640_v59, %s4823_s12  ;;  %799 = vrot.lane.b32.xlu1 %v649_v0, %s4826_s15 }
  0x5e   : > { %664 = vrot.lane.b32.xlu0 %v5223_v44, %s4821_s29  ;;  %744 = vrot.lane.b32.xlu1 %v641_v3, %s4824_s13 }
  0x62   : > { %689 = vrot.lane.b32.xlu0 %v5244_v31, %s4822_s11  ;;  %776 = vrot.lane.b32.xlu1 %v649_v0, %s4825_s14 }
  0x66   : > { %721 = vrot.lane.b32.xlu0 %v641_v3, %s4823_s12  ;;  %801 = vrot.lane.b32.xlu1 %v650_v11, %s4826_s15 }
  0x6a   : > { %666 = vrot.lane.b32.xlu0 %v5244_v31, %s4821_s29  ;;  %746 = vrot.lane.b32.xlu1 %v642_v14, %s4824_s13 }
  0x6e   : > { %691 = vrot.lane.b32.xlu0 %v579_v45, %s4822_s11  ;;  %778 = vrot.lane.b32.xlu1 %v650_v11, %s4825_s14 }
  0x72   : > { %723 = vrot.lane.b32.xlu0 %v642_v14, %s4823_s12  ;;  %803 = vrot.lane.b32.xlu1 %v651_v23, %s4826_s15 }
  0x76   : > { %668 = vrot.lane.b32.xlu0 %v579_v45, %s4821_s29  ;;  %748 = vrot.lane.b32.xlu1 %v643_v27, %s4824_s13 }
  0x7a   : > { %693 = vrot.lane.b32.xlu0 %v8258_v4, %s4822_s11  ;;  %780 = vrot.lane.b32.xlu1 %v651_v23, %s4825_s14 }
  0x7e   : > { %725 = vrot.lane.b32.xlu0 %v643_v27, %s4823_s12  ;;  %805 = vrot.lane.b32.xlu1 %v652_v32, %s4826_s15 }
  0x82   : > { %750 = vrot.lane.b32.xlu1 %v644_v38, %s4824_s13  ;;  %782 = vrot.lane.b32.xlu0 %v652_v32, %s4825_s14 }
  0x86   : > { %807 = vrot.lane.b32.xlu1 %v653_v46, %s4826_s15 }
  0x98   : > { %v655_v33 = vpop.permute.xlu0 %654 }
  0x99   : > { %v818_v52 = vsel %vm817_vm6, 0.0, %v655_v33 }
  0x9c   : > { %v680_v47 = vpop.permute.xlu0 %679  ;;  %v712_v50 = vpop.permute.xlu1 %711 }
  0x9d   : > { %v827_v18 = vsel %vm826_vm7, %v818_v52, %v680_v47 }
  0x9e   : > { %v836_v56 = vsel %vm835_vm8, %v827_v18, %v712_v50 }
  0xa0   : > { %v657_v53 = vpop.permute.xlu0 %656  ;;  %v737_v15 = vpop.permute.xlu1 %736 }
  0xa1   : > { %v845_v58 = vsel %vm844_vm9, %v836_v56, %v737_v15  ;;  %v819_v25 = vsel %vm817_vm6, %v5011_v28, %v657_v53 }
  0xa4   : > { %v682_v54 = vpop.permute.xlu0 %681  ;;  %v769_v55 = vpop.permute.xlu1 %768 }
  0xa5   : > { %v854_v60 = vsel %vm853_vm10, %v845_v58, %v769_v55  ;;  %v828_v57 = vsel %vm826_vm7, %v819_v25, %v682_v54 }
  0xa8   : > { %v659_v59 = vpop.permute.xlu0 %658  ;;  %v794_v20 = vpop.permute.xlu1 %793 }
  0xa9   : > { %v863_v49 = vsel %vm862_vm11, %v854_v60, %v794_v20  ;;  %v820_v13 = vsel %vm817_vm6, %v5013_v29, %v659_v59 }
  0xaa   : > { %3932 = vmatmul.mubr.msk.f32.vlgmr.msra.gmra.mrb[0].mxu0 %vm879_vm12, %v863_v49 }
  0xab   : > { %981 = vmatprep.mubr.f32.mxu0 %v8258_v4 }
  0xac   : > { %v684_v61 = vpop.permute.xlu0 %683  ;;  %v739_v62 = vpop.permute.xlu1 %738 }
  0xad   : > { %v829_v45 = vsel %vm826_vm7, %v820_v13, %v684_v61 }
  0xb0   : > { %v714_v63 = vpop.permute.xlu0 %713  ;;  %v771_v0 = vpop.permute.xlu1 %770 }
  0xb1   : > { %v837_v51 = vsel %vm835_vm8, %v828_v57, %v714_v63 }
  0xb2   : > { %v846_v26 = vsel %vm844_vm9, %v837_v51, %v739_v62 }
  0xb3   : > { %v855_v3 = vsel %vm853_vm10, %v846_v26, %v771_v0 }
  0xb4   : > { %v716_v6 = vpop.permute.xlu0 %715  ;;  %v796_v7 = vpop.permute.xlu1 %795 }
  0xb5   : > { %v864_v10 = vsel %vm862_vm11, %v855_v3, %v796_v7  ;;  %v838_v16 = vsel %vm835_vm8, %v829_v45, %v716_v6 }
  0xb6   : > { %3933 = vmatmul.mubr.msk.f32.gmra.mrb[2].mxu0 %vm879_vm12, %v864_v10 }
  0xb7   : > { %987 = vmatprep.mubr.f32.mxu0 %v8258_v4 }
  0xb8   : > { %v661_v11 = vpop.permute.xlu0 %660  ;;  %v741_v28 = vpop.permute.xlu1 %740 }
  0xb9   : > { %v847_v22 = vsel %vm844_vm9, %v838_v16, %v741_v28  ;;  %v821_v19 = vsel %vm817_vm6, %v5056_v40, %v661_v11 }
  0xbc   : > { %v686_v14 = vpop.permute.xlu0 %685  ;;  %v773_v2 = vpop.permute.xlu1 %772 }
  0xbd   : > { %v856_v23 = vsel %vm853_vm10, %v847_v22, %v773_v2  ;;  %v830_v34 = vsel %vm826_vm7, %v821_v19, %v686_v14  ;;  %v1664_v19 = vld [vmem:[%s8252_s4 + $0xa0] sm:$0xff] }
  0xc0   : > { %v718_v24 = vpop.permute.xlu0 %717  ;;  %v798_v27 = vpop.permute.xlu1 %797 }
  0xc1   : > { %v865_v5 = vsel %vm862_vm11, %v856_v23, %v798_v27  ;;  %v839_v48 = vsel %vm835_vm8, %v830_v34, %v718_v24  ;;  %v1646_v23 = vld [vmem:[%s8252_s4 + $0x10] sm:$0xff]  ;;  %v1647_v24 = vld [vmem:[%s8252_s4 + $0x18] sm:$0xff]  ;;  %v1676_v27 = vld [vmem:[%s8252_s4 + $0x100] sm:$0xff] }
  0xc2   : > { %3934 = vmatmul.mubr.msk.f32.gmra.mrb[4].mxu0 %vm879_vm12, %v865_v5  ;;  %v4452_v5 = vpack.c.bf16 %v1647_v24, %v1646_v23  ;;  %v1694_v34 = vld [vmem:[%s8252_s4 + $0x190] sm:$0xff] }
  0xc3   : > { %993 = vmatprep.mubr.f32.mxu0 %v8258_v4 }
  0xc4   : > { %v663_v12 = vpop.permute.xlu0 %662  ;;  %v743_v29 = vpop.permute.xlu1 %742  ;;  %4453 = vmatpush3.bf16.msra.mxu1 %v4452_v5  ;;  %v1687_v5 = vld [vmem:[%s8252_s4 + $0x158] sm:$0xff] }
  0xc5   : > { %v848_v35 = vsel %vm844_vm9, %v839_v48, %v743_v29  ;;  %v822_v43 = vsel %vm817_vm6, %v5091_v8, %v663_v12  ;;  %v1677_v12 = vld [vmem:[%s8252_s4 + $0x108] sm:$0xff]  ;;  %v1695_v48 = vld [vmem:[%s8252_s4 + $0x198] sm:$0xff] }
  0xc6   : > { %v4480_v29 = vpack.c.bf16 %v1677_v12, %v1676_v27  ;;  %v1686_v27 = vld [vmem:[%s8252_s4 + $0x150] sm:$0xff] }
  0xc7   : > { %v1674_v12 = vld [vmem:[%s8252_s4 + $0xf0] sm:$0xff] }
  0xc8   : > { %v688_v30 = vpop.permute.xlu0 %687  ;;  %v775_v32 = vpop.permute.xlu1 %774  ;;  %4481 = vmatpush3.bf16.msra.mxu0 %v4480_v29  ;;  %v4500_v29 = vpack.c.bf16 %v1687_v5, %v1686_v27  ;;  %v1737_v27 = vld [vmem:[%s8252_s4 + $0x2e8] sm:$0xff]  ;;  %v1720_v5 = vld [vmem:[%s8252_s4 + $0x260] sm:$0xff] }
  0xc9   : > { %v857_v36 = vsel %vm853_vm10, %v848_v35, %v775_v32  ;;  %v831_v46 = vsel %vm826_vm7, %v822_v43, %v688_v30  ;;  %v1665_v30 = vld [vmem:[%s8252_s4 + $0xa8] sm:$0xff]  ;;  %v1648_v35 = vld [vmem:[%s8252_s4 + $0x20] sm:$0xff]  ;;  %v1666_v43 = vld [vmem:[%s8252_s4 + $0xb0] sm:$0xff] }
  0xca   : > { %v4454_v32 = vpack.c.bf16 %v1665_v30, %v1664_v19  ;;  %v1675_v19 = vld [vmem:[%s8252_s4 + $0xf8] sm:$0xff]  ;;  %v1704_v30 = vld [vmem:[%s8252_s4 + $0x1e0] sm:$0xff] }
  0xcc   : > { %v720_v37 = vpop.permute.xlu0 %719  ;;  %v800_v39 = vpop.permute.xlu1 %799  ;;  %4455 = vmatprep.subr.bf16.mxu1 %v4454_v32  ;;  %v1705_v32 = vld [vmem:[%s8252_s4 + $0x1e8] sm:$0xff] }
  0xcd   : > { %v866_v41 = vsel %vm862_vm11, %v857_v36, %v800_v39  ;;  %v840_v33 = vsel %vm835_vm8, %v831_v46, %v720_v37  ;;  %v4482_v36 = vpack.c.bf16 %v1695_v48, %v1694_v34  ;;  %v1649_v37 = vld [vmem:[%s8252_s4 + $0x28] sm:$0xff]  ;;  %v1678_v39 = vld [vmem:[%s8252_s4 + $0x110] sm:$0xff]  ;;  %v4474_v34 = vpack.c.bf16 %v1675_v19, %v1674_v12 }
  0xce   : > { %3935 = vmatmul.mubr.msk.f32.gmra.mrb[6].mxu0 %vm879_vm12, %v866_v41  ;;  %v1679_v41 = vld [vmem:[%s8252_s4 + $0x118] sm:$0xff]  ;;  %v4502_v48 = vpack.c.bf16 %v1705_v32, %v1704_v30  ;;  %v1738_v30 = vld [vmem:[%s8252_s4 + $0x2f0] sm:$0xff] }
  0xcf   : > { %999 = vmatprep.mubr.f32.mxu0 %v8258_v4  ;;  %4483 = vmatprep.subr.bf16.mxu0 %v4482_v36  ;;  %v1659_v36 = vld [vmem:[%s8252_s4 + $0x78] sm:$0xff] }
  0xd0   : > { %v665_v42 = vpop.permute.xlu0 %664  ;;  %v745_v40 = vpop.permute.xlu1 %744  ;;  %v1739_v32 = vld [vmem:[%s8252_s4 + $0x2f8] sm:$0xff] }
  0xd1   : > { %v849_v47 = vsel %vm844_vm9, %v840_v33, %v745_v40  ;;  %v823_v54 = vsel %vm817_vm6, %v5195_v21, %v665_v42  ;;  %v4456_v42 = vpack.c.bf16 %v1649_v37, %v1648_v35  ;;  %v4484_v40 = vpack.c.bf16 %v1679_v41, %v1678_v39  ;;  %v1697_v33 = vld [vmem:[%s8252_s4 + $0x1a8] sm:$0xff]  ;;  %v1658_v35 = vld [vmem:[%s8252_s4 + $0x70] sm:$0xff]  ;;  %v1688_v37 = vld [vmem:[%s8252_s4 + $0x160] sm:$0xff] }
  0xd2   : > { %v4476_v39 = vpack.c.bf16 %v1659_v36, %v1658_v35  ;;  %v1689_v41 = vld [vmem:[%s8252_s4 + $0x168] sm:$0xff]  ;;  %v4538_v35 = vpack.c.bf16 %v1739_v32, %v1738_v30  ;;  %v5837_v30 = vld [vmem:[%s8252_s4 + $0x3e0] sm:$0xff] }
  0xd3   : > { %4457 = vmatpush3.bf16.msra.mxu1 %v4456_v42  ;;  %4485 = vmatpush3.bf16.msra.mxu0 %v4484_v40  ;;  %v4504_v42 = vpack.c.bf16 %v1689_v41, %v1688_v37  ;;  %v1706_v40 = vld [vmem:[%s8252_s4 + $0x1f0] sm:$0xff]  ;;  %v1788_v37 = vld [vmem:[%s8252_s4 + $0x480] sm:$0xff]  ;;  %8308 = vst [vmem:[#allocation11_spill] sm:$0xff] %v5837_v30  ;;  %v5842_v32 = vld [vmem:[%s8252_s4 + $0x3e8] sm:$0xff] }
  0xd4   : > { %v690_v17 = vpop.permute.xlu0 %689  ;;  %v777_v38 = vpop.permute.xlu1 %776  ;;  %8309 = vst [vmem:[#allocation12_spill] sm:$0xff] %v5842_v32 }
  0xd5   : > { %v858_v50 = vsel %vm853_vm10, %v849_v47, %v777_v38  ;;  %v832_v58 = vsel %vm826_vm7, %v823_v54, %v690_v17  ;;  %v1667_v17 = vld [vmem:[%s8252_s4 + $0xb8] sm:$0xff]  ;;  %v1696_v38 = vld [vmem:[%s8252_s4 + $0x1a0] sm:$0xff]  ;;  %v1650_v47 = vld [vmem:[%s8252_s4 + $0x30] sm:$0xff] }
  0xd6   : > { %v4458_v46 = vpack.c.bf16 %v1667_v17, %v1666_v43  ;;  %v1668_v54 = vld [vmem:[%s8252_s4 + $0xc0] sm:$0xff]  ;;  %v1707_v43 = vld [vmem:[%s8252_s4 + $0x1f8] sm:$0xff] }
  0xd7   : > { %v4506_v17 = vpack.c.bf16 %v1707_v43, %v1706_v40  ;;  %v1202_v40 = vsub.s32 1, %v4890_v1  ;;  %v1040_v43 = vld [vmem:[%s8251_s3] sm:$0x3] }
  0xd8   : > { %v722_v52 = vpop.permute.xlu0 %721  ;;  %v802_v53 = vpop.permute.xlu1 %801  ;;  %4459 = vmatprep.subr.bf16.mxu1 %v4458_v46  ;;  %v1691_v46 = vld [vmem:[%s8252_s4 + $0x178] sm:$0xff] }
  0xd9   : > { %v867_v15 = vsel %vm862_vm11, %v858_v50, %v802_v53  ;;  %v841_v60 = vsel %vm835_vm8, %v832_v58, %v722_v52  ;;  %v1651_v50 = vld [vmem:[%s8252_s4 + $0x38] sm:$0xff]  ;;  %v4486_v52 = vpack.c.bf16 %v1697_v33, %v1696_v38  ;;  %v1690_v38 = vld [vmem:[%s8252_s4 + $0x170] sm:$0xff] }
  0xda   : > { %3936 = vmatmul.mubr.msk.f32.gmra.mrb[8].mxu0 %vm879_vm12, %v867_v15  ;;  %v4460_v53 = vpack.c.bf16 %v1651_v50, %v1650_v47  ;;  %v1680_v15 = vld [vmem:[%s8252_s4 + $0x120] sm:$0xff]  ;;  %v4508_v33 = vpack.c.bf16 %v1691_v46, %v1690_v38  ;;  %v1725_v50 = vld [vmem:[%s8252_s4 + $0x288] sm:$0xff] }
  0xdb   : > { %1005 = vmatprep.mubr.f32.mxu0 %v8258_v4  ;;  %4487 = vmatprep.subr.bf16.mxu0 %v4486_v52  ;;  %v1724_v47 = vld [vmem:[%s8252_s4 + $0x280] sm:$0xff] }
  0xdc   : > { %v667_v18 = vpop.permute.xlu0 %666  ;;  %v747_v8 = vpop.permute.xlu1 %746  ;;  %4461 = vmatpush3.bf16.msra.mxu1 %v4460_v53  ;;  %v1708_v52 = vld [vmem:[%s8252_s4 + $0x200] sm:$0xff]  ;;  %v4510_v53 = vpack.c.bf16 %v1725_v50, %v1724_v47  ;;  %v1044_v47 = vld [vmem:[%s8251_s3 + $0x8] sm:$0x3]  ;;  %v1045_v50 = vld [vmem:[%s8251_s3 + $0xa] sm:$0x3] }
  0xdd   : > { %v850_v59 = vsel %vm844_vm9, %v841_v60, %v747_v8  ;;  %v824_v57 = vsel %vm817_vm6, %v5223_v44, %v667_v18  ;;  %v1681_v18 = vld [vmem:[%s8252_s4 + $0x128] sm:$0xff]  ;;  %v1699_v60 = vld [vmem:[%s8252_s4 + $0x1b8] sm:$0xff]  ;;  %v1043_v38 = vld [vmem:[%s8251_s3 + $0x6] sm:$0x3] }
  0xde   : > { %v4488_v8 = vpack.c.bf16 %v1681_v18, %v1680_v15  ;;  %v1709_v15 = vld [vmem:[%s8252_s4 + $0x208] sm:$0xff] }
  0xdf   : > { %v4512_v18 = vpack.c.bf16 %v1709_v15, %v1708_v52  ;;  %v5690_v15 = vld [vmem:[%s8252_s4 + $0x300] sm:$0xff] }
  0xe0   : > { %v692_v55 = vpop.permute.xlu0 %691  ;;  %v779_v56 = vpop.permute.xlu1 %778  ;;  %4489 = vmatpush3.bf16.msra.mxu0 %v4488_v8  ;;  %v1726_v8 = vld [vmem:[%s8252_s4 + $0x290] sm:$0xff] }
  0xe1   : > { %v859_v20 = vsel %vm853_vm10, %v850_v59, %v779_v56  ;;  %v833_v51 = vsel %vm826_vm7, %v824_v57, %v692_v55  ;;  %v1669_v55 = vld [vmem:[%s8252_s4 + $0xc8] sm:$0xff]  ;;  %v1698_v56 = vld [vmem:[%s8252_s4 + $0x1b0] sm:$0xff] }
  0xe2   : > { %v4462_v58 = vpack.c.bf16 %v1669_v55, %v1668_v54  ;;  %v4490_v59 = vpack.c.bf16 %v1699_v60, %v1698_v56  ;;  %v1670_v57 = vld [vmem:[%s8252_s4 + $0xd0] sm:$0xff]  ;;  %v1727_v54 = vld [vmem:[%s8252_s4 + $0x298] sm:$0xff]  ;;  %v1756_v60 = vld [vmem:[%s8252_s4 + $0x380] sm:$0xff] }
  0xe3   : > { %v1710_v55 = vld [vmem:[%s8252_s4 + $0x210] sm:$0xff]  ;;  %v4514_v56 = vpack.c.bf16 %v1727_v54, %v1726_v8 }
  0xe4   : > { %v724_v49 = vpop.permute.xlu0 %723  ;;  %v804_v61 = vpop.permute.xlu1 %803  ;;  %4463 = vmatprep.subr.bf16.mxu1 %v4462_v58  ;;  %4491 = vmatprep.subr.bf16.mxu0 %v4490_v59  ;;  %v1711_v58 = vld [vmem:[%s8252_s4 + $0x218] sm:$0xff]  ;;  %v1757_v59 = vld [vmem:[%s8252_s4 + $0x388] sm:$0xff] }
  0xe5   : > { %v868_v62 = vsel %vm862_vm11, %v859_v20, %v804_v61  ;;  %v842_v26 = vsel %vm835_vm8, %v833_v51, %v724_v49  ;;  %v1652_v20 = vld [vmem:[%s8252_s4 + $0x40] sm:$0xff]  ;;  %v1653_v49 = vld [vmem:[%s8252_s4 + $0x48] sm:$0xff]  ;;  %v1682_v61 = vld [vmem:[%s8252_s4 + $0x130] sm:$0xff] }
  0xe6   : > { %3937 = vmatmul.mubr.msk.f32.gmra.mrb[10].mxu0 %vm879_vm12, %v868_v62  ;;  %v4464_v62 = vpack.c.bf16 %v1653_v49, %v1652_v20  ;;  %v1700_v51 = vld [vmem:[%s8252_s4 + $0x1c0] sm:$0xff]  ;;  %v4516_v20 = vpack.c.bf16 %v1711_v58, %v1710_v55  ;;  %v4542_v49 = vpack.c.bf16 %v1757_v59, %v1756_v60  ;;  %v5709_v58 = vld [vmem:[%s8252_s4 + $0x398] sm:$0xff]  ;;  %v5714_v60 = vld [vmem:[%s8252_s4 + $0x310] sm:$0xff] }
  0xe7   : > { %1011 = vmatprep.mubr.f32.mxu0 %v8258_v4  ;;  %v5719_v59 = vld [vmem:[%s8252_s4 + $0x318] sm:$0xff] }
  0xe8   : > { %v669_v25 = vpop.permute.xlu0 %668  ;;  %v749_v21 = vpop.permute.xlu1 %748  ;;  %4465 = vmatpush3.bf16.msra.mxu1 %v4464_v62  ;;  %v1729_v62 = vld [vmem:[%s8252_s4 + $0x2a8] sm:$0xff] }
  0xe9   : > { %v851_v3 = vsel %vm844_vm9, %v842_v26, %v749_v21  ;;  %v825_v6 = vsel %vm817_vm6, %v5244_v31, %v669_v25  ;;  %v1683_v25 = vld [vmem:[%s8252_s4 + $0x138] sm:$0xff]  ;;  %v1701_v26 = vld [vmem:[%s8252_s4 + $0x1c8] sm:$0xff] }
  0xea   : > { %v4492_v21 = vpack.c.bf16 %v1683_v25, %v1682_v61  ;;  %v1728_v61 = vld [vmem:[%s8252_s4 + $0x2a0] sm:$0xff] }
  0xeb   : > { %v4518_v25 = vpack.c.bf16 %v1729_v62, %v1728_v61 }
  0xec   : > { %v694_v63 = vpop.permute.xlu0 %693  ;;  %v781_v0 = vpop.permute.xlu1 %780  ;;  %4493 = vmatpush3.bf16.msra.mxu0 %v4492_v21  ;;  %v1712_v21 = vld [vmem:[%s8252_s4 + $0x220] sm:$0xff] }
  0xed   : > { %v860_v7 = vsel %vm853_vm10, %v851_v3, %v781_v0  ;;  %v834_v44 = vsel %vm826_vm7, %v825_v6, %v694_v63  ;;  %v1671_v63 = vld [vmem:[%s8252_s4 + $0xd8] sm:$0xff]  ;;  %v1654_v3 = vld [vmem:[%s8252_s4 + $0x50] sm:$0xff]  ;;  %v4494_v6 = vpack.c.bf16 %v1701_v26, %v1700_v51 }
  0xee   : > { %v4466_v0 = vpack.c.bf16 %v1671_v63, %v1670_v57  ;;  %v1713_v57 = vld [vmem:[%s8252_s4 + $0x228] sm:$0xff]  ;;  %v1731_v51 = vld [vmem:[%s8252_s4 + $0x2b8] sm:$0xff] }
  0xef   : > { %4495 = vmatprep.subr.bf16.mxu0 %v4494_v6  ;;  %v4520_v63 = vpack.c.bf16 %v1713_v57, %v1712_v21  ;;  %v1715_v6 = vld [vmem:[%s8252_s4 + $0x238] sm:$0xff]  ;;  %v5739_v21 = vld [vmem:[%s8252_s4 + $0x3a8] sm:$0xff]  ;;  %v5744_v57 = vld [vmem:[%s8252_s4 + $0x320] sm:$0xff] }
  0xf0   : > { %v726_v10 = vpop.permute.xlu0 %725  ;;  %v806_v11 = vpop.permute.xlu1 %805  ;;  %4467 = vmatprep.subr.bf16.mxu1 %v4466_v0  ;;  %v1730_v0 = vld [vmem:[%s8252_s4 + $0x2b0] sm:$0xff] }
  0xf1   : > { %v869_v28 = vsel %vm862_vm11, %v860_v7, %v806_v11  ;;  %v843_v13 = vsel %vm835_vm8, %v834_v44, %v726_v10  ;;  %v1655_v7 = vld [vmem:[%s8252_s4 + $0x58] sm:$0xff]  ;;  %v1684_v10 = vld [vmem:[%s8252_s4 + $0x140] sm:$0xff]  ;;  %v1685_v11 = vld [vmem:[%s8252_s4 + $0x148] sm:$0xff]  ;;  %v4522_v26 = vpack.c.bf16 %v1731_v51, %v1730_v0 }
  0xf2   : > { %3938 = vmatmul.mubr.msk.f32.gmra.mrb[12].mxu0 %vm879_vm12, %v869_v28  ;;  %v4468_v28 = vpack.c.bf16 %v1655_v7, %v1654_v3  ;;  %v4496_v44 = vpack.c.bf16 %v1685_v11, %v1684_v10  ;;  %v1714_v3 = vld [vmem:[%s8252_s4 + $0x230] sm:$0xff]  ;;  %v1732_v10 = vld [vmem:[%s8252_s4 + $0x2c0] sm:$0xff]  ;;  %v1733_v11 = vld [vmem:[%s8252_s4 + $0x2c8] sm:$0xff] }
  0xf3   : > { %1017 = vmatprep.mubr.f32.mxu0 %v8258_v4  ;;  %v4524_v7 = vpack.c.bf16 %v1715_v6, %v1714_v3  ;;  %v5754_v0 = vld [vmem:[%s8252_s4 + $0x3b0] sm:$0xff]  ;;  %v5759_v51 = vld [vmem:[%s8252_s4 + $0x3b8] sm:$0xff]  ;;  %v5763_v3 = vrot.slane %v1043_v38, %v1202_v40  ;;  %v5765_v6 = vrot.slane %v1045_v50, %v1202_v40 }
  0xf4   : > { %v751_v14 = vpop.permute.xlu1 %750  ;;  %v783_v45 = vpop.permute.xlu0 %782  ;;  %4469 = vmatpush3.bf16.msra.mxu1 %v4468_v28  ;;  %4497 = vmatpush3.bf16.msra.mxu0 %v4496_v44  ;;  %v4526_v28 = vpack.c.bf16 %v1733_v11, %v1732_v10  ;;  %v1716_v44 = vld [vmem:[%s8252_s4 + $0x240] sm:$0xff]  ;;  %v5772_v10 = vld [vmem:[%s8252_s4 + $0x330] sm:$0xff]  ;;  %v5777_v11 = vld [vmem:[%s8252_s4 + $0x338] sm:$0xff] }
  0xf5   : > { %v852_v2 = vsel %vm844_vm9, %v843_v13, %v751_v14  ;;  %v1672_v13 = vld [vmem:[%s8252_s4 + $0xe0] sm:$0xff]  ;;  %v1673_v14 = vld [vmem:[%s8252_s4 + $0xe8] sm:$0xff]  ;;  %8299 = vst [vmem:[#allocation2_spill] sm:$0xff] %v5772_v10 }
  0xf6   : > { %v861_v31 = vsel %vm853_vm10, %v852_v2, %v783_v45  ;;  %v1702_v2 = vld [vmem:[%s8252_s4 + $0x1d0] sm:$0xff]  ;;  %v4470_v45 = vpack.c.bf16 %v1673_v14, %v1672_v13  ;;  %v1717_v13 = vld [vmem:[%s8252_s4 + $0x248] sm:$0xff] }
  0xf7   : > { %v4528_v14 = vpack.c.bf16 %v1717_v13, %v1716_v44  ;;  %v5787_v44 = vld [vmem:[%s8252_s4 + $0x3c8] sm:$0xff]  ;;  %v5792_v13 = vld [vmem:[%s8252_s4 + $0x340] sm:$0xff] }
  0xf8   : > { %v808_v16 = vpop.permute.xlu1 %807  ;;  %4471 = vmatprep.subr.bf16.mxu1 %v4470_v45  ;;  %v1735_v45 = vld [vmem:[%s8252_s4 + $0x2d8] sm:$0xff]  ;;  %8301 = vst [vmem:[#allocation4_spill] sm:$0xff] %v5787_v44  ;;  %8302 = vst [vmem:[#allocation5_spill] sm:$0xff] %v5792_v13 }
  0xf9   : > { %v870_v22 = vsel %vm862_vm11, %v861_v31, %v808_v16  ;;  %v1703_v31 = vld [vmem:[%s8252_s4 + $0x1d8] sm:$0xff]  ;;  %v1656_v16 = vld [vmem:[%s8252_s4 + $0x60] sm:$0xff] }
  0xfa   : > { %3939 = vmatmul.mubr.msk.f32.gmra.mrb[14].mxu0 %vm879_vm12, %v870_v22  ;;  %v1657_v22 = vld [vmem:[%s8252_s4 + $0x68] sm:$0xff]  ;;  %v4498_v23 = vpack.c.bf16 %v1703_v31, %v1702_v2  ;;  %v1734_v2 = vld [vmem:[%s8252_s4 + $0x2d0] sm:$0xff] }
  0xfb   : > { %v4472_v24 = vpack.c.bf16 %v1657_v22, %v1656_v16  ;;  %v4530_v31 = vpack.c.bf16 %v1735_v45, %v1734_v2  ;;  %v1718_v16 = vld [vmem:[%s8252_s4 + $0x250] sm:$0xff]  ;;  %v1719_v22 = vld [vmem:[%s8252_s4 + $0x258] sm:$0xff] }
  0xfc   : > { %4499 = vmatprep.subr.bf16.mxu0 %v4498_v23  ;;  %v4532_v23 = vpack.c.bf16 %v1719_v22, %v1718_v16  ;;  %v5804_v16 = vrot.slane %v1044_v47, %v1202_v40  ;;  %v5809_v22 = vld [vmem:[%s8252_s4 + $0x3d0] sm:$0xff] }
  0xfd   : > { %4473 = vmatpush3.bf16.msra.mxu1 %v4472_v24  ;;  %4501 = vmatpush3.bf16.msra.mxu0 %v4500_v29  ;;  %v1736_v24 = vld [vmem:[%s8252_s4 + $0x2e0] sm:$0xff]  ;;  %v1721_v29 = vld [vmem:[%s8252_s4 + $0x268] sm:$0xff]  ;;  %8304 = vst [vmem:[#allocation7_spill] sm:$0xff] %v5809_v22  ;;  %v6046_v22 = vld [vmem:[%s8252_s4 + $0x590] sm:$0xff] }
  0xfe   : > { %4475 = vmatprep.subr.bf16.mxu1 %v4474_v34  ;;  %4503 = vmatprep.subr.bf16.mxu0 %v4502_v48  ;;  %v4534_v12 = vpack.c.bf16 %v1737_v27, %v1736_v24  ;;  %v4536_v19 = vpack.c.bf16 %v1721_v29, %v1720_v5  ;;  %v1722_v34 = vld [vmem:[%s8252_s4 + $0x270] sm:$0xff]  ;;  %v1723_v48 = vld [vmem:[%s8252_s4 + $0x278] sm:$0xff]  ;;  %8332 = vst [vmem:[#allocation35_spill] sm:$0xff] %v6046_v22 }
  0xff   : > { %v4540_v36 = vpack.c.bf16 %v1723_v48, %v1722_v34  ;;  %v5819_v24 = vld [vmem:[%s8252_s4 + $0x350] sm:$0xff] }
 0x100   : > { %8306 = vst [vmem:[#allocation9_spill] sm:$0xff] %v5819_v24 }
 0x101   : > { %4477 = vmatpush3.bf16.msra.mxu1 %v4476_v39  ;;  %4505 = vmatpush3.bf16.msra.mxu0 %v4504_v42  ;;  %v1789_v39 = vld [vmem:[%s8252_s4 + $0x488] sm:$0xff]  ;;  %v1198_v42 = vsub.s32 0, %v4890_v1  ;;  %v1042_v1 = vld [vmem:[%s8251_s3 + $0x4] sm:$0x3] }
 0x102   : > { %4507 = vmatprep.subr.bf16.mxu0 %v4506_v17  ;;  %4511 = vmatprep.subr.bf16.mxu1 %v4510_v53  ;;  %v4574_v41 = vpack.c.bf16 %v1789_v39, %v1788_v37  ;;  %v1041_v17 = vld [vmem:[%s8251_s3 + $0x2] sm:$0x3]  ;;  %v1046_v53 = vld [vmem:[%s8251_s3 + $0xc] sm:$0x3] }
 0x103   : > { %v5671_v46 = vrot.slane %v1040_v43, %v1198_v42  ;;  %v5699_v54 = vrot.slane %v1041_v17, %v1198_v42  ;;  %v5729_v62 = vrot.slane %v1041_v17, %v1202_v40  ;;  %v5800_v45 = vrot.slane %v1042_v1, %v1198_v42  ;;  %v5855_v37 = vld [vmem:[%s8252_s4 + $0x360] sm:$0xff]  ;;  %v5860_v39 = vld [vmem:[%s8252_s4 + $0x368] sm:$0xff]  ;;  %v5908_v17 = vld [vmem:[%s8252_s4 + $0x378] sm:$0xff] }
 0x104   : > { %1933 = vmatmul.mubr.f32.vlgmr.msra.gmra.mrb[0].mxu1 %v8258_v4  ;;  %v5821_v27 = vrot.slane %v1046_v53, %v1202_v40  ;;  %v5823_v5 = vrot.slane %v1044_v47, %v1198_v42  ;;  %8311 = vst [vmem:[#allocation14_spill] sm:$0xff] %v5855_v37  ;;  %8312 = vst [vmem:[#allocation15_spill] sm:$0xff] %v5860_v39  ;;  %v5889_v47 = vld [vmem:[%s8252_s4 + $0x408] sm:$0xff]  ;;  %v5903_v4 = vld [vmem:[%s8252_s4 + $0x370] sm:$0xff] }
 0x105   : > { %4509 = vmatpush3.bf16.msra.mxu0 %v4508_v33  ;;  %4513 = vmatpush3.bf16.msra.mxu1 %v4512_v18  ;;  %v5673_v33 = vrot.slane %v1040_v43, %v1202_v40  ;;  %v5695_v18 = vld [vmem:[%s8252_s4 + $0x308] sm:$0xff]  ;;  %8317 = vst [vmem:[#allocation20_spill] sm:$0xff] %v5889_v47  ;;  %8318 = vst [vmem:[#allocation21_spill] sm:$0xff] %v5903_v4 }
 0x106   : > { %4515 = vmatprep.subr.bf16.mxu1 %v4514_v56  ;;  %4543 = vmatprep.subr.bf16.mxu0 %v4542_v49  ;;  %v5704_v56 = vld [vmem:[%s8252_s4 + $0x390] sm:$0xff]  ;;  %8319 = vst [vmem:[#allocation22_spill] sm:$0xff] %v5908_v17 }
 0x107   : > { %v5727_v61 = vmul.f32 0.0, %v5673_v33 }
 0x109   : > { %4517 = vmatpush3.bf16.msra.mxu1 %v4516_v20  ;;  %v5722_v20 = vmul.f32 0.0, %v5671_v46 }
 0x10a   : > { %4519 = vmatprep.subr.bf16.mxu1 %v4518_v25  ;;  %v5734_v25 = vld [vmem:[%s8252_s4 + $0x3a0] sm:$0xff] }
 0x10d   : > { %4521 = vmatpush3.bf16.msra.mxu1 %v4520_v63  ;;  %v5749_v63 = vld [vmem:[%s8252_s4 + $0x328] sm:$0xff] }
 0x10e   : > { %4523 = vmatprep.subr.bf16.mxu1 %v4522_v26  ;;  %v5761_v26 = vrot.slane %v1043_v38, %v1198_v42  ;;  %v5879_v38 = vld [vmem:[%s8252_s4 + $0x3f8] sm:$0xff] }
 0x10f   : > { %8315 = vst [vmem:[#allocation18_spill] sm:$0xff] %v5879_v38  ;;  %v6029_v38 = vld [vmem:[%s8252_s4 + $0x420] sm:$0xff] }
 0x110   : > { %8330 = vst [vmem:[#allocation33_spill] sm:$0xff] %v6029_v38 }
 0x111   : > { %4525 = vmatpush3.bf16.msra.mxu1 %v4524_v7  ;;  %v5767_v7 = vrot.slane %v1045_v50, %v1198_v42 }
 0x112   : > { %4527 = vmatprep.subr.bf16.mxu1 %v4526_v28  ;;  %v5782_v28 = vld [vmem:[%s8252_s4 + $0x3c0] sm:$0xff] }
 0x113   : > { %8300 = vst [vmem:[#allocation3_spill] sm:$0xff] %v5782_v28 }
 0x115   : > { %4529 = vmatpush3.bf16.msra.mxu1 %v4528_v14  ;;  %v5797_v14 = vld [vmem:[%s8252_s4 + $0x348] sm:$0xff] }
 0x116   : > { %4531 = vmatprep.subr.bf16.mxu1 %v4530_v31  ;;  %8303 = vst [vmem:[#allocation6_spill] sm:$0xff] %v5797_v14  ;;  %v5802_v31 = vrot.slane %v1042_v1, %v1202_v40  ;;  %v5884_v1 = vld [vmem:[%s8252_s4 + $0x400] sm:$0xff]  ;;  %v5925_v40 = vld [vmem:[%s8252_s4 + $0x498] sm:$0xff] }
 0x117   : > { %8316 = vst [vmem:[#allocation19_spill] sm:$0xff] %v5884_v1  ;;  %8321 = vst [vmem:[#allocation24_spill] sm:$0xff] %v5925_v40 }
 0x119   : > { %4533 = vmatpush3.bf16.msra.mxu1 %v4532_v23  ;;  %v5814_v23 = vld [vmem:[%s8252_s4 + $0x3d8] sm:$0xff] }
 0x11a   : > { %4535 = vmatprep.subr.bf16.mxu1 %v4534_v12  ;;  %8305 = vst [vmem:[#allocation8_spill] sm:$0xff] %v5814_v23  ;;  %v5825_v12 = vrot.slane %v1046_v53, %v1198_v42  ;;  %v5868_v42 = vmul.f32 0.0, %v5802_v31  ;;  %v6051_v23 = vld [vmem:[%s8252_s4 + $0x598] sm:$0xff] }
 0x11b   : > { %8333 = vst [vmem:[#allocation36_spill] sm:$0xff] %v6051_v23 }
 0x11c   : > { %8314 = vst [vmem:[#allocation17_spill] sm:$0xff] %v5868_v42 }
 0x11d   : > { %4537 = vmatpush3.bf16.msra.mxu1 %v4536_v19  ;;  %v5832_v19 = vld [vmem:[%s8252_s4 + $0x358] sm:$0xff] }
 0x11e   : > { %4539 = vmatprep.subr.bf16.mxu1 %v4538_v35  ;;  %8307 = vst [vmem:[#allocation10_spill] sm:$0xff] %v5832_v19  ;;  %v5848_v35 = vmul.f32 0.0, %v5800_v45 }
 0x120   : > { %8310 = vst [vmem:[#allocation13_spill] sm:$0xff] %v5848_v35 }
 0x121   : > { %4541 = vmatpush3.bf16.msra.mxu1 %v4540_v36  ;;  %v5930_v36 = vld [vmem:[%s8252_s4 + $0x410] sm:$0xff] }
 0x122   : > { %4575 = vmatprep.subr.bf16.mxu1 %v4574_v41  ;;  %v5865_v41 = vld [vmem:[%s8252_s4 + $0x3f0] sm:$0xff]  ;;  %8322 = vst [vmem:[#allocation25_spill] sm:$0xff] %v5930_v36 }
 0x123   : > { %8313 = vst [vmem:[#allocation16_spill] sm:$0xff] %v5865_v41  ;;  %v6024_v41 = vld [vmem:[%s8252_s4 + $0x4a8] sm:$0xff] }
 0x124   : > { %8329 = vst [vmem:[#allocation32_spill] sm:$0xff] %v6024_v41 }
 0x17d   : > { %v977_v52 = vpop.f32.mrb[0].mxu0 }
 0x17e   : > { %v5697_v8 = vmax.f32 %v977_v52, 0.0  ;;  %v979_v55 = vpop.f32.mrb[1].mxu0 }
 0x17f   : > { %v5724_v49 = vmax.f32 %v979_v55, 0.0  ;;  %v5935_v55 = vld [vmem:[%s8252_s4 + $0x418] sm:$0xff] }
 0x180   : > { %v1063_v2 = vrot.slane %v5697_v8, 7  ;;  %v1111_v53 = vrot.slane %v5697_v8, 1  ;;  %8323 = vst [vmem:[#allocation26_spill] sm:$0xff] %v5935_v55  ;;  %v1233_v52 = vmul.f32 %v5699_v54, %v5697_v8 }
 0x181   : > { %v1064_v34 = vrot.slane %v5724_v49, 7  ;;  %v1112_v48 = vrot.slane %v5724_v49, 1  ;;  %v1234_v35 = vmul.f32 %v5729_v62, %v5724_v49  ;;  %v1209_v32 = vmul.f32 %v5673_v33, %v5724_v49 }
 0x182   : > { %v5892_v50 = vsel %vm372_vm0, 0.0, %v1063_v2  ;;  %v5913_v2 = vld [vmem:[%s8252_s4 + $0x490] sm:$0xff]  ;;  %v1143_v19 = vsel %vm397_vm2, %v1111_v53, 0.0  ;;  %v1249_v47 = vadd.f32 %v1233_v52, %v5722_v20 }
 0x183   : > { %8320 = vst [vmem:[#allocation23_spill] sm:$0xff] %v5913_v2  ;;  %v1096_v43 = vsel %vm372_vm0, 0.0, %v1064_v34  ;;  %v1159_v42 = vsel %vm4916_vm1, 0.0, %v5892_v50  ;;  %v1208_v34 = vmul.f32 %v5671_v46, %v5697_v8  ;;  %v1144_v4 = vsel %vm397_vm2, %v1112_v48, 0.0 }
 0x184   : > { %v1160_v30 = vsel %vm4916_vm1, 0.0, %v1096_v43  ;;  %v1319_v29 = vmul.f32 %v5761_v26, %v1159_v42  ;;  %v1250_v2 = vadd.f32 %v1234_v35, %v5727_v61  ;;  %v5982_v61 = vld [vmem:[%s8252_s4 + $0x580] sm:$0xff] }
 0x185   : > { %v1320_v55 = vmul.f32 %v5763_v3, %v1160_v30  ;;  %8324 = vst [vmem:[#allocation27_spill] sm:$0xff] %v5982_v61  ;;  %v5987_v30 = vld [vmem:[%s8252_s4 + $0x588] sm:$0xff] }
 0x186   : > { %8325 = vst [vmem:[#allocation28_spill] sm:$0xff] %v5987_v30 }
 0x189   : > { %v983_v24 = vpop.f32.mrb[2].mxu0 }
 0x18a   : > { %v1026_v1 = vmax.f32 %v983_v24, 0.0  ;;  %v985_v8 = vpop.f32.mrb[3].mxu0 }
 0x18b   : > { %v1027_v37 = vmax.f32 %v985_v8, 0.0  ;;  %v6001_v8 = vld [vmem:[%s8252_s4 + $0x500] sm:$0xff] }
 0x18c   : > { %v1065_v39 = vrot.slane %v1026_v1, 7  ;;  %v1113_v36 = vrot.slane %v1026_v1, 1  ;;  %v1235_v53 = vmul.f32 %v5699_v54, %v1026_v1  ;;  %v1276_v40 = vmul.f32 %v5800_v45, %v1026_v1  ;;  %8326 = vst [vmem:[#allocation29_spill] sm:$0xff] %v6001_v8 }
 0x18d   : > { %v1066_v49 = vrot.slane %v1027_v37, 7  ;;  %v1114_v24 = vrot.slane %v1027_v37, 1  ;;  %v1236_v48 = vmul.f32 %v5729_v62, %v1027_v37  ;;  %v1277_v42 = vmul.f32 %v5802_v31, %v1027_v37 }
 0x18e   : > { %v5973_v17 = vsel %vm372_vm0, 0.0, %v1065_v39  ;;  %v5975_v20 = vadd.f32 %v1235_v53, %v1208_v34  ;;  %v1292_v35 = vadd.f32 %v1276_v40, %v1249_v47  ;;  %v5996_v34 = vsel %vm397_vm2, %v1113_v36, 0.0  ;;  %v6006_v53 = vld [vmem:[%s8252_s4 + $0x508] sm:$0xff]  ;;  %v6011_v40 = vld [vmem:[%s8252_s4 + $0x4a0] sm:$0xff] }
 0x18f   : > { %v5990_v39 = vsel %vm372_vm0, 0.0, %v1066_v49  ;;  %v5993_v52 = vsel %vm397_vm2, %v1114_v24, 0.0  ;;  %8327 = vst [vmem:[#allocation30_spill] sm:$0xff] %v6006_v53  ;;  %8328 = vst [vmem:[#allocation31_spill] sm:$0xff] %v6011_v40  ;;  %v6013_v47 = vadd.f32 %v1236_v48, %v1209_v32  ;;  %v1293_v49 = vadd.f32 %v1277_v42, %v1250_v2  ;;  %v6034_v32 = vld [vmem:[%s8252_s4 + $0x428] sm:$0xff] }
 0x190   : > { %v1162_v36 = vsel %vm4916_vm1, %v1096_v43, %v5990_v39  ;;  %v1180_v24 = vsel %vm4916_vm1, %v1144_v4, %v5993_v52  ;;  %8331 = vst [vmem:[#allocation34_spill] sm:$0xff] %v6034_v32  ;;  %v1177_v43 = vsel %vm4916_vm1, 0.0, %v1143_v19  ;;  %v1178_v2 = vsel %vm4916_vm1, 0.0, %v1144_v4 }
 0x191   : > { %v1363_v48 = vmul.f32 %v5804_v16, %v1162_v36  ;;  %v1336_v13 = vadd.f32 %v1320_v55, %v1293_v49  ;;  %v1161_v4 = vsel %vm4916_vm1, %v5892_v50, %v5973_v17  ;;  %v1179_v42 = vsel %vm4916_vm1, %v1143_v19, %v5996_v34 }
 0x192   : > { %v1335_v61 = vadd.f32 %v1319_v29, %v1292_v35  ;;  %v1362_v30 = vmul.f32 %v5823_v5, %v1161_v4  ;;  %v1406_v44 = vmul.f32 %v5765_v6, %v1178_v2  ;;  %v1405_v50 = vmul.f32 %v5767_v7, %v1177_v43 }
 0x193   : > { %v1379_v49 = vadd.f32 %v1363_v48, %v1336_v13  ;;  %v1210_v29 = vmul.f32 %v5671_v46, %v1026_v1  ;;  %v1211_v35 = vmul.f32 %v5673_v33, %v1027_v37  ;;  %v1322_v14 = vmul.f32 %v5763_v3, %v1162_v36 }
 0x194   : > { %v1378_v8 = vadd.f32 %v1362_v30, %v1335_v61  ;;  %v1408_v55 = vmul.f32 %v5765_v6, %v1180_v24  ;;  %v1449_v2 = vmul.f32 %v5821_v27, %v1180_v24  ;;  %v1321_v43 = vmul.f32 %v5761_v26, %v1161_v4 }
 0x195   : > { %v989_v10 = vpop.f32.mrb[4].mxu0  ;;  %v1422_v13 = vadd.f32 %v1406_v44, %v1379_v49  ;;  %v1407_v19 = vmul.f32 %v5767_v7, %v1179_v42  ;;  %v1448_v36 = vmul.f32 %v5825_v12, %v1179_v42 }
 0x196   : > { %v1028_v28 = vmax.f32 %v989_v10, 0.0  ;;  %v991_v40 = vpop.f32.mrb[5].mxu0  ;;  %v1421_v38 = vadd.f32 %v1405_v50, %v1378_v8 }
 0x197   : > { %v1029_v48 = vmax.f32 %v991_v40, 0.0 }
 0x198   : > { %v1067_v1 = vrot.slane %v1028_v28, 7  ;;  %v1115_v32 = vrot.slane %v1028_v28, 1  ;;  %v1237_v37 = vmul.f32 %v5699_v54, %v1028_v28  ;;  %v6081_v10 = vmul.f32 %v5671_v46, %v1028_v28 }
 0x199   : > { %v1278_v61 = vmul.f32 %v5800_v45, %v1028_v28  ;;  %v1068_v44 = vrot.slane %v1029_v48, 7  ;;  %v1116_v30 = vrot.slane %v1029_v48, 1  ;;  %v6086_v4 = vmul.f32 %v5673_v33, %v1029_v48 }
 0x19a   : > { %v1099_v40 = vsel %vm372_vm0, 0.0, %v1067_v1  ;;  %v1253_v24 = vadd.f32 %v1237_v37, %v1210_v29  ;;  %v1238_v8 = vmul.f32 %v5729_v62, %v1029_v48  ;;  %v6100_v1 = vsel %vm397_vm2, %v1115_v32, 0.0 }
 0x19b   : > { %v1163_v49 = vsel %vm4916_vm1, %v5973_v17, %v1099_v40  ;;  %v1294_v42 = vadd.f32 %v1278_v61, %v5975_v20  ;;  %v6094_v50 = vsel %vm372_vm0, 0.0, %v1068_v44  ;;  %v6097_v28 = vsel %vm397_vm2, %v1116_v30, 0.0 }
 0x19c   : > { %v1164_v29 = vsel %vm4916_vm1, %v5990_v39, %v6094_v50  ;;  %v6106_v37 = vadd.f32 %v1238_v8, %v1211_v35  ;;  %v1279_v17 = vmul.f32 %v5802_v31, %v1029_v48  ;;  %v1323_v20 = vmul.f32 %v5761_v26, %v1163_v49 }
 0x19d   : > { %v1365_v61 = vmul.f32 %v5804_v16, %v1164_v29  ;;  %v1465_v44 = vadd.f32 %v1449_v2, %v1422_v13  ;;  %v1337_v22 = vadd.f32 %v1321_v43, %v1294_v42  ;;  %v1364_v32 = vmul.f32 %v5823_v5, %v1163_v49 }
 0x19e   : > { %v1295_v30 = vadd.f32 %v1279_v17, %v6013_v47  ;;  %v1464_v23 = vadd.f32 %v1448_v36, %v1421_v38  ;;  %v1182_v39 = vsel %vm4916_vm1, %v5993_v52, %v6097_v28  ;;  %v6118_v35 = vmul.f32 %v5763_v3, %v1164_v29 }
 0x19f   : > { %v1481_v48 = vmax.f32 %v1465_v44, 0.0  ;;  %v1451_v8 = vmul.f32 %v5821_v27, %v1182_v39  ;;  %v1181_v13 = vsel %vm4916_vm1, %v5996_v34, %v6100_v1  ;;  %v1380_v2 = vadd.f32 %v1364_v32, %v1337_v22 }
 0x1a0   : > { %v1338_v47 = vadd.f32 %v1322_v14, %v1295_v30  ;;  %v6125_v43 = vmax.f32 %v1464_v23, 0.0  ;;  %v6128_v38 = vmul.f32 %v5765_v6, %v1182_v39  ;;  %v1450_v36 = vmul.f32 %v5825_v12, %v1181_v13 }
 0x1a1   : > { %1937 = vmatprep.mubr.f32.mxu1 %v1481_v48  ;;  %2037 = vmatprep.mubr.f32.mxu0 %v1481_v48  ;;  %v995_v52 = vpop.f32.mrb[6].mxu0  ;;  %v1409_v49 = vmul.f32 %v5767_v7, %v1181_v13  ;;  %v1513_v42 = vrot.slane %v1481_v48, 7  ;;  %v1561_v29 = vrot.slane %v1481_v48, 1  ;;  %v1423_v44 = vadd.f32 %v1407_v19, %v1380_v2 }
 0x1a2   : > { %v1381_v17 = vadd.f32 %v1365_v61, %v1338_v47  ;;  %1938 = vmatmul.mubr.f32.gmra.mrb[2].mxu1 %v6125_v43  ;;  %2038 = vmatmul.mubr.f32.vlgmr.msra.gmra.mrb[16].mxu0 %v6125_v43  ;;  %v1030_v14 = vmax.f32 %v995_v52, 0.0  ;;  %v997_v22 = vpop.f32.mrb[7].mxu0  ;;  %v1512_v23 = vrot.slane %v6125_v43, 7  ;;  %v8334_v30 = vpack.c.bf16 %v5695_v18, %v5690_v15 }
 0x1a3   : > { %v1031_v34 = vmax.f32 %v997_v22, 0.0  ;;  %v6139_v32 = vsel %vm372_vm0, 0.0, %v1513_v42  ;;  %v6142_v39 = vsel %vm397_vm2, %v1561_v29, 0.0  ;;  %v1560_v19 = vrot.slane %v6125_v43, 1 }
 0x1a4   : > { %4545 = vmatpush3.bf16.msra.mxu0 %v8334_v30  ;;  %v1424_v61 = vadd.f32 %v1408_v55, %v1381_v17  ;;  %v1069_v48 = vrot.slane %v1030_v14, 7  ;;  %v1117_v13 = vrot.slane %v1030_v14, 1  ;;  %v6146_v47 = vmul.f32 %v5671_v46, %v1030_v14 }
 0x1a5   : > { %v8335_v2 = vpack.c.bf16 %v5709_v58, %v5704_v56  ;;  %v1239_v15 = vmul.f32 %v5699_v54, %v1030_v14  ;;  %v1280_v18 = vmul.f32 %v5800_v45, %v1030_v14  ;;  %v1070_v52 = vrot.slane %v1031_v34, 7 }
 0x1a6   : > { %v1118_v42 = vrot.slane %v1031_v34, 1  ;;  %v6154_v29 = vsel %vm372_vm0, 0.0, %v1069_v48  ;;  %v6157_v55 = vsel %vm397_vm2, %v1117_v13, 0.0  ;;  %v6160_v43 = vmul.f32 %v5673_v33, %v1031_v34 }
 0x1a7   : > { %4547 = vmatprep.subr.bf16.mxu0 %v8335_v2  ;;  %v1240_v17 = vmul.f32 %v5729_v62, %v1031_v34  ;;  %v1165_v56 = vsel %vm4916_vm1, %v1099_v40, %v6154_v29  ;;  %v1255_v58 = vadd.f32 %v1239_v15, %v6081_v10  ;;  %v1296_v14 = vadd.f32 %v1280_v18, %v1253_v24 }
 0x1a8   : > { %v6168_v22 = vsel %vm372_vm0, 0.0, %v1070_v52  ;;  %v8336_v30 = vpack.c.bf16 %v5719_v59, %v5714_v60  ;;  %v6174_v48 = vmul.f32 %v5761_v26, %v1165_v56  ;;  %v1366_v13 = vmul.f32 %v5823_v5, %v1165_v56 }
 0x1a9   : > { %v6178_v2 = vsel %vm397_vm2, %v1118_v42, 0.0  ;;  %v1166_v10 = vsel %vm4916_vm1, %v6094_v50, %v6168_v22  ;;  %v8337_v40 = vpack.c.bf16 %v5739_v21, %v5734_v25  ;;  %v1339_v24 = vadd.f32 %v1323_v20, %v1296_v14 }
 0x1aa   : > { %4549 = vmatpush3.bf16.msra.mxu0 %v8336_v30  ;;  %v6188_v60 = vadd.f32 %v1240_v17, %v6086_v4  ;;  %v1281_v59 = vmul.f32 %v5802_v31, %v1031_v34  ;;  %v6192_v15 = vmul.f32 %v5763_v3, %v1166_v10  ;;  %v1367_v18 = vmul.f32 %v5804_v16, %v1166_v10 }
 0x1ab   : > { %4551 = vmatprep.subr.bf16.mxu0 %v8337_v40  ;;  %v1467_v52 = vadd.f32 %v1451_v8, %v1424_v61  ;;  %v1466_v42 = vadd.f32 %v1450_v36, %v1423_v44  ;;  %v1184_v50 = vsel %vm4916_vm1, %v6097_v28, %v6178_v2  ;;  %v1183_v4 = vsel %vm4916_vm1, %v6100_v1, %v6157_v55 }
 0x1ac   : > { %v1297_v25 = vadd.f32 %v1281_v59, %v6106_v37  ;;  %v6201_v21 = vmul.f32 %v5821_v27, %v1184_v50  ;;  %v1382_v20 = vadd.f32 %v1366_v13, %v1339_v24  ;;  %v8338_v8 = vpack.c.bf16 %v5749_v63, %v5744_v57 }
 0x1ad   : > { %v6210_v36 = vmax.f32 %v1467_v52, 0.0  ;;  %v6212_v44 = vmax.f32 %v1466_v42, 0.0  ;;  %v1452_v28 = vmul.f32 %v5825_v12, %v1183_v4  ;;  %v6216_v37 = vmul.f32 %v5765_v6, %v1184_v50  ;;  %v1001_v61 = vpop.f32.mrb[8].mxu0  ;;  %v8340_v52 = vld [vmem:[#allocation2_spill] sm:$0xff] }
 0x1ae   : > { %4553 = vmatpush3.bf16.msra.mxu0 %v8338_v8  ;;  %v8339_v34 = vpack.c.bf16 %v5759_v51, %v5754_v0  ;;  %v1340_v1 = vadd.f32 %v6118_v35, %v1297_v25  ;;  %v1425_v17 = vadd.f32 %v1409_v49, %v1382_v20  ;;  %v1411_v57 = vmul.f32 %v5767_v7, %v1183_v4  ;;  %v1003_v14 = vpop.f32.mrb[9].mxu0  ;;  %v8342_v4 = vld [vmem:[#allocation4_spill] sm:$0xff]  ;;  %v8343_v20 = vld [vmem:[#allocation3_spill] sm:$0xff] }
 0x1af   : > { %v6224_v63 = vsel %vm372_vm0, 0.0, %v1512_v23  ;;  %1942 = vmatprep.mubr.f32.mxu1 %v6210_v36  ;;  %2042 = vmatprep.mubr.f32.mxu0 %v6210_v36  ;;  %v1032_v56 = vmax.f32 %v1001_v61, 0.0  ;;  %v1515_v30 = vrot.slane %v6210_v36, 7  ;;  %v1514_v0 = vrot.slane %v6212_v44, 7 }
 0x1b0   : > { %4555 = vmatprep.subr.bf16.mxu0 %v8339_v34  ;;  %v6231_v51 = vsel %vm397_vm2, %v1560_v19, 0.0  ;;  %1943 = vmatmul.mubr.f32.gmra.mrb[4].mxu1 %v6212_v44  ;;  %v1033_v35 = vmax.f32 %v1003_v14, 0.0  ;;  %v1383_v49 = vadd.f32 %v1367_v18, %v1340_v1  ;;  %v1468_v23 = vadd.f32 %v1452_v28, %v1425_v17 }
 0x1b1   : > { %2043 = vmatmul.mubr.f32.gmra.mrb[18].mxu0 %v6212_v44  ;;  %v1563_v13 = vrot.slane %v6210_v36, 1  ;;  %v1071_v10 = vrot.slane %v1032_v56, 7  ;;  %v1119_v40 = vrot.slane %v1032_v56, 1  ;;  %v6237_v24 = vmul.f32 %v5671_v46, %v1032_v56 }
 0x1b2   : > { %v1241_v59 = vmul.f32 %v5699_v54, %v1032_v56  ;;  %v8341_v19 = vpack.c.bf16 %v5777_v11, %v8340_v52  ;;  %v1282_v42 = vmul.f32 %v5800_v45, %v1032_v56  ;;  %v1072_v50 = vrot.slane %v1033_v35, 7 }
 0x1b3   : > { %v1120_v25 = vrot.slane %v1033_v35, 1  ;;  %v6245_v18 = vmul.f32 %v5673_v33, %v1033_v35  ;;  %v8344_v8 = vpack.c.bf16 %v8342_v4, %v8343_v20  ;;  %v6251_v28 = vsel %vm372_vm0, 0.0, %v1071_v10  ;;  %v8348_v4 = vld [vmem:[#allocation8_spill] sm:$0xff]  ;;  %v8349_v20 = vld [vmem:[#allocation7_spill] sm:$0xff] }
 0x1b4   : > { %4557 = vmatpush3.bf16.msra.mxu0 %v8341_v19  ;;  %v6254_v34 = vsel %vm397_vm2, %v1119_v40, 0.0  ;;  %v6257_v11 = vadd.f32 %v1241_v59, %v6146_v47  ;;  %v1242_v1 = vmul.f32 %v5729_v62, %v1033_v35  ;;  %v1167_v61 = vsel %vm4916_vm1, %v6154_v29, %v6251_v28  ;;  %v8345_v29 = vld [vmem:[#allocation6_spill] sm:$0xff] }
 0x1b5   : > { %4559 = vmatprep.subr.bf16.mxu0 %v8344_v8  ;;  %v1298_v17 = vadd.f32 %v1282_v42, %v1255_v58  ;;  %v6265_v56 = vsel %vm372_vm0, 0.0, %v1072_v50  ;;  %v6268_v14 = vsel %vm397_vm2, %v1120_v25, 0.0  ;;  %v6271_v10 = vmul.f32 %v5761_v26, %v1167_v61  ;;  %v8346_v58 = vld [vmem:[#allocation5_spill] sm:$0xff] }
 0x1b6   : > { %v1368_v47 = vmul.f32 %v5823_v5, %v1167_v61  ;;  %v1168_v40 = vsel %vm4916_vm1, %v6168_v22, %v6265_v56  ;;  %v6279_v59 = vadd.f32 %v1242_v1, %v6160_v43  ;;  %v8347_v52 = vpack.c.bf16 %v8345_v29, %v8346_v58  ;;  %v8352_v29 = vld [vmem:[#allocation9_spill] sm:$0xff] }
 0x1b7   : > { %v1341_v19 = vadd.f32 %v6174_v48, %v1298_v17  ;;  %v1283_v42 = vmul.f32 %v5802_v31, %v1033_v35  ;;  %v6287_v50 = vmul.f32 %v5763_v3, %v1168_v40  ;;  %v1369_v25 = vmul.f32 %v5804_v16, %v1168_v40  ;;  %v8351_v40 = vld [vmem:[#allocation10_spill] sm:$0xff] }
 0x1b8   : > { %4561 = vmatpush3.bf16.msra.mxu0 %v8347_v52  ;;  %v8350_v8 = vpack.c.bf16 %v8348_v4, %v8349_v20  ;;  %v1426_v43 = vadd.f32 %v6128_v38, %v1383_v49  ;;  %v6294_v22 = vmax.f32 %v1468_v23, 0.0  ;;  %v1186_v48 = vsel %vm4916_vm1, %v6178_v2, %v6268_v14 }
 0x1b9   : > { %v1185_v35 = vsel %vm4916_vm1, %v6157_v55, %v6254_v34  ;;  %v1299_v1 = vadd.f32 %v1283_v42, %v6188_v60  ;;  %v6306_v61 = vmul.f32 %v5821_v27, %v1186_v48  ;;  %v1384_v17 = vadd.f32 %v1368_v47, %v1341_v19  ;;  %v1007_v47 = vpop.f32.mrb[10].mxu0  ;;  %v8354_v19 = vld [vmem:[#allocation12_spill] sm:$0xff]  ;;  %v8355_v42 = vld [vmem:[#allocation11_spill] sm:$0xff] }
 0x1ba   : > { %4563 = vmatprep.subr.bf16.mxu0 %v8350_v8  ;;  %v1454_v38 = vmul.f32 %v5825_v12, %v1185_v35  ;;  %v1469_v49 = vadd.f32 %v6201_v21, %v1426_v43  ;;  %v6311_v23 = vmul.f32 %v5765_v6, %v1186_v48  ;;  %v6314_v2 = vmul.f32 %v5767_v7, %v1185_v35  ;;  %v1009_v43 = vpop.f32.mrb[11].mxu0 }
 0x1bb   : > { %v8353_v58 = vpack.c.bf16 %v8351_v40, %v8352_v29  ;;  %v6320_v55 = vsel %vm372_vm0, 0.0, %v1515_v30  ;;  %v1342_v60 = vadd.f32 %v6192_v15, %v1299_v1  ;;  %v1427_v52 = vadd.f32 %v1411_v57, %v1384_v17 }
 0x1bc   : > { %v8356_v21 = vpack.c.bf16 %v8354_v19, %v8355_v42  ;;  %v6330_v4 = vsel %vm4916_vm1, %v6139_v32, %v6320_v55  ;;  %v6333_v20 = vsel %vm372_vm0, 0.0, %v1514_v0  ;;  %v6335_v8 = vmax.f32 %v1469_v49, 0.0  ;;  %v8359_v42 = vld [vmem:[#allocation15_spill] sm:$0xff] }
 0x1bd   : > { %4565 = vmatpush3.bf16.msra.mxu0 %v8353_v58  ;;  %8357 = vst [vmem:[#allocation2_spill] sm:$0xff] %v6330_v4  ;;  %v1034_v30 = vmax.f32 %v1007_v47, 0.0  ;;  %v6341_v15 = vsel %vm4916_vm1, %v6224_v63, %v6333_v20  ;;  %v1516_v57 = vrot.slane %v6294_v22, 7  ;;  %v1035_v48 = vmax.f32 %v1009_v43, 0.0 }
 0x1be   : > { %4567 = vmatprep.subr.bf16.mxu0 %v8356_v21  ;;  %8358 = vst [vmem:[#allocation4_spill] sm:$0xff] %v6341_v15  ;;  %v1385_v35 = vadd.f32 %v1369_v25, %v1342_v60  ;;  %v1470_v1 = vadd.f32 %v1454_v38, %v1427_v52  ;;  %v6345_v17 = vsel %vm397_vm2, %v1563_v13, 0.0  ;;  %1947 = vmatprep.mubr.f32.mxu1 %v6335_v8  ;;  %v8360_v21 = vld [vmem:[#allocation14_spill] sm:$0xff] }
 0x1bf   : > { %2047 = vmatprep.mubr.f32.mxu0 %v6335_v8  ;;  %v1073_v0 = vrot.slane %v1034_v30, 7  ;;  %v1121_v49 = vrot.slane %v1034_v30, 1  ;;  %v6350_v40 = vmul.f32 %v5671_v46, %v1034_v30  ;;  %v1243_v29 = vmul.f32 %v5699_v54, %v1034_v30  ;;  %1948 = vmatmul.mubr.f32.gmra.mrb[6].mxu1 %v6294_v22 }
 0x1c0   : > { %2048 = vmatmul.mubr.f32.gmra.mrb[20].mxu0 %v6294_v22  ;;  %v1284_v25 = vmul.f32 %v5800_v45, %v1034_v30  ;;  %v1074_v38 = vrot.slane %v1035_v48, 7  ;;  %v1122_v13 = vrot.slane %v1035_v48, 1  ;;  %v6357_v58 = vmul.f32 %v5673_v33, %v1035_v48 }
 0x1c1   : > { %v6360_v60 = vsel %vm372_vm0, 0.0, %v1073_v0  ;;  %v6363_v47 = vsel %vm397_vm2, %v1121_v49, 0.0  ;;  %v1259_v52 = vadd.f32 %v1243_v29, %v6237_v24  ;;  %v1244_v19 = vmul.f32 %v5729_v62, %v1035_v48  ;;  %v8362_v24 = vld [vmem:[#allocation18_spill] sm:$0xff]  ;;  %v8363_v29 = vld [vmem:[#allocation16_spill] sm:$0xff] }
 0x1c2   : > { %v8361_v43 = vpack.c.bf16 %v8359_v42, %v8360_v21  ;;  %v1169_v30 = vsel %vm4916_vm1, %v6251_v28, %v6360_v60  ;;  %v1300_v15 = vadd.f32 %v1284_v25, %v6257_v11  ;;  %v6376_v0 = vsel %vm372_vm0, 0.0, %v1074_v38 }
 0x1c3   : > { %v6379_v49 = vsel %vm397_vm2, %v1122_v13, 0.0  ;;  %v8364_v41 = vpack.c.bf16 %v8362_v24, %v8363_v29  ;;  %v1329_v42 = vmul.f32 %v5761_v26, %v1169_v30  ;;  %v1370_v21 = vmul.f32 %v5823_v5, %v1169_v30  ;;  %v8369_v29 = vld [vmem:[#allocation27_spill] sm:$0xff] }
 0x1c4   : > { %4569 = vmatpush3.bf16.msra.mxu0 %v8361_v43  ;;  %v1170_v28 = vsel %vm4916_vm1, %v6265_v56, %v6376_v0  ;;  %v1260_v11 = vadd.f32 %v1244_v19, %v6245_v18  ;;  %v1343_v25 = vadd.f32 %v6271_v10, %v1300_v15  ;;  %v1285_v38 = vmul.f32 %v5802_v31, %v1035_v48  ;;  %v8365_v56 = vld [vmem:[#allocation22_spill] sm:$0xff]  ;;  %v8366_v10 = vld [vmem:[#allocation21_spill] sm:$0xff]  ;;  %v8368_v19 = vld [vmem:[#allocation28_spill] sm:$0xff] }
 0x1c5   : > { %4571 = vmatprep.subr.bf16.mxu0 %v8364_v41  ;;  %v1330_v13 = vmul.f32 %v5763_v3, %v1170_v28  ;;  %v1371_v43 = vmul.f32 %v5804_v16, %v1170_v28  ;;  %v1428_v41 = vadd.f32 %v6216_v37, %v1385_v35  ;;  %v6396_v24 = vmax.f32 %v1470_v1, 0.0 }
 0x1c6   : > { %v1188_v30 = vsel %vm4916_vm1, %v6268_v14, %v6379_v49  ;;  %v1187_v18 = vsel %vm4916_vm1, %v6254_v34, %v6363_v47  ;;  %v8367_v15 = vpack.c.bf16 %v8365_v56, %v8366_v10  ;;  %v1301_v48 = vadd.f32 %v1285_v38, %v6279_v59  ;;  %v1013_v38 = vpop.f32.mrb[12].mxu0 }
 0x1c7   : > { %v1457_v37 = vmul.f32 %v5821_v27, %v1188_v30  ;;  %v1386_v35 = vadd.f32 %v1370_v21, %v1343_v25  ;;  %v1456_v1 = vmul.f32 %v5825_v12, %v1187_v18  ;;  %v8370_v28 = vpack.c.bf16 %v8368_v19, %v8369_v29 }
 0x1c8   : > { %4573 = vmatpush3.bf16.msra.mxu0 %v8367_v15  ;;  %v1471_v14 = vadd.f32 %v6306_v61, %v1428_v41  ;;  %v6417_v53 = vmul.f32 %v5765_v6, %v1188_v30  ;;  %v6420_v34 = vmul.f32 %v5767_v7, %v1187_v18  ;;  %v1517_v56 = vrot.slane %v6335_v8, 7  ;;  %v1015_v41 = vpop.f32.mrb[13].mxu0 }
 0x1c9   : > { %4607 = vmatprep.subr.bf16.mxu0 %v8370_v28  ;;  %v1344_v59 = vadd.f32 %v6287_v50, %v1301_v48  ;;  %v1429_v21 = vadd.f32 %v6314_v2, %v1386_v35  ;;  %v6426_v25 = vsel %vm372_vm0, 0.0, %v1516_v57  ;;  %v1036_v61 = vmax.f32 %v1013_v38, 0.0 }
 0x1ca   : > { %v6429_v15 = vmax.f32 %v1471_v14, 0.0  ;;  %v6432_v30 = vsel %vm372_vm0, 0.0, %v1517_v56  ;;  %v6438_v50 = vsel %vm4916_vm1, %v6333_v20, %v6426_v25  ;;  %v1037_v18 = vmax.f32 %v1015_v41, 0.0 }
 0x1cb   : > { %8371 = vst [vmem:[#allocation3_spill] sm:$0xff] %v6438_v50  ;;  %v1387_v2 = vadd.f32 %v1371_v43, %v1344_v59  ;;  %v1472_v48 = vadd.f32 %v1456_v1, %v1429_v21  ;;  %v6444_v57 = vsel %vm4916_vm1, %v6320_v55, %v6432_v30  ;;  %v1075_v35 = vrot.slane %v1036_v61, 7 }
 0x1cc   : > { %8372 = vst [vmem:[#allocation6_spill] sm:$0xff] %v6444_v57  ;;  %1952 = vmatprep.mubr.f32.mxu1 %v6429_v15  ;;  %2052 = vmatprep.mubr.f32.mxu0 %v6429_v15  ;;  %v1123_v19 = vrot.slane %v1036_v61, 1  ;;  %v1245_v29 = vmul.f32 %v5699_v54, %v1036_v61  ;;  %v1286_v20 = vmul.f32 %v5800_v45, %v1036_v61  ;;  %v1076_v43 = vrot.slane %v1037_v18, 7 }
 0x1cd   : > { %1953 = vmatmul.mubr.f32.gmra.mrb[8].mxu1 %v6396_v24  ;;  %2053 = vmatmul.mubr.f32.gmra.mrb[22].mxu0 %v6396_v24  ;;  %v1124_v1 = vrot.slane %v1037_v18, 1  ;;  %v1246_v28 = vmul.f32 %v5729_v62, %v1037_v18  ;;  %v1287_v55 = vmul.f32 %v5802_v31, %v1037_v18  ;;  %v1430_v56 = vadd.f32 %v6311_v23, %v1387_v2 }
 0x1ce   : > { %v1302_v14 = vadd.f32 %v1286_v20, %v1259_v52  ;;  %v6455_v59 = vmax.f32 %v1472_v48, 0.0  ;;  %v1107_v38 = vsel %vm372_vm0, 0.0, %v1075_v35  ;;  %v6459_v41 = vsel %vm397_vm2, %v1123_v19, 0.0  ;;  %v1019_v48 = vpop.f32.mrb[14].mxu0 }
 0x1cf   : > { %v1303_v21 = vadd.f32 %v1287_v55, %v1260_v11  ;;  %v1171_v10 = vsel %vm4916_vm1, %v6360_v60, %v1107_v38  ;;  %v1220_v50 = vmul.f32 %v5671_v46, %v1036_v61  ;;  %v1473_v4 = vadd.f32 %v1457_v37, %v1430_v56  ;;  %v1021_v60 = vpop.f32.mrb[15].mxu0 }
 0x1d0   : > { %v1345_v57 = vadd.f32 %v1329_v42, %v1302_v14  ;;  %v1261_v52 = vadd.f32 %v1245_v29, %v6350_v40  ;;  %v1331_v23 = vmul.f32 %v5761_v26, %v1171_v10  ;;  %v1372_v35 = vmul.f32 %v5823_v5, %v1171_v10 }
 0x1d1   : > { %v1346_v2 = vadd.f32 %v1330_v13, %v1303_v21  ;;  %v1108_v11 = vsel %vm372_vm0, 0.0, %v1076_v43  ;;  %v1156_v19 = vsel %vm397_vm2, %v1124_v1, 0.0  ;;  %v6470_v20 = vmax.f32 %v1473_v4, 0.0 }
 0x1d2   : > { %v1038_v55 = vmax.f32 %v1019_v48, 0.0  ;;  %v1172_v46 = vsel %vm4916_vm1, %v6376_v0, %v1108_v11  ;;  %v1221_v40 = vmul.f32 %v5673_v33, %v1037_v18  ;;  %v1039_v42 = vmax.f32 %v1021_v60, 0.0  ;;  %v8373_v48 = vld [vmem:[#allocation13_spill] sm:$0xff] }
 0x1d3   : > { %v1262_v13 = vadd.f32 %v1246_v28, %v6357_v58  ;;  %v1332_v37 = vmul.f32 %v5763_v3, %v1172_v46  ;;  %v1373_v10 = vmul.f32 %v5804_v16, %v1172_v46  ;;  %1957 = vmatprep.mubr.f32.mxu1 %v6470_v20  ;;  %2057 = vmatprep.mubr.f32.mxu0 %v6470_v20 }
 0x1d4   : > { %v1077_v4 = vrot.slane %v1038_v55, 7  ;;  %v1125_v61 = vrot.slane %v1038_v55, 1  ;;  %v1247_v29 = vmul.f32 %v5699_v54, %v1038_v55  ;;  %v1288_v43 = vmul.f32 %v5800_v45, %v1038_v55  ;;  %1958 = vmatmul.mubr.f32.gmra.mrb[10].mxu1 %v6455_v59  ;;  %2058 = vmatmul.mubr.f32.gmra.mrb[24].mxu0 %v6455_v59 }
 0x1d5   : > { %v1078_v33 = vrot.slane %v1039_v42, 7  ;;  %v1126_v58 = vrot.slane %v1039_v42, 1  ;;  %v1248_v0 = vmul.f32 %v5729_v62, %v1039_v42  ;;  %v1289_v18 = vmul.f32 %v5802_v31, %v1039_v42 }
 0x1d6   : > { %v1109_v1 = vsel %vm372_vm0, 0.0, %v1077_v4  ;;  %v1157_v28 = vsel %vm397_vm2, %v1125_v61, 0.0  ;;  %v1263_v14 = vadd.f32 %v1247_v29, %v1220_v50  ;;  %v1304_v56 = vadd.f32 %v1288_v43, %v1261_v52 }
 0x1d7   : > { %v1173_v54 = vsel %vm4916_vm1, %v1107_v38, %v1109_v1  ;;  %v1175_v45 = vsel %vm4916_vm1, %v1109_v1, 0.0  ;;  %v1191_v21 = vsel %vm4916_vm1, %v6459_v41, %v1157_v28  ;;  %v1110_v62 = vsel %vm372_vm0, 0.0, %v1078_v33  ;;  %v8374_v1 = vld [vmem:[#allocation17_spill] sm:$0xff] }
 0x1d8   : > { %v1306_v31 = vadd.f32 %v8373_v48, %v1263_v14  ;;  %v1333_v55 = vmul.f32 %v5761_v26, %v1173_v54  ;;  %v1347_v60 = vadd.f32 %v1331_v23, %v1304_v56  ;;  %v1374_v50 = vmul.f32 %v5823_v5, %v1173_v54 }
 0x1d9   : > { %v1376_v52 = vmul.f32 %v5823_v5, %v1175_v45  ;;  %v1460_v38 = vmul.f32 %v5825_v12, %v1191_v21  ;;  %v1158_v46 = vsel %vm397_vm2, %v1126_v58, 0.0  ;;  %v1174_v42 = vsel %vm4916_vm1, %v1108_v11, %v1110_v62 }
 0x1da   : > { %v1390_v4 = vadd.f32 %v1374_v50, %v1347_v60  ;;  %v1176_v61 = vsel %vm4916_vm1, %v1110_v62, 0.0  ;;  %v1192_v29 = vsel %vm4916_vm1, %v1156_v19, %v1158_v46  ;;  %v1264_v26 = vadd.f32 %v1248_v0, %v1221_v40 }
 0x1db   : > { %v1305_v23 = vadd.f32 %v1289_v18, %v1262_v13  ;;  %v1334_v43 = vmul.f32 %v5763_v3, %v1174_v42  ;;  %v1375_v5 = vmul.f32 %v5804_v16, %v1174_v42  ;;  %v1377_v33 = vmul.f32 %v5804_v16, %v1176_v61 }
 0x1dc   : > { %v1307_v58 = vadd.f32 %v8374_v1, %v1264_v26  ;;  %v1461_v14 = vmul.f32 %v5821_v27, %v1192_v29  ;;  %v1190_v11 = vsel %vm4916_vm1, %v6379_v49, %v1156_v19  ;;  %v1389_v56 = vadd.f32 %v1373_v10, %v1346_v2 }
 0x1dd   : > { %v1348_v54 = vadd.f32 %v1332_v37, %v1305_v23  ;;  %v1459_v45 = vmul.f32 %v5821_v27, %v1190_v11  ;;  %v1189_v3 = vsel %vm4916_vm1, %v6363_v47, %v6459_v41  ;;  %v1388_v40 = vadd.f32 %v1372_v35, %v1345_v57 }
 0x1de   : > { %v1432_v16 = vadd.f32 %v6417_v53, %v1389_v56  ;;  %v1458_v13 = vmul.f32 %v5825_v12, %v1189_v3  ;;  %v1418_v0 = vmul.f32 %v5765_v6, %v1190_v11  ;;  %v1417_v18 = vmul.f32 %v5767_v7, %v1189_v3 }
 0x1df   : > { %v1391_v62 = vadd.f32 %v1375_v5, %v1348_v54  ;;  %v1431_v49 = vadd.f32 %v6420_v34, %v1388_v40  ;;  %v1194_v2 = vsel %vm4916_vm1, %v1158_v46, 0.0  ;;  %v1350_v19 = vadd.f32 %v1334_v43, %v1307_v58 }
 0x1e0   : > { %v1475_v37 = vadd.f32 %v1459_v45, %v1432_v16  ;;  %v1433_v10 = vadd.f32 %v1417_v18, %v1390_v4  ;;  %v1420_v47 = vmul.f32 %v5765_v6, %v1192_v29  ;;  %v1463_v57 = vmul.f32 %v5821_v27, %v1194_v2  ;;  %v6613_v2 = vld [vmem:[%s8252_s4 + $0x510] sm:$0xff] }
 0x1e1   : > { %v1474_v53 = vadd.f32 %v1458_v13, %v1431_v49  ;;  %v1434_v41 = vadd.f32 %v1418_v0, %v1391_v62  ;;  %v1393_v35 = vadd.f32 %v1377_v33, %v1350_v19  ;;  %v1193_v48 = vsel %vm4916_vm1, %v1157_v28, 0.0  ;;  %v6618_v19 = vld [vmem:[%s8252_s4 + $0x518] sm:$0xff] }
 0x1e2   : > { %v6533_v60 = vmax.f32 %v1475_v37, 0.0  ;;  %v1476_v50 = vadd.f32 %v1460_v38, %v1433_v10  ;;  %v1349_v34 = vadd.f32 %v1333_v55, %v1306_v31  ;;  %v1419_v42 = vmul.f32 %v5767_v7, %v1191_v21 }
 0x1e3   : > { %v6536_v46 = vmax.f32 %v1474_v53, 0.0  ;;  %v1477_v61 = vadd.f32 %v1461_v14, %v1434_v41  ;;  %v1436_v4 = vadd.f32 %v1420_v47, %v1393_v35  ;;  %v1462_v6 = vmul.f32 %v5825_v12, %v1193_v48  ;;  %v6634_v53 = vld [vmem:[%s8252_s4 + $0x4b0] sm:$0xff]  ;;  %v6639_v41 = vld [vmem:[%s8252_s4 + $0x4b8] sm:$0xff] }
 0x1e4   : > { %1962 = vmatprep.mubr.f32.mxu1 %v6533_v60  ;;  %2062 = vmatprep.mubr.f32.mxu0 %v6533_v60  ;;  %v6541_v27 = vmax.f32 %v1476_v50, 0.0  ;;  %v1392_v29 = vadd.f32 %v1376_v52, %v1349_v34  ;;  %v1519_v28 = vrot.slane %v6429_v15, 7  ;;  %v8375_v38 = vrot.slane %v6396_v24, 7  ;;  %v8376_v34 = vld [vmem:[#allocation20_spill] sm:$0xff] }
 0x1e5   : > { %1963 = vmatmul.mubr.f32.gmra.mrb[12].mxu1 %v6536_v46  ;;  %2063 = vmatmul.mubr.f32.gmra.mrb[26].mxu0 %v6536_v46  ;;  %v6549_v7 = vmax.f32 %v1477_v61, 0.0  ;;  %v1479_v12 = vadd.f32 %v1463_v57, %v1436_v4  ;;  %v1521_v55 = vrot.slane %v6470_v20, 7  ;;  %v1520_v23 = vrot.slane %v6455_v59, 7  ;;  %v6659_v4 = vld [vmem:[%s8252_s4 + $0x430] sm:$0xff] }
 0x1e6   : > { %v1550_v31 = vsel %vm372_vm0, 0.0, %v8375_v38  ;;  %v1435_v52 = vadd.f32 %v1419_v42, %v1392_v29  ;;  %v1551_v26 = vsel %vm372_vm0, 0.0, %v1519_v28  ;;  %v1523_v43 = vrot.slane %v6533_v60, 7  ;;  %v8377_v42 = vld [vmem:[#allocation19_spill] sm:$0xff] }
 0x1e7   : > { %v6554_v21 = vsel %vm4916_vm1, %v6426_v25, %v1550_v31  ;;  %1967 = vmatprep.mubr.f32.mxu1 %v6549_v7  ;;  %2067 = vmatprep.mubr.f32.mxu0 %v6549_v7  ;;  %v6562_v5 = vmax.f32 %v1479_v12, 0.0  ;;  %v6567_v25 = vsel %vm4916_vm1, %v6432_v30, %v1551_v26  ;;  %v1553_v33 = vsel %vm372_vm0, 0.0, %v1521_v55  ;;  %v8380_v12 = vld [vmem:[#allocation23_spill] sm:$0xff] }
 0x1e8   : > { %v1522_v1 = vrot.slane %v6536_v46, 7  ;;  %v1478_v58 = vadd.f32 %v1462_v6, %v1435_v52  ;;  %v6573_v14 = vsel %vm4916_vm1, %v1551_v26, %v1553_v33  ;;  %v1552_v11 = vsel %vm372_vm0, 0.0, %v1520_v23  ;;  %v6664_v6 = vld [vmem:[%s8252_s4 + $0x438] sm:$0xff] }
 0x1e9   : > { %v1555_v56 = vsel %vm372_vm0, 0.0, %v1523_v43  ;;  %1968 = vmatmul.mubr.f32.gmra.mrb[14].mxu1 %v6541_v27  ;;  %2068 = vmatmul.mubr.f32.gmra.mrb[28].mxu0 %v6541_v27  ;;  %v6581_v30 = vsel %vm4916_vm1, %v1550_v31, %v1552_v11  ;;  %v1525_v3 = vrot.slane %v6549_v7, 7  ;;  %v1524_v13 = vrot.slane %v6541_v27, 7  ;;  %v8379_v31 = vld [vmem:[#allocation24_spill] sm:$0xff] }
 0x1ea   : > { %v6585_v54 = vsel %vm4916_vm1, %v1553_v33, %v1555_v56  ;;  %v1554_v45 = vsel %vm372_vm0, 0.0, %v1522_v1  ;;  %2072 = vmatprep.mubr.f32.mxu0 %v6562_v5  ;;  %2142 = vmatprep.mubr.f32.mxu1 %v6210_v36  ;;  %v6591_v40 = vmax.f32 %v1478_v58, 0.0  ;;  %v1527_v0 = vrot.slane %v6562_v5, 7  ;;  %v1825_v33 = vld [vmem:[%s8252_s4 + $0x5a8] sm:$0xff]  ;;  %v6707_v1 = vld [vmem:[%s8252_s4 + $0x520] sm:$0xff] }
 0x1eb   : > { %v6595_v16 = vsel %vm4916_vm1, %v1552_v11, %v1554_v45  ;;  %v1557_v18 = vsel %vm372_vm0, 0.0, %v1525_v3  ;;  %v6604_v62 = vsel %vm4916_vm1, %v6142_v39, %v6345_v17  ;;  %v1562_v36 = vrot.slane %v6212_v44, 1  ;;  %v6722_v3 = vld [vmem:[%s8252_s4 + $0x528] sm:$0xff] }
 0x1ec   : > { %v1565_v49 = vrot.slane %v6335_v8, 1  ;;  %v6622_v37 = vsel %vm4916_vm1, %v1555_v56, %v1557_v18  ;;  %v1556_v10 = vsel %vm372_vm0, 0.0, %v1524_v13  ;;  %v6626_v47 = vsel %vm372_vm0, 0.0, %v1527_v0  ;;  %v6727_v13 = vld [vmem:[%s8252_s4 + $0x4c0] sm:$0xff] }
 0x1ed   : > { %v1526_v57 = vrot.slane %v6591_v40, 7  ;;  %2073 = vmatmul.mubr.f32.gmra.mrb[30].mxu0 %v6591_v40  ;;  %2143 = vmatmul.mubr.f32.vlgmr.msra.gmra.mrb[16].mxu1 %v6212_v44  ;;  %v6643_v35 = vsel %vm4916_vm1, %v1554_v45, %v1556_v10  ;;  %v6648_v48 = vsel %vm4916_vm1, %v1557_v18, %v6626_v47  ;;  %v1594_v44 = vsel %vm397_vm2, %v1562_v36, 0.0  ;;  %v4020_v36 = vpop.f32.mrb[0].mxu1 }
 0x1ee   : > { %v1597_v50 = vsel %vm397_vm2, %v1565_v49, 0.0  ;;  %v8378_v61 = vpack.c.bf16 %v8376_v34, %v8377_v42  ;;  %2147 = vmatprep.mubr.f32.mxu1 %v6335_v8  ;;  %v6672_v28 = vsel %vm4916_vm1, %v6231_v51, %v1594_v44  ;;  %v1564_v38 = vrot.slane %v6294_v22, 1  ;;  %3941 = vmatprep.mubr.msk.f32.mxu0 %vm3940_vm13, %v6139_v32  ;;  %v1824_v32 = vld [vmem:[%s8252_s4 + $0x5a0] sm:$0xff]  ;;  %v4021_v34 = vpop.f32.mrb[1].mxu1 }
 0x1ef   : > { %v6667_v29 = vsel %vm372_vm0, 0.0, %v1526_v57  ;;  %v6677_v8 = vsel %vm4916_vm1, %v6345_v17, %v1597_v50  ;;  %v8381_v55 = vpack.c.bf16 %v8379_v31, %v8380_v12  ;;  %v4612_v52 = vpack.c.bf16 %v6618_v19, %v6613_v2  ;;  %v8382_v49 = vld [vmem:[#allocation26_spill] sm:$0xff]  ;;  %v8383_v2 = vld [vmem:[#allocation25_spill] sm:$0xff] }
 0x1f0   : > { %4577 = vmatpush3.bf16.msra.mxu1 %v8378_v61  ;;  %v6692_v26 = vsel %vm4916_vm1, %v1556_v10, %v6667_v29  ;;  %v1567_v17 = vrot.slane %v6429_v15, 1  ;;  %v1566_v23 = vrot.slane %v6396_v24, 1  ;;  %v4586_v43 = vpack.c.bf16 %v6639_v41, %v6634_v53  ;;  %v6747_v10 = vld [vmem:[%s8252_s4 + $0x5b0] sm:$0xff]  ;;  %v1827_v57 = vld [vmem:[%s8252_s4 + $0x5b8] sm:$0xff]  ;;  %v8385_v42 = vld [vmem:[#allocation2_spill] sm:$0xff] }
 0x1f1   : > { %4579 = vmatprep.subr.bf16.mxu1 %v8381_v55  ;;  %v1596_v58 = vsel %vm397_vm2, %v1564_v38, 0.0  ;;  %v1569_v11 = vrot.slane %v6470_v20, 1  ;;  %v1568_v56 = vrot.slane %v6455_v59, 1  ;;  %2148 = vmatmul.mubr.f32.gmra.mrb[18].mxu1 %v6294_v22  ;;  %v4588_v45 = vpack.c.bf16 %v6664_v6, %v6659_v4  ;;  %v6732_v22 = vld [vmem:[%s8252_s4 + $0x4c8] sm:$0xff]  ;;  %v8386_v61 = vld [vmem:[#allocation30_spill] sm:$0xff]  ;;  %v8387_v38 = vld [vmem:[#allocation29_spill] sm:$0xff] }
 0x1f2   : > { %3943 = vmatmul.mubr.msk.f32.vlgmr.msra.gmra.mrb[32].mxu0 %vm3940_vm13, %v6224_v63  ;;  %v6736_v63 = vsel %vm4916_vm1, %v1594_v44, %v1596_v58  ;;  %v1599_v0 = vsel %vm397_vm2, %v1567_v17, 0.0  ;;  %v1598_v18 = vsel %vm397_vm2, %v1566_v23, 0.0  ;;  %v8384_v19 = vpack.c.bf16 %v8382_v49, %v8383_v2  ;;  %2152 = vmatprep.mubr.f32.mxu1 %v6429_v15  ;;  %v8389_v23 = vld [vmem:[#allocation32_spill] sm:$0xff]  ;;  %v8393_v49 = vld [vmem:[#allocation35_spill] sm:$0xff] }
 0x1f3   : > { %v6754_v53 = vsel %vm4916_vm1, %v1597_v50, %v1599_v0  ;;  %v6758_v41 = vsel %vm4916_vm1, %v1596_v58, %v1598_v18  ;;  %v1601_v44 = vsel %vm397_vm2, %v1569_v11, 0.0  ;;  %v1600_v15 = vsel %vm397_vm2, %v1568_v56, 0.0  ;;  %2252 = vmatprep.mubr.f32.mxu0 %v8385_v42  ;;  %v8390_v58 = vld [vmem:[#allocation31_spill] sm:$0xff]  ;;  %v8392_v56 = vld [vmem:[#allocation36_spill] sm:$0xff] }
 0x1f4   : > { %4581 = vmatpush3.bf16.msra.mxu1 %v8384_v19  ;;  %v8388_v31 = vpack.c.bf16 %v8386_v61, %v8387_v38  ;;  %v4614_v12 = vpack.c.bf16 %v1825_v33, %v1824_v32  ;;  %v6768_v50 = vsel %vm4916_vm1, %v1599_v0, %v1601_v44  ;;  %v6772_v55 = vsel %vm4916_vm1, %v1598_v18, %v1600_v15  ;;  %v8395_v19 = vld [vmem:[#allocation4_spill] sm:$0xff]  ;;  %v1813_v6 = vld [vmem:[%s8252_s4 + $0x548] sm:$0xff] }
 0x1f5   : > { %v1571_v17 = vrot.slane %v6533_v60, 1  ;;  %v8391_v11 = vpack.c.bf16 %v8389_v23, %v8390_v58  ;;  %v8394_v2 = vpack.c.bf16 %v8392_v56, %v8393_v49  ;;  %v4616_v32 = vpack.c.bf16 %v6722_v3, %v6707_v1  ;;  %2153 = vmatmul.mubr.f32.gmra.mrb[20].mxu1 %v6396_v24  ;;  %v8396_v1 = vld [vmem:[#allocation34_spill] sm:$0xff]  ;;  %v8397_v3 = vld [vmem:[#allocation33_spill] sm:$0xff]  ;;  %v1810_v49 = vld [vmem:[%s8252_s4 + $0x530] sm:$0xff] }
 0x1f6   : > { %4609 = vmatpush3.bf16.msra.mxu0 %v8388_v31  ;;  %v4590_v33 = vpack.c.bf16 %v6732_v22, %v6727_v13  ;;  %v1570_v0 = vrot.slane %v6536_v46, 1  ;;  %v1573_v18 = vrot.slane %v6549_v7, 1  ;;  %v4618_v61 = vpack.c.bf16 %v1827_v57, %v6747_v10  ;;  %2157 = vmatprep.mubr.f32.mxu1 %v6470_v20  ;;  %v8399_v57 = vld [vmem:[#allocation6_spill] sm:$0xff]  ;;  %v1781_v20 = vld [vmem:[%s8252_s4 + $0x448] sm:$0xff] }
 0x1f7   : > { %4583 = vmatprep.subr.bf16.mxu1 %v8391_v11  ;;  %4611 = vmatprep.subr.bf16.mxu0 %v8394_v2  ;;  %v1603_v38 = vsel %vm397_vm2, %v1571_v17, 0.0  ;;  %v1572_v31 = vrot.slane %v6541_v27, 1  ;;  %v1575_v23 = vrot.slane %v6562_v5, 1  ;;  %v8398_v58 = vpack.c.bf16 %v8396_v1, %v8397_v3  ;;  %v1780_v17 = vld [vmem:[%s8252_s4 + $0x440] sm:$0xff]  ;;  %v1798_v2 = vld [vmem:[%s8252_s4 + $0x4d0] sm:$0xff]  ;;  %v1829_v1 = vld [vmem:[%s8252_s4 + $0x5c8] sm:$0xff] }
 0x1f8   : > { %2253 = vmatmul.mubr.f32.gmra.mrb[34].mxu0 %v8395_v19  ;;  %v6799_v13 = vsel %vm4916_vm1, %v1601_v44, %v1603_v38  ;;  %v1602_v24 = vsel %vm397_vm2, %v1570_v0, 0.0  ;;  %v1605_v22 = vsel %vm397_vm2, %v1573_v18, 0.0  ;;  %v1574_v10 = vrot.slane %v6591_v40, 1  ;;  %v1782_v3 = vld [vmem:[%s8252_s4 + $0x450] sm:$0xff] }
 0x1f9   : > { %4585 = vmatpush3.bf16.msra.mxu1 %v8398_v58  ;;  %2257 = vmatprep.mubr.f32.mxu0 %v8399_v57  ;;  %v6813_v44 = vsel %vm4916_vm1, %v1600_v15, %v1602_v24  ;;  %v6817_v11 = vsel %vm4916_vm1, %v1603_v38, %v1605_v22  ;;  %v1604_v56 = vsel %vm397_vm2, %v1572_v31, 0.0  ;;  %v1811_v15 = vld [vmem:[%s8252_s4 + $0x538] sm:$0xff]  ;;  %v6844_v18 = vadd.f32 %v4021_v34, %v4020_v36  ;;  %v8400_v38 = vld [vmem:[#allocation3_spill] sm:$0xff] }
 0x1fa   : > { %4613 = vmatpush3.bf16.msra.mxu0 %v4612_v52  ;;  %v6821_v52 = vsel %vm397_vm2, %v1575_v23, 0.0  ;;  %4587 = vmatprep.subr.bf16.mxu1 %v4586_v43  ;;  %v6834_v0 = vsel %vm4916_vm1, %v1602_v24, %v1604_v56  ;;  %v1799_v31 = vld [vmem:[%s8252_s4 + $0x4d8] sm:$0xff]  ;;  %v1828_v23 = vld [vmem:[%s8252_s4 + $0x5c0] sm:$0xff]  ;;  %v4620_v34 = vpack.c.bf16 %v1811_v15, %v1810_v49  ;;  %v1802_v15 = vld [vmem:[%s8252_s4 + $0x4f0] sm:$0xff] }
 0x1fb   : > { %4615 = vmatprep.subr.bf16.mxu0 %v4614_v12  ;;  %v6839_v43 = vsel %vm4916_vm1, %v1605_v22, %v6821_v52  ;;  %v6842_v12 = vsel %vm397_vm2, %v1574_v10, 0.0  ;;  %2158 = vmatmul.mubr.f32.gmra.mrb[22].mxu1 %v6455_v59  ;;  %v4592_v59 = vpack.c.bf16 %v1781_v20, %v1780_v17  ;;  %v1783_v58 = vld [vmem:[%s8252_s4 + $0x458] sm:$0xff]  ;;  %v4594_v24 = vpack.c.bf16 %v1799_v31, %v1798_v2  ;;  %v1784_v10 = vld [vmem:[%s8252_s4 + $0x460] sm:$0xff]  ;;  %v1785_v17 = vld [vmem:[%s8252_s4 + $0x468] sm:$0xff] }
 0x1fc   : > { %2258 = vmatmul.mubr.f32.gmra.mrb[36].mxu0 %v8400_v38  ;;  %v6860_v36 = vsel %vm4916_vm1, %v1604_v56, %v6842_v12  ;;  %2162 = vmatprep.mubr.f32.mxu1 %v6533_v60  ;;  %v4622_v4 = vpack.c.bf16 %v1829_v1, %v1828_v23  ;;  %v1812_v60 = vld [vmem:[%s8252_s4 + $0x540] sm:$0xff]  ;;  %v4596_v22 = vpack.c.bf16 %v1783_v58, %v1782_v3  ;;  %v1815_v49 = vld [vmem:[%s8252_s4 + $0x558] sm:$0xff]  ;;  %v1833_v23 = vld [vmem:[%s8252_s4 + $0x5e8] sm:$0xff] }
 0x1fd   : > { %4589 = vmatpush3.bf16.msra.mxu1 %v4588_v45  ;;  %2262 = vmatprep.mubr.f32.mxu0 %v6567_v25  ;;  %v1800_v45 = vld [vmem:[%s8252_s4 + $0x4e0] sm:$0xff]  ;;  %v1803_v2 = vld [vmem:[%s8252_s4 + $0x4f8] sm:$0xff]  ;;  %v4600_v1 = vpack.c.bf16 %v1785_v17, %v1784_v10  ;;  %v1818_v17 = vld [vmem:[%s8252_s4 + $0x570] sm:$0xff] }
 0x1fe   : > { %4617 = vmatpush3.bf16.msra.mxu0 %v4616_v32  ;;  %4591 = vmatprep.subr.bf16.mxu1 %v4590_v33  ;;  %v1801_v32 = vld [vmem:[%s8252_s4 + $0x4e8] sm:$0xff]  ;;  %v1830_v33 = vld [vmem:[%s8252_s4 + $0x5d0] sm:$0xff]  ;;  %v1832_v31 = vld [vmem:[%s8252_s4 + $0x5e0] sm:$0xff]  ;;  %v4602_v3 = vpack.c.bf16 %v1803_v2, %v1802_v15 }
 0x1ff   : > { %4619 = vmatprep.subr.bf16.mxu0 %v4618_v61  ;;  %2163 = vmatmul.mubr.f32.gmra.mrb[24].mxu1 %v6536_v46  ;;  %v1831_v61 = vld [vmem:[%s8252_s4 + $0x5d8] sm:$0xff]  ;;  %v4624_v46 = vpack.c.bf16 %v1813_v6, %v1812_v60  ;;  %v4598_v20 = vpack.c.bf16 %v1801_v32, %v1800_v45  ;;  %v4630_v58 = vpack.c.bf16 %v1833_v23, %v1832_v31  ;;  %v1853_v60 = vld [vmem:[%s8252_s4 + $0x688] sm:$0xff]  ;;  %v1834_v6 = vld [vmem:[%s8252_s4 + $0x5f0] sm:$0xff] }
 0x200   : > { %2263 = vmatmul.mubr.f32.gmra.mrb[38].mxu0 %v6554_v21  ;;  %2167 = vmatprep.mubr.f32.mxu1 %v6549_v7  ;;  %v4626_v56 = vpack.c.bf16 %v1831_v61, %v1830_v33  ;;  %v1814_v7 = vld [vmem:[%s8252_s4 + $0x550] sm:$0xff]  ;;  %v1835_v45 = vld [vmem:[%s8252_s4 + $0x5f8] sm:$0xff]  ;;  %v1836_v61 = vld [vmem:[%s8252_s4 + $0x600] sm:$0xff] }
 0x201   : > { %4593 = vmatpush3.bf16.msra.mxu1 %v4592_v59  ;;  %2267 = vmatprep.mubr.f32.mxu0 %v6573_v14  ;;  %v1786_v59 = vld [vmem:[%s8252_s4 + $0x470] sm:$0xff]  ;;  %v4634_v10 = vpack.c.bf16 %v1835_v45, %v1834_v6  ;;  %v1839_v31 = vld [vmem:[%s8252_s4 + $0x618] sm:$0xff] }
 0x202   : > { %4621 = vmatpush3.bf16.msra.mxu0 %v4620_v34  ;;  %4595 = vmatprep.subr.bf16.mxu1 %v4594_v24  ;;  %v1787_v34 = vld [vmem:[%s8252_s4 + $0x478] sm:$0xff]  ;;  %v1817_v24 = vld [vmem:[%s8252_s4 + $0x568] sm:$0xff]  ;;  %v1838_v2 = vld [vmem:[%s8252_s4 + $0x610] sm:$0xff] }
 0x203   : > { %4623 = vmatprep.subr.bf16.mxu0 %v4622_v4  ;;  %2168 = vmatmul.mubr.f32.gmra.mrb[26].mxu1 %v6541_v27  ;;  %v4628_v27 = vpack.c.bf16 %v1815_v49, %v1814_v7  ;;  %v1852_v4 = vld [vmem:[%s8252_s4 + $0x680] sm:$0xff]  ;;  %v4604_v32 = vpack.c.bf16 %v1787_v34, %v1786_v59  ;;  %v1855_v7 = vld [vmem:[%s8252_s4 + $0x698] sm:$0xff]  ;;  %v1841_v59 = vld [vmem:[%s8252_s4 + $0x628] sm:$0xff] }
 0x204   : > { %2268 = vmatmul.mubr.f32.gmra.mrb[40].mxu0 %v6581_v30  ;;  %2172 = vmatprep.mubr.f32.mxu1 %v6562_v5  ;;  %v1816_v5 = vld [vmem:[%s8252_s4 + $0x560] sm:$0xff]  ;;  %v1862_v6 = vld [vmem:[%s8252_s4 + $0x6d0] sm:$0xff] }
 0x205   : > { %4597 = vmatpush3.bf16.msra.mxu1 %v4596_v22  ;;  %2272 = vmatprep.mubr.f32.mxu0 %v6585_v54  ;;  %v4632_v33 = vpack.c.bf16 %v1817_v24, %v1816_v5  ;;  %v1837_v22 = vld [vmem:[%s8252_s4 + $0x608] sm:$0xff] }
 0x206   : > { %4625 = vmatpush3.bf16.msra.mxu0 %v4624_v46  ;;  %4599 = vmatprep.subr.bf16.mxu1 %v4598_v20  ;;  %v4638_v46 = vpack.c.bf16 %v1853_v60, %v1852_v4  ;;  %v1819_v20 = vld [vmem:[%s8252_s4 + $0x578] sm:$0xff]  ;;  %v4640_v49 = vpack.c.bf16 %v1837_v22, %v1836_v61  ;;  %v1845_v4 = vld [vmem:[%s8252_s4 + $0x648] sm:$0xff] }
 0x207   : > { %4627 = vmatprep.subr.bf16.mxu0 %v4626_v56  ;;  %2173 = vmatmul.mubr.f32.gmra.mrb[28].mxu1 %v6591_v40  ;;  %v8401_v40 = vmov 0.0   ;;  %v1854_v56 = vld [vmem:[%s8252_s4 + $0x690] sm:$0xff]  ;;  %v4636_v15 = vpack.c.bf16 %v1819_v20, %v1818_v17  ;;  %v1849_v22 = vld [vmem:[%s8252_s4 + $0x668] sm:$0xff]  ;;  %v1851_v20 = vld [vmem:[%s8252_s4 + $0x678] sm:$0xff] }
 0x208   : > { %2273 = vmatmul.mubr.f32.gmra.mrb[42].mxu0 %v6595_v16  ;;  %2177 = vmatprep.mubr.f32.mxu1 %v8401_v40  ;;  %v4642_v23 = vpack.c.bf16 %v1855_v7, %v1854_v56 }
 0x209   : > { %4601 = vmatpush3.bf16.msra.mxu1 %v4600_v1  ;;  %2277 = vmatprep.mubr.f32.mxu0 %v6622_v37  ;;  %v1857_v1 = vld [vmem:[%s8252_s4 + $0x6a8] sm:$0xff] }
 0x20a   : > { %4629 = vmatpush3.bf16.msra.mxu0 %v4628_v27  ;;  %4603 = vmatprep.subr.bf16.mxu1 %v4602_v3  ;;  %v4644_v27 = vpack.c.bf16 %v1839_v31, %v1838_v2 }
 0x20b   : > { %4631 = vmatprep.subr.bf16.mxu0 %v4630_v58  ;;  %2178 = vmatmul.mubr.f32.gmra.mrb[30].mxu1 %v8401_v40  ;;  %v1843_v58 = vld [vmem:[%s8252_s4 + $0x638] sm:$0xff] }
 0x20c   : > { %2278 = vmatmul.mubr.f32.gmra.mrb[44].mxu0 %v6643_v35  ;;  %2352 = vmatprep.mubr.f32.mxu1 %v8385_v42  ;;  %v1856_v42 = vld [vmem:[%s8252_s4 + $0x6a0] sm:$0xff] }
 0x20d   : > { %4605 = vmatpush3.bf16.msra.mxu1 %v4604_v32  ;;  %2282 = vmatprep.mubr.f32.mxu0 %v6648_v48  ;;  %v4646_v34 = vpack.c.bf16 %v1857_v1, %v1856_v42  ;;  %v1847_v32 = vld [vmem:[%s8252_s4 + $0x658] sm:$0xff] }
 0x20e   : > { %4633 = vmatpush3.bf16.msra.mxu0 %v4632_v33  ;;  %4639 = vmatprep.subr.bf16.mxu1 %v4638_v46  ;;  %v1864_v33 = vld [vmem:[%s8252_s4 + $0x6e0] sm:$0xff] }
 0x20f   : > { %4635 = vmatprep.subr.bf16.mxu0 %v4634_v10  ;;  %v1866_v10 = vld [vmem:[%s8252_s4 + $0x6f0] sm:$0xff] }
 0x210   : > { %2283 = vmatmul.mubr.f32.gmra.mrb[46].mxu0 %v6692_v26  ;;  %2353 = vmatmul.mubr.f32.vlgmr.msra.gmra.mrb[32].mxu1 %v8395_v19  ;;  %v1840_v19 = vld [vmem:[%s8252_s4 + $0x620] sm:$0xff] }
 0x211   : > { %4641 = vmatpush3.bf16.msra.mxu1 %v4640_v49  ;;  %2357 = vmatprep.mubr.f32.mxu1 %v8399_v57  ;;  %v1858_v57 = vld [vmem:[%s8252_s4 + $0x6b0] sm:$0xff]  ;;  %v4648_v3 = vpack.c.bf16 %v1841_v59, %v1840_v19 }
 0x212   : > { %4637 = vmatpush3.bf16.msra.mxu0 %v4636_v15  ;;  %3947 = vmatprep.mubr.msk.f32.mxu0 %vm3940_vm13, %v6142_v39  ;;  %v1859_v39 = vld [vmem:[%s8252_s4 + $0x6b8] sm:$0xff] }
 0x213   : > { %4643 = vmatprep.subr.bf16.mxu1 %v4642_v23  ;;  %v4650_v5 = vpack.c.bf16 %v1859_v39, %v1858_v57 }
 0x214   : > { %2358 = vmatmul.mubr.f32.gmra.mrb[34].mxu1 %v8400_v38  ;;  %v1842_v38 = vld [vmem:[%s8252_s4 + $0x630] sm:$0xff] }
 0x215   : > { %3949 = vmatmul.mubr.msk.f32.vlgmr.msra.gmra.mrb[48].mxu0 %vm3940_vm13, %v6231_v51  ;;  %4645 = vmatpush3.bf16.msra.mxu1 %v4644_v27  ;;  %v1860_v51 = vld [vmem:[%s8252_s4 + $0x6c0] sm:$0xff]  ;;  %v4652_v24 = vpack.c.bf16 %v1843_v58, %v1842_v38 }
 0x216   : > { %2362 = vmatprep.mubr.f32.mxu1 %v6567_v25  ;;  %2462 = vmatprep.mubr.f32.mxu0 %v6604_v62  ;;  %v1861_v25 = vld [vmem:[%s8252_s4 + $0x6c8] sm:$0xff] }
 0x217   : > { %4647 = vmatprep.subr.bf16.mxu1 %v4646_v34  ;;  %v4654_v60 = vpack.c.bf16 %v1861_v25, %v1860_v51 }
 0x218   : > { %2363 = vmatmul.mubr.f32.gmra.mrb[36].mxu1 %v6554_v21  ;;  %v1844_v21 = vld [vmem:[%s8252_s4 + $0x640] sm:$0xff] }
 0x219   : > { %2463 = vmatmul.mubr.f32.gmra.mrb[50].mxu0 %v6672_v28  ;;  %4649 = vmatpush3.bf16.msra.mxu1 %v4648_v3  ;;  %v4656_v45 = vpack.c.bf16 %v1845_v4, %v1844_v21 }
 0x21a   : > { %2367 = vmatprep.mubr.f32.mxu1 %v6573_v14  ;;  %2467 = vmatprep.mubr.f32.mxu0 %v6677_v8  ;;  %v1863_v14 = vld [vmem:[%s8252_s4 + $0x6d8] sm:$0xff] }
 0x21b   : > { %4651 = vmatprep.subr.bf16.mxu1 %v4650_v5  ;;  %v4658_v40 = vpack.c.bf16 %v1863_v14, %v1862_v6 }
 0x21c   : > { %2368 = vmatmul.mubr.f32.gmra.mrb[38].mxu1 %v6581_v30  ;;  %v1846_v30 = vld [vmem:[%s8252_s4 + $0x650] sm:$0xff] }
 0x21d   : > { %2468 = vmatmul.mubr.f32.gmra.mrb[52].mxu0 %v6736_v63  ;;  %4653 = vmatpush3.bf16.msra.mxu1 %v4652_v24  ;;  %v4660_v61 = vpack.c.bf16 %v1847_v32, %v1846_v30 }
 0x21e   : > { %2372 = vmatprep.mubr.f32.mxu1 %v6585_v54  ;;  %2472 = vmatprep.mubr.f32.mxu0 %v6754_v53  ;;  %v1865_v54 = vld [vmem:[%s8252_s4 + $0x6e8] sm:$0xff] }
 0x21f   : > { %4655 = vmatprep.subr.bf16.mxu1 %v4654_v60  ;;  %v4662_v46 = vpack.c.bf16 %v1865_v54, %v1864_v33 }
 0x220   : > { %2373 = vmatmul.mubr.f32.gmra.mrb[40].mxu1 %v6595_v16  ;;  %v1848_v16 = vld [vmem:[%s8252_s4 + $0x660] sm:$0xff] }
 0x221   : > { %2473 = vmatmul.mubr.f32.gmra.mrb[54].mxu0 %v6758_v41  ;;  %4657 = vmatpush3.bf16.msra.mxu1 %v4656_v45  ;;  %v4664_v17 = vpack.c.bf16 %v1849_v22, %v1848_v16 }
 0x222   : > { %2377 = vmatprep.mubr.f32.mxu1 %v6622_v37  ;;  %2477 = vmatprep.mubr.f32.mxu0 %v6768_v50  ;;  %v1867_v37 = vld [vmem:[%s8252_s4 + $0x6f8] sm:$0xff] }
 0x223   : > { %4659 = vmatprep.subr.bf16.mxu1 %v4658_v40  ;;  %v4666_v56 = vpack.c.bf16 %v1867_v37, %v1866_v10 }
 0x224   : > { %2378 = vmatmul.mubr.f32.gmra.mrb[42].mxu1 %v6643_v35  ;;  %v1850_v35 = vld [vmem:[%s8252_s4 + $0x670] sm:$0xff] }
 0x225   : > { %2478 = vmatmul.mubr.f32.gmra.mrb[56].mxu0 %v6772_v55  ;;  %4661 = vmatpush3.bf16.msra.mxu1 %v4660_v61  ;;  %v4668_v7 = vpack.c.bf16 %v1851_v20, %v1850_v35 }
 0x226   : > { %2382 = vmatprep.mubr.f32.mxu1 %v6648_v48  ;;  %2482 = vmatprep.mubr.f32.mxu0 %v6799_v13 }
 0x227   : > { %4663 = vmatprep.subr.bf16.mxu1 %v4662_v46 }
 0x228   : > { %2383 = vmatmul.mubr.f32.gmra.mrb[44].mxu1 %v6692_v26 }
 0x229   : > { %2483 = vmatmul.mubr.f32.gmra.mrb[58].mxu0 %v6813_v44  ;;  %4665 = vmatpush3.bf16.msra.mxu1 %v4664_v17 }
 0x22a   : > { %3944 = vmatprep.mubr.msk.f32.mxu1 %vm4916_vm1, %v6626_v47  ;;  %2487 = vmatprep.mubr.f32.mxu0 %v6817_v11 }
 0x22b   : > { %4667 = vmatprep.subr.bf16.mxu1 %v4666_v56 }
 0x22c   : > { %3945 = vmatmul.mubr.msk.f32.gmra.mrb[46].mxu1 %vm4916_vm1, %v6667_v29 }
 0x22d   : > { %2488 = vmatmul.mubr.f32.gmra.mrb[60].mxu0 %v6834_v0  ;;  %4669 = vmatpush3.bf16.msra.mxu1 %v4668_v7 }
 0x22e   : > { %2492 = vmatprep.mubr.f32.mxu0 %v6839_v43  ;;  %2562 = vmatprep.mubr.f32.mxu1 %v6604_v62 }
 0x230   : > { %2563 = vmatmul.mubr.f32.vlgmr.msra.gmra.mrb[48].mxu1 %v6672_v28 }
 0x231   : > { %2493 = vmatmul.mubr.f32.gmra.mrb[62].mxu0 %v6860_v36  ;;  %2567 = vmatprep.mubr.f32.mxu1 %v6677_v8 }
 0x234   : > { %2568 = vmatmul.mubr.f32.gmra.mrb[50].mxu1 %v6736_v63 }
 0x235   : > { %2572 = vmatprep.mubr.f32.mxu1 %v6754_v53 }
 0x238   : > { %2573 = vmatmul.mubr.f32.gmra.mrb[52].mxu1 %v6758_v41 }
 0x239   : > { %2577 = vmatprep.mubr.f32.mxu1 %v6768_v50 }
 0x23c   : > { %2578 = vmatmul.mubr.f32.gmra.mrb[54].mxu1 %v6772_v55 }
 0x23d   : > { %2582 = vmatprep.mubr.f32.mxu1 %v6799_v13 }
 0x240   : > { %2583 = vmatmul.mubr.f32.gmra.mrb[56].mxu1 %v6813_v44 }
 0x241   : > { %2587 = vmatprep.mubr.f32.mxu1 %v6817_v11 }
 0x244   : > { %2588 = vmatmul.mubr.f32.gmra.mrb[58].mxu1 %v6834_v0 }
 0x245   : > { %2592 = vmatprep.mubr.f32.mxu1 %v6839_v43 }
 0x248   : > { %2593 = vmatmul.mubr.f32.gmra.mrb[60].mxu1 %v6860_v36 }
 0x249   : > { %3950 = vmatprep.mubr.msk.f32.mxu1 %vm4916_vm1, %v6821_v52 }
 0x24c   : > { %3951 = vmatmul.mubr.msk.f32.gmra.mrb[62].mxu1 %vm4916_vm1, %v6842_v12 }
 0x275   : > { %v4023_v62 = vpop.f32.mrb[2].mxu1  ;;  %v4076_v47 = vpop.f32.mrb[16].mxu0 }
 0x276   : > { %v4024_v48 = vpop.f32.mrb[3].mxu1  ;;  %v4077_v29 = vpop.f32.mrb[17].mxu0 }
 0x277   : > { %v4025_v28 = vadd.f32 %v4024_v48, %v4023_v62  ;;  %v4078_v8 = vadd.f32 %v4077_v29, %v4076_v47 }
 0x279   : > { %v2040_v26 = vadd.f32 %v4078_v8, %v6844_v18 }
 0x283   : > { %v4026_v63 = vpop.f32.mrb[4].mxu1 }
 0x284   : > { %v4079_v53 = vpop.f32.mrb[18].mxu0  ;;  %v4027_v41 = vpop.f32.mrb[5].mxu1 }
 0x285   : > { %v4080_v50 = vpop.f32.mrb[19].mxu0  ;;  %v4028_v55 = vadd.f32 %v4027_v41, %v4026_v63 }
 0x286   : > { %v4081_v13 = vadd.f32 %v4080_v50, %v4079_v53 }
 0x288   : > { %v2045_v44 = vadd.f32 %v4081_v13, %v4025_v28 }
 0x292   : > { %v4029_v11 = vpop.f32.mrb[6].mxu1 }
 0x293   : > { %v4082_v52 = vpop.f32.mrb[20].mxu0  ;;  %v4030_v0 = vpop.f32.mrb[7].mxu1 }
 0x294   : > { %v4083_v43 = vpop.f32.mrb[21].mxu0  ;;  %v4031_v12 = vadd.f32 %v4030_v0, %v4029_v11 }
 0x295   : > { %v4084_v36 = vadd.f32 %v4083_v43, %v4082_v52 }
 0x297   : > { %v2050_v49 = vadd.f32 %v4084_v36, %v4028_v55 }
 0x2a0   : > { %v4032_v15 = vpop.f32.mrb[8].mxu1  ;;  %v4085_v2 = vpop.f32.mrb[22].mxu0 }
 0x2a1   : > { %v4033_v31 = vpop.f32.mrb[9].mxu1  ;;  %v4086_v23 = vpop.f32.mrb[23].mxu0 }
 0x2a2   : > { %v4034_v42 = vadd.f32 %v4033_v31, %v4032_v15  ;;  %v4087_v18 = vadd.f32 %v4086_v23, %v4085_v2 }
 0x2a4   : > { %v2055_v1 = vadd.f32 %v4087_v18, %v4031_v12 }
 0x2a7   : > { %v4035_v27 = vpop.f32.mrb[10].mxu1  ;;  %v4088_v19 = vpop.f32.mrb[24].mxu0 }
 0x2a8   : > { %v4036_v59 = vpop.f32.mrb[11].mxu1  ;;  %v4089_v34 = vpop.f32.mrb[25].mxu0 }
 0x2a9   : > { %v4037_v57 = vadd.f32 %v4036_v59, %v4035_v27  ;;  %v4090_v39 = vadd.f32 %v4089_v34, %v4088_v19 }
 0x2ab   : > { %v2060_v3 = vadd.f32 %v4090_v39, %v4034_v42  ;;  %v3050_v39 = vld [vmem:[%s8254_s6 + $0x88] sm:$0xff] }
 0x2b8   : > { %v4038_v38 = vpop.f32.mrb[12].mxu1  ;;  %v4091_v58 = vpop.f32.mrb[26].mxu0 }
 0x2b9   : > { %v4039_v5 = vpop.f32.mrb[13].mxu1  ;;  %v4092_v51 = vpop.f32.mrb[27].mxu0 }
 0x2ba   : > { %v4040_v25 = vadd.f32 %v4039_v5, %v4038_v38  ;;  %v4093_v24 = vadd.f32 %v4092_v51, %v4091_v58  ;;  %v3034_v58 = vld [vmem:[%s8254_s6 + $0x8] sm:$0xff]  ;;  %v3051_v5 = vld [vmem:[%s8254_s6 + $0x90] sm:$0xff]  ;;  %v3052_v51 = vld [vmem:[%s8254_s6 + $0x98] sm:$0xff] }
 0x2bc   : > { %v7114_v21 = vadd.f32 %v4093_v24, %v4037_v57  ;;  %v4041_v4 = vpop.f32.mrb[14].mxu1  ;;  %v4094_v60 = vpop.f32.mrb[28].mxu0 }
 0x2bd   : > { %v4042_v6 = vpop.f32.mrb[15].mxu1  ;;  %v4095_v14 = vpop.f32.mrb[29].mxu0 }
 0x2be   : > { %v4043_v45 = vadd.f32 %v4042_v6, %v4041_v4  ;;  %v4096_v30 = vadd.f32 %v4095_v14, %v4094_v60 }
 0x2c0   : > { %v7116_v32 = vadd.f32 %v4096_v30, %v4040_v25  ;;  %v4097_v40 = vpop.f32.mrb[30].mxu0  ;;  %v4132_v33 = vpop.f32.mrb[16].mxu1  ;;  %v4828_v25 = vmov 0.0|0.0   ;;  %v3035_v30 = vld [vmem:[%s8254_s6 + $0x10] sm:$0xff] }
 0x2c1   : > { %v4098_v54 = vpop.f32.mrb[31].mxu0  ;;  %v4133_v61 = vpop.f32.mrb[17].mxu1  ;;  %4738 = vmatprep.subr.bf16.mxu1 %v4828_v25 }
 0x2c2   : > { %v4099_v16 = vadd.f32 %v4098_v54, %v4097_v40  ;;  %v4134_v22 = vadd.f32 %v4133_v61, %v4132_v33  ;;  %v3036_v40 = vld [vmem:[%s8254_s6 + $0x18] sm:$0xff]  ;;  %v3053_v33 = vld [vmem:[%s8254_s6 + $0xa0] sm:$0xff]  ;;  %v3054_v61 = vld [vmem:[%s8254_s6 + $0xa8] sm:$0xff] }
 0x2c4   : > { %v7118_v46 = vadd.f32 %v4099_v16, %v4043_v45  ;;  %v2145_v10 = vadd.f32 %v4134_v22, %v2040_v26  ;;  %v4135_v37 = vpop.f32.mrb[18].mxu1  ;;  %v4674_v45 = vpack.c.bf16 %v3052_v51, %v3051_v5  ;;  %v3060_v5 = vld [vmem:[%s8254_s6 + $0xd8] sm:$0xff] }
 0x2c5   : > { %v4188_v17 = vpop.f32.mrb[32].mxu0  ;;  %v4136_v35 = vpop.f32.mrb[19].mxu1 }
 0x2c6   : > { %v4189_v20 = vpop.f32.mrb[33].mxu0  ;;  %v4137_v56 = vadd.f32 %v4136_v35, %v4135_v37  ;;  %v4678_v37 = vpack.c.bf16 %v3054_v61, %v3053_v33  ;;  %v3038_v35 = vld [vmem:[%s8254_s6 + $0x28] sm:$0xff] }
 0x2c7   : > { %v4190_v7 = vadd.f32 %v4189_v20, %v4188_v17  ;;  %v3037_v17 = vld [vmem:[%s8254_s6 + $0x20] sm:$0xff]  ;;  %v3062_v61 = vld [vmem:[%s8254_s6 + $0xe8] sm:$0xff] }
 0x2c8   : > { %v2150_v62 = vadd.f32 %v4137_v56, %v2045_v44  ;;  %v4138_v48 = vpop.f32.mrb[20].mxu1 }
 0x2c9   : > { %v7120_v47 = vadd.f32 %v4190_v7, %v2145_v10  ;;  %v4139_v28 = vpop.f32.mrb[21].mxu1  ;;  %v4676_v10 = vpack.c.bf16 %v3036_v40, %v3035_v30  ;;  %v3043_v30 = vld [vmem:[%s8254_s6 + $0x50] sm:$0xff]  ;;  %v3044_v40 = vld [vmem:[%s8254_s6 + $0x58] sm:$0xff] }
 0x2ca   : > { %v4140_v63 = vadd.f32 %v4139_v28, %v4138_v48  ;;  %v3055_v48 = vld [vmem:[%s8254_s6 + $0xb0] sm:$0xff]  ;;  %v3065_v28 = vld [vmem:[%s8254_s6 + $0x100] sm:$0xff] }
 0x2cb   : > { %v4191_v29 = vpop.f32.mrb[34].mxu0 }
 0x2cc   : > { %v4192_v8 = vpop.f32.mrb[35].mxu0  ;;  %v2155_v41 = vadd.f32 %v4140_v63, %v2050_v49 }
 0x2cd   : > { %v4193_v53 = vadd.f32 %v4192_v8, %v4191_v29  ;;  %v3056_v29 = vld [vmem:[%s8254_s6 + $0xb8] sm:$0xff] }
 0x2ce   : > { %v4141_v55 = vpop.f32.mrb[22].mxu1 }
 0x2cf   : > { %v7122_v50 = vadd.f32 %v4193_v53, %v2150_v62  ;;  %v4194_v26 = vpop.f32.mrb[36].mxu0  ;;  %v4142_v13 = vpop.f32.mrb[23].mxu1 }
 0x2d0   : > { %v4195_v11 = vpop.f32.mrb[37].mxu0  ;;  %v4143_v52 = vadd.f32 %v4142_v13, %v4141_v55  ;;  %v4680_v55 = vpack.c.bf16 %v3038_v35, %v3037_v17  ;;  %v3067_v13 = vld [vmem:[%s8254_s6 + $0x110] sm:$0xff]  ;;  %v4692_v35 = vpack.c.bf16 %v3044_v40, %v3043_v30 }
 0x2d1   : > { %v4196_v0 = vadd.f32 %v4195_v11, %v4194_v26  ;;  %v4682_v11 = vpack.c.bf16 %v3056_v29, %v3055_v48 }
 0x2d2   : > { %v2160_v43 = vadd.f32 %v4143_v52, %v2055_v1  ;;  %v4144_v44 = vpop.f32.mrb[24].mxu1  ;;  %v3049_v1 = vld [vmem:[%s8254_s6 + $0x80] sm:$0xff]  ;;  %v3039_v52 = vld [vmem:[%s8254_s6 + $0x30] sm:$0xff] }
 0x2d3   : > { %v7124_v12 = vadd.f32 %v4196_v0, %v2155_v41  ;;  %v4197_v36 = vpop.f32.mrb[38].mxu0  ;;  %v4145_v15 = vpop.f32.mrb[25].mxu1  ;;  %v4670_v38 = vpack.c.bf16 %v3050_v39, %v3049_v1  ;;  %v3040_v0 = vld [vmem:[%s8254_s6 + $0x38] sm:$0xff]  ;;  %v3042_v1 = vld [vmem:[%s8254_s6 + $0x48] sm:$0xff] }
 0x2d4   : > { %v4198_v2 = vpop.f32.mrb[39].mxu0  ;;  %v4146_v31 = vadd.f32 %v4145_v15, %v4144_v44 }
 0x2d5   : > { %v4199_v23 = vadd.f32 %v4198_v2, %v4197_v36  ;;  %4671 = vmatprep.subr.bf16.mxu0 %v4670_v38 }
 0x2d6   : > { %v2165_v42 = vadd.f32 %v4146_v31, %v2060_v3  ;;  %v4147_v49 = vpop.f32.mrb[26].mxu1  ;;  %v3033_v3 = vld [vmem:[%s8254_s6] sm:$0xff] }
 0x2d7   : > { %v7126_v18 = vadd.f32 %v4199_v23, %v2160_v43  ;;  %v4200_v27 = vpop.f32.mrb[40].mxu0  ;;  %v4148_v19 = vpop.f32.mrb[27].mxu1  ;;  %v4672_v14 = vpack.c.bf16 %v3034_v58, %v3033_v3  ;;  %v3068_v43 = vld [vmem:[%s8254_s6 + $0x118] sm:$0xff]  ;;  %v3057_v31 = vld [vmem:[%s8254_s6 + $0xc0] sm:$0xff]  ;;  %v3058_v23 = vld [vmem:[%s8254_s6 + $0xc8] sm:$0xff] }
 0x2d8   : > { %v4201_v59 = vpop.f32.mrb[41].mxu0  ;;  %v4149_v34 = vadd.f32 %v4148_v19, %v4147_v49  ;;  %v3059_v58 = vld [vmem:[%s8254_s6 + $0xd0] sm:$0xff] }
 0x2d9   : > { %v4202_v57 = vadd.f32 %v4201_v59, %v4200_v27  ;;  %4673 = vmatpush3.bf16.msra.mxu0 %v4672_v14  ;;  %v4684_v59 = vpack.c.bf16 %v3040_v0, %v3039_v52 }
 0x2da   : > { %v2170_v24 = vadd.f32 %v4149_v34, %v7114_v21  ;;  %v4150_v60 = vpop.f32.mrb[28].mxu1  ;;  %4675 = vmatprep.subr.bf16.mxu0 %v4674_v45  ;;  %v4686_v34 = vpack.c.bf16 %v3058_v23, %v3057_v31  ;;  %v4690_v45 = vpack.c.bf16 %v3060_v5, %v3059_v58 }
 0x2db   : > { %v7148_v4 = vadd.f32 %v4202_v57, %v2165_v42  ;;  %v4203_v6 = vpop.f32.mrb[42].mxu0  ;;  %v4151_v54 = vpop.f32.mrb[29].mxu1  ;;  %v7207_v42 = vpack.c.bf16 %v3068_v43, %v3067_v13  ;;  %v3041_v57 = vld [vmem:[%s8254_s6 + $0x40] sm:$0xff] }
 0x2dc   : > { %v4204_v21 = vpop.f32.mrb[43].mxu0  ;;  %v4152_v16 = vadd.f32 %v4151_v54, %v4150_v60  ;;  %v4688_v14 = vpack.c.bf16 %v3042_v1, %v3041_v57 }
 0x2dd   : > { %v4205_v22 = vadd.f32 %v4204_v21, %v4203_v6  ;;  %4677 = vmatpush3.bf16.msra.mxu0 %v4676_v10  ;;  %v3061_v21 = vld [vmem:[%s8254_s6 + $0xe0] sm:$0xff] }
 0x2de   : > { %v2175_v20 = vadd.f32 %v4152_v16, %v7116_v32  ;;  %v4153_v7 = vpop.f32.mrb[30].mxu1  ;;  %v3066_v32 = vld [vmem:[%s8254_s6 + $0x108] sm:$0xff]  ;;  %4679 = vmatprep.subr.bf16.mxu0 %v4678_v37 }
 0x2df   : > { %v7169_v56 = vadd.f32 %v4205_v22, %v2170_v24  ;;  %v4206_v62 = vpop.f32.mrb[44].mxu0  ;;  %v4154_v8 = vpop.f32.mrb[31].mxu1  ;;  %v7183_v26 = vpack.c.bf16 %v3066_v32, %v3065_v28 }
 0x2e0   : > { %v4207_v63 = vpop.f32.mrb[45].mxu0  ;;  %v4155_v53 = vadd.f32 %v4154_v8, %v4153_v7  ;;  %v3045_v7 = vld [vmem:[%s8254_s6 + $0x60] sm:$0xff] }
 0x2e1   : > { %v4208_v41 = vadd.f32 %v4207_v63, %v4206_v62  ;;  %4750 = vmatpush1.bf16.msra.mxu1 %v7183_v26  ;;  %4681 = vmatpush3.bf16.msra.mxu0 %v4680_v55  ;;  %v3046_v62 = vld [vmem:[%s8254_s6 + $0x68] sm:$0xff] }
 0x2e2   : > { %v2180_v44 = vadd.f32 %v4155_v53, %v7118_v46  ;;  %4739 = vmatprep.subr.bf16.mxu1 %v4828_v25  ;;  %4683 = vmatprep.subr.bf16.mxu0 %v4682_v11 }
 0x2e3   : > { %v7198_v36 = vadd.f32 %v4208_v41, %v2175_v20  ;;  %v4209_v15 = vpop.f32.mrb[46].mxu0  ;;  %v4244_v2 = vpop.f32.mrb[32].mxu1  ;;  %v4696_v41 = vpack.c.bf16 %v3046_v62, %v3045_v7 }
 0x2e4   : > { %v4210_v49 = vpop.f32.mrb[47].mxu0  ;;  %v4245_v27 = vpop.f32.mrb[33].mxu1 }
 0x2e5   : > { %v4211_v46 = vadd.f32 %v4210_v49, %v4209_v15  ;;  %v4246_v19 = vadd.f32 %v4245_v27, %v4244_v2  ;;  %4751 = vmatpush1.bf16.msra.mxu1 %v7207_v42  ;;  %4685 = vmatpush3.bf16.msra.mxu0 %v4684_v59 }
 0x2e6   : > { %4740 = vmatprep.subr.bf16.mxu1 %v4828_v25  ;;  %4687 = vmatprep.subr.bf16.mxu0 %v4686_v34 }
 0x2e7   : > { %v7216_v39 = vadd.f32 %v4211_v46, %v2180_v44  ;;  %v2355_v3 = vadd.f32 %v4246_v19, %v7120_v47  ;;  %v4247_v38 = vpop.f32.mrb[34].mxu1 }
 0x2e8   : > { %v4300_v51 = vpop.f32.mrb[48].mxu0  ;;  %v4248_v24 = vpop.f32.mrb[35].mxu1 }
 0x2e9   : > { %v4249_v60 = vadd.f32 %v4248_v24, %v4247_v38  ;;  %v4301_v6 = vpop.f32.mrb[49].mxu0  ;;  %4689 = vmatpush3.bf16.msra.mxu0 %v4688_v14 }
 0x2ea   : > { %v4302_v47 = vadd.f32 %v4301_v6, %v4300_v51  ;;  %4691 = vmatprep.subr.bf16.mxu0 %v4690_v45 }
 0x2eb   : > { %v2360_v33 = vadd.f32 %v4249_v60, %v7122_v50  ;;  %v4250_v54 = vpop.f32.mrb[36].mxu1  ;;  %v4694_v50 = vpack.c.bf16 %v3062_v61, %v3061_v21 }
 0x2ec   : > { %v7240_v16 = vadd.f32 %v4302_v47, %v2355_v3  ;;  %v4303_v22 = vpop.f32.mrb[50].mxu0  ;;  %v4251_v10 = vpop.f32.mrb[37].mxu1 }
 0x2ed   : > { %v4252_v37 = vadd.f32 %v4251_v10, %v4250_v54  ;;  %v4304_v17 = vpop.f32.mrb[51].mxu0  ;;  %4693 = vmatpush3.bf16.msra.mxu0 %v4692_v35 }
 0x2ee   : > { %v4305_v20 = vadd.f32 %v4304_v17, %v4303_v22  ;;  %4695 = vmatprep.subr.bf16.mxu0 %v4694_v50  ;;  %v7272_v17 = vld [vmem:[%s8253_s5] ss:$0 sm:$0xff] }
 0x2ef   : > { %v2365_v48 = vadd.f32 %v4252_v37, %v7124_v12  ;;  %v4253_v29 = vpop.f32.mrb[38].mxu1 }
 0x2f0   : > { %v7249_v28 = vadd.f32 %v4305_v20, %v2360_v33  ;;  %v4306_v8 = vpop.f32.mrb[52].mxu0  ;;  %v4254_v63 = vpop.f32.mrb[39].mxu1 }
 0x2f1   : > { %v4255_v32 = vadd.f32 %v4254_v63, %v4253_v29  ;;  %v4307_v53 = vpop.f32.mrb[53].mxu0  ;;  %4697 = vmatpush3.bf16.msra.mxu0 %v4696_v41 }
 0x2f2   : > { %v4308_v55 = vadd.f32 %v4307_v53, %v4306_v8 }
 0x2f3   : > { %v2370_v13 = vadd.f32 %v4255_v32, %v7126_v18  ;;  %v4256_v11 = vpop.f32.mrb[40].mxu1  ;;  %v7285_v32 = vld [vmem:[%s8253_s5 + $0x3] ss:$0 sm:$0xff] }
 0x2f4   : > { %v7252_v52 = vadd.f32 %v4308_v55, %v2365_v48  ;;  %v4309_v0 = vpop.f32.mrb[54].mxu0  ;;  %v4257_v43 = vpop.f32.mrb[41].mxu1  ;;  %v7292_v55 = vld [vmem:[%s8253_s5 + $0x2] ss:$0 sm:$0xff] }
 0x2f5   : > { %v4258_v44 = vadd.f32 %v4257_v43, %v4256_v11  ;;  %v4310_v12 = vpop.f32.mrb[55].mxu0 }
 0x2f6   : > { %v4311_v15 = vadd.f32 %v4310_v12, %v4309_v0  ;;  %v7299_v0 = vld [vmem:[%s8253_s5 + $0x5] ss:$0 sm:$0xff] }
 0x2f7   : > { %v2375_v2 = vadd.f32 %v4258_v44, %v7148_v4  ;;  %v4259_v31 = vpop.f32.mrb[42].mxu1 }
 0x2f8   : > { %v7255_v23 = vadd.f32 %v4311_v15, %v2370_v13  ;;  %v4312_v49 = vpop.f32.mrb[56].mxu0  ;;  %v4260_v27 = vpop.f32.mrb[43].mxu1 }
 0x2f9   : > { %v4261_v46 = vadd.f32 %v4260_v27, %v4259_v31  ;;  %v4313_v19 = vpop.f32.mrb[57].mxu0  ;;  %v7306_v31 = vmul.f32 0.0, %v7292_v55 }
 0x2fa   : > { %v4314_v59 = vadd.f32 %v4313_v19, %v4312_v49 }
 0x2fb   : > { %v2380_v18 = vadd.f32 %v4261_v46, %v7169_v56  ;;  %v4262_v34 = vpop.f32.mrb[44].mxu1 }
 0x2fc   : > { %v7258_v57 = vadd.f32 %v4314_v59, %v2375_v2  ;;  %v4315_v1 = vpop.f32.mrb[58].mxu0  ;;  %v4263_v3 = vpop.f32.mrb[45].mxu1 }
 0x2fd   : > { %v4264_v38 = vadd.f32 %v4263_v3, %v4262_v34  ;;  %v4316_v58 = vpop.f32.mrb[59].mxu0 }
 0x2fe   : > { %v4317_v5 = vadd.f32 %v4316_v58, %v4315_v1 }
 0x2ff   : > { %v2385_v4 = vadd.f32 %v4264_v38, %v7198_v36  ;;  %v4265_v51 = vpop.f32.mrb[46].mxu1 }
 0x300   : > { %v7261_v24 = vadd.f32 %v4317_v5, %v2380_v18  ;;  %v4318_v60 = vpop.f32.mrb[60].mxu0  ;;  %v4266_v6 = vpop.f32.mrb[47].mxu1 }
 0x301   : > { %v4267_v14 = vadd.f32 %v4266_v6, %v4265_v51  ;;  %v4319_v47 = vpop.f32.mrb[61].mxu0 }
 0x302   : > { %v4320_v45 = vadd.f32 %v4319_v47, %v4318_v60 }
 0x303   : > { %v2390_v56 = vadd.f32 %v4267_v14, %v7216_v39  ;;  %v4356_v30 = vpop.f32.mrb[48].mxu1  ;;  %v7277_v39 = vld [vmem:[%s8253_s5 + $0x1] ss:$0 sm:$0xff] }
 0x304   : > { %v7264_v40 = vadd.f32 %v4320_v45, %v2385_v4  ;;  %v4321_v33 = vpop.f32.mrb[62].mxu0  ;;  %v4357_v54 = vpop.f32.mrb[49].mxu1 }
 0x305   : > { %v4322_v21 = vpop.f32.mrb[63].mxu0  ;;  %v4358_v61 = vadd.f32 %v4357_v54, %v4356_v30 }
 0x306   : > { %v4323_v22 = vadd.f32 %v4322_v21, %v4321_v33 }
 0x307   : > { %v2565_v36 = vadd.f32 %v4358_v61, %v7240_v16  ;;  %v4359_v10 = vpop.f32.mrb[50].mxu1  ;;  %v2698_v16 = vmul.f32 0.0, %v7272_v17 }
 0x308   : > { %v7267_v37 = vadd.f32 %v4323_v22, %v2390_v56  ;;  %v4360_v35 = vpop.f32.mrb[51].mxu1 }
 0x309   : > { %v2603_v20 = vmax.f32 %v2565_v36, 0.0  ;;  %v4361_v50 = vadd.f32 %v4360_v35, %v4359_v10 }
 0x30b   : > { %v2626_v7 = vrot.slane %v2603_v20, 7  ;;  %v2650_v62 = vrot.slane %v2603_v20, 1  ;;  %v2712_v48 = vmul.f32 %v7277_v39, %v2603_v20  ;;  %v4362_v29 = vpop.f32.mrb[52].mxu1  ;;  %v2570_v8 = vadd.f32 %v4361_v50, %v7249_v28 }
 0x30c   : > { %v4363_v63 = vpop.f32.mrb[53].mxu1  ;;  %v2699_v44 = vmul.f32 %v7272_v17, %v2603_v20 }
 0x30d   : > { %v2642_v53 = vsel %vm372_vm0, 0.0, %v2626_v7  ;;  %v2666_v41 = vsel %vm397_vm2, %v2650_v62, 0.0  ;;  %v4364_v13 = vadd.f32 %v4363_v63, %v4362_v29  ;;  %v2604_v28 = vmax.f32 %v2570_v8, 0.0 }
 0x30e   : > { %v2674_v11 = vsel %vm4916_vm1, 0.0, %v2642_v53  ;;  %v2683_v43 = vsel %vm4916_vm1, 0.0, %v2666_v41  ;;  %v2720_v12 = vadd.f32 %v2712_v48, %v2698_v16 }
 0x30f   : > { %v2575_v15 = vadd.f32 %v4364_v13, %v7252_v52  ;;  %v4365_v2 = vpop.f32.mrb[54].mxu1  ;;  %v2756_v49 = vmul.f32 %v7285_v32, %v2674_v11  ;;  %v2627_v27 = vrot.slane %v2604_v28, 7  ;;  %v2713_v46 = vmul.f32 %v7277_v39, %v2604_v28 }
 0x310   : > { %v2734_v19 = vmul.f32 %v7292_v55, %v2604_v28  ;;  %v4366_v59 = vpop.f32.mrb[55].mxu1  ;;  %v2651_v1 = vrot.slane %v2604_v28, 1  ;;  %v7312_v3 = vmul.f32 %v7299_v0, %v2683_v43  ;;  %v2700_v52 = vmul.f32 %v7272_v17, %v2604_v28 }
 0x311   : > { %v2605_v18 = vmax.f32 %v2575_v15, 0.0  ;;  %v4367_v34 = vadd.f32 %v4366_v59, %v4365_v2  ;;  %v2721_v38 = vadd.f32 %v2713_v46, %v2699_v44  ;;  %v2643_v58 = vsel %vm372_vm0, 0.0, %v2627_v27  ;;  %v7346_v15 = vld [vmem:[%s8253_s5 + $0x4] ss:$0 sm:$0xff] }
 0x312   : > { %v2742_v5 = vadd.f32 %v2734_v19, %v2720_v12  ;;  %v2667_v30 = vsel %vm397_vm2, %v2651_v1, 0.0  ;;  %v2675_v33 = vsel %vm4916_vm1, %v2642_v53, %v2643_v58 }
 0x313   : > { %v2628_v4 = vrot.slane %v2605_v18, 7  ;;  %v2652_v51 = vrot.slane %v2605_v18, 1  ;;  %v2701_v60 = vmul.f32 %v7272_v17, %v2605_v18  ;;  %v2714_v6 = vmul.f32 %v7277_v39, %v2605_v18  ;;  %v4368_v14 = vpop.f32.mrb[56].mxu1 }
 0x314   : > { %v2735_v47 = vmul.f32 %v7292_v55, %v2605_v18  ;;  %v2580_v45 = vadd.f32 %v4367_v34, %v7255_v23  ;;  %v4369_v56 = vpop.f32.mrb[57].mxu1  ;;  %v7329_v23 = vsel %vm4916_vm1, %v2666_v41, %v2667_v30  ;;  %v2757_v62 = vmul.f32 %v7285_v32, %v2675_v33 }
 0x315   : > { %v2644_v54 = vsel %vm372_vm0, 0.0, %v2628_v4  ;;  %v2668_v21 = vsel %vm397_vm2, %v2652_v51, 0.0  ;;  %v2722_v61 = vadd.f32 %v2714_v6, %v2700_v52  ;;  %v4370_v22 = vadd.f32 %v4369_v56, %v4368_v14 }
 0x316   : > { %v2743_v36 = vadd.f32 %v2735_v47, %v2721_v38  ;;  %v2606_v10 = vmax.f32 %v2580_v45, 0.0  ;;  %v2676_v35 = vsel %vm4916_vm1, %v2643_v58, %v2644_v54  ;;  %v7334_v7 = vsel %vm4916_vm1, %v2667_v30, %v2668_v21 }
 0x317   : > { %v2585_v20 = vadd.f32 %v4370_v22, %v7258_v57  ;;  %v4371_v50 = vpop.f32.mrb[58].mxu1  ;;  %v2758_v16 = vmul.f32 %v7285_v32, %v2676_v35  ;;  %v2764_v11 = vadd.f32 %v2756_v49, %v2742_v5 }
 0x318   : > { %v2629_v48 = vrot.slane %v2606_v10, 7  ;;  %v2653_v29 = vrot.slane %v2606_v10, 1  ;;  %v2702_v8 = vmul.f32 %v7272_v17, %v2606_v10  ;;  %v2715_v63 = vmul.f32 %v7277_v39, %v2606_v10  ;;  %v4372_v53 = vpop.f32.mrb[59].mxu1 }
 0x319   : > { %v2736_v41 = vmul.f32 %v7292_v55, %v2606_v10  ;;  %v2607_v13 = vmax.f32 %v2585_v20, 0.0  ;;  %v4373_v57 = vadd.f32 %v4372_v53, %v4371_v50  ;;  %v2765_v12 = vadd.f32 %v2757_v62, %v2743_v36 }
 0x31a   : > { %v2645_v28 = vsel %vm372_vm0, 0.0, %v2629_v48  ;;  %v2669_v43 = vsel %vm397_vm2, %v2653_v29, 0.0  ;;  %v2723_v44 = vadd.f32 %v2715_v63, %v2701_v60  ;;  %v2778_v50 = vmul.f32 %v7346_v15, %v2675_v33  ;;  %v7393_v33 = vld [vmem:[%s8253_s5 + $0x6] ss:$0 sm:$0xff] }
 0x31b   : > { %v2677_v2 = vsel %vm4916_vm1, %v2644_v54, %v2645_v28  ;;  %v7352_v27 = vsel %vm4916_vm1, %v2668_v21, %v2669_v43  ;;  %v2744_v46 = vadd.f32 %v2736_v41, %v2722_v61  ;;  %v2630_v49 = vrot.slane %v2607_v13, 7  ;;  %v4374_v19 = vpop.f32.mrb[60].mxu1 }
 0x31c   : > { %v2759_v59 = vmul.f32 %v7285_v32, %v2677_v2  ;;  %v2780_v18 = vmul.f32 %v7346_v15, %v2677_v2  ;;  %v7358_v34 = vmul.f32 %v7299_v0, %v7352_v27  ;;  %v2654_v1 = vrot.slane %v2607_v13, 1  ;;  %v4375_v52 = vpop.f32.mrb[61].mxu1 }
 0x31d   : > { %v2646_v38 = vsel %vm372_vm0, 0.0, %v2630_v49  ;;  %v2703_v58 = vmul.f32 %v7272_v17, %v2607_v13  ;;  %v2716_v5 = vmul.f32 %v7277_v39, %v2607_v13  ;;  %v2737_v4 = vmul.f32 %v7292_v55, %v2607_v13 }
 0x31e   : > { %v2670_v51 = vsel %vm397_vm2, %v2654_v1, 0.0  ;;  %v2678_v60 = vsel %vm4916_vm1, %v2645_v28, %v2646_v38  ;;  %v2590_v6 = vadd.f32 %v4373_v57, %v7261_v24  ;;  %v4376_v14 = vadd.f32 %v4375_v52, %v4374_v19 }
 0x31f   : > { %v7370_v47 = vsel %vm4916_vm1, %v2669_v43, %v2670_v51  ;;  %v2724_v45 = vadd.f32 %v2716_v5, %v2702_v8  ;;  %v2745_v56 = vadd.f32 %v2737_v4, %v2723_v44  ;;  %v2760_v30 = vmul.f32 %v7285_v32, %v2678_v60  ;;  %v4377_v54 = vpop.f32.mrb[62].mxu1 }
 0x320   : > { %v7374_v21 = vmul.f32 %v7346_v15, %v2678_v60  ;;  %v7378_v61 = vmul.f32 %v7299_v0, %v7370_v47  ;;  %v2608_v22 = vmax.f32 %v2590_v6, 0.0  ;;  %v2595_v24 = vadd.f32 %v4376_v14, %v7264_v40  ;;  %v4378_v36 = vpop.f32.mrb[63].mxu1 }
 0x321   : > { %v7381_v10 = vadd.f32 %v2759_v59, %v2745_v56  ;;  %v2766_v20 = vadd.f32 %v2758_v16, %v2744_v46  ;;  %v2779_v62 = vmul.f32 %v7346_v15, %v2676_v35  ;;  %v2786_v13 = vadd.f32 %v2778_v50, %v2764_v11 }
 0x322   : > { %v2631_v48 = vrot.slane %v2608_v22, 7  ;;  %v2655_v29 = vrot.slane %v2608_v22, 1  ;;  %v2704_v8 = vmul.f32 %v7272_v17, %v2608_v22  ;;  %v2717_v63 = vmul.f32 %v7277_v39, %v2608_v22 }
 0x323   : > { %v2738_v53 = vmul.f32 %v7292_v55, %v2608_v22  ;;  %v2609_v41 = vmax.f32 %v2595_v24, 0.0  ;;  %v2787_v57 = vadd.f32 %v2779_v62, %v2765_v12  ;;  %v2788_v43 = vadd.f32 %v2780_v18, %v2766_v20 }
 0x324   : > { %v2647_v40 = vsel %vm372_vm0, 0.0, %v2631_v48  ;;  %v2671_v28 = vsel %vm397_vm2, %v2655_v29, 0.0  ;;  %v2725_v16 = vadd.f32 %v2717_v63, %v2703_v58  ;;  %v2802_v58 = vmul.f32 %v7299_v0, %v7334_v7 }
 0x325   : > { %v2679_v35 = vsel %vm4916_vm1, %v2646_v38, %v2647_v40  ;;  %v2688_v44 = vsel %vm4916_vm1, %v2670_v51, %v2671_v28  ;;  %v2746_v2 = vadd.f32 %v2738_v53, %v2724_v45  ;;  %v2632_v11 = vrot.slane %v2609_v41, 7 }
 0x326   : > { %v2761_v12 = vmul.f32 %v7285_v32, %v2679_v35  ;;  %v2782_v46 = vmul.f32 %v7346_v15, %v2679_v35  ;;  %v7402_v49 = vmul.f32 %v7299_v0, %v2688_v44  ;;  %v7405_v19 = vmul.f32 %v7393_v33, %v2688_v44 }
 0x327   : > { %v2768_v59 = vadd.f32 %v2760_v30, %v2746_v2  ;;  %v2656_v18 = vrot.slane %v2609_v41, 1  ;;  %v2718_v1 = vmul.f32 %v7277_v39, %v2609_v41  ;;  %v2739_v52 = vmul.f32 %v7292_v55, %v2609_v41 }
 0x328   : > { %v2801_v38 = vmul.f32 %v7299_v0, %v7329_v23  ;;  %v2808_v5 = vadd.f32 %v7312_v3, %v2786_v13  ;;  %v2822_v4 = vmul.f32 %v7393_v33, %v7329_v23  ;;  %v2823_v6 = vmul.f32 %v7393_v33, %v7334_v7 }
 0x329   : > { %v2790_v51 = vadd.f32 %v2782_v46, %v2768_v59  ;;  %v2747_v60 = vadd.f32 %v2739_v52, %v2725_v16  ;;  %v4379_v14 = vadd.f32 %v4378_v36, %v4377_v54  ;;  %v2810_v56 = vadd.f32 %v2802_v58, %v2788_v43 }
 0x32a   : > { %v2809_v45 = vadd.f32 %v2801_v38, %v2787_v57  ;;  %v2830_v30 = vadd.f32 %v2822_v4, %v2808_v5  ;;  %v2648_v22 = vsel %vm372_vm0, 0.0, %v2632_v11  ;;  %v2672_v50 = vsel %vm397_vm2, %v2656_v18, 0.0 }
 0x32b   : > { %v2769_v24 = vadd.f32 %v2761_v12, %v2747_v60  ;;  %v2600_v20 = vadd.f32 %v4379_v14, %v7267_v37  ;;  %v2680_v3 = vsel %vm4916_vm1, %v2647_v40, %v2648_v22  ;;  %v2689_v7 = vsel %vm4916_vm1, %v2671_v28, %v2672_v50 }
 0x32c   : > { %v2831_v23 = vadd.f32 %v2823_v6, %v2809_v45  ;;  %v7423_v62 = vmax.f32 %v2830_v30, 0.0  ;;  %v2705_v54 = vmul.f32 %v7272_v17, %v2609_v41  ;;  %v2726_v48 = vadd.f32 %v2718_v1, %v2704_v8 }
 0x32d   : > { %v2610_v36 = vmax.f32 %v2600_v20, 0.0  ;;  %v2762_v29 = vmul.f32 %v7285_v32, %v2680_v3  ;;  %v2783_v63 = vmul.f32 %v7346_v15, %v2680_v3  ;;  %v2806_v37 = vmul.f32 %v7299_v0, %v2689_v7 }
 0x32e   : > { %2920 = vrot.lane.b32.xlu1 %v7423_v62, %s4829_s25  ;;  %v2854_v53 = vrot.slane %v7423_v62, 7  ;;  %v7434_v13 = vmax.f32 %v2831_v23, 0.0  ;;  %v2824_v57 = vmul.f32 %v7393_v33, %v7352_v27  ;;  %v2789_v35 = vadd.f32 %v7374_v21, %v7381_v10 }
 0x32f   : > { %v2633_v17 = vrot.slane %v2610_v36, 7  ;;  %v2657_v41 = vrot.slane %v2610_v36, 1  ;;  %v2719_v8 = vmul.f32 %v7277_v39, %v2610_v36  ;;  %v2740_v40 = vmul.f32 %v7292_v55, %v2610_v36 }
 0x330   : > { %v2870_v28 = vsel %vm372_vm0, 0.0, %v2854_v53  ;;  %v2855_v16 = vrot.slane %v7434_v13, 7  ;;  %v2832_v43 = vadd.f32 %v2824_v57, %v2810_v56  ;;  %v2811_v38 = vadd.f32 %v7358_v34, %v2789_v35 }
 0x331   : > { %v2649_v44 = vsel %vm372_vm0, 0.0, %v2633_v17  ;;  %v7446_v2 = vsel %vm397_vm2, %v2657_v41, 0.0  ;;  %v2727_v27 = vadd.f32 %v2719_v8, %v2705_v54  ;;  %v2748_v11 = vadd.f32 %v2740_v40, %v2726_v48 }
 0x332   : > { %v2681_v39 = vsel %vm4916_vm1, %v2648_v22, %v2649_v44  ;;  %v2682_v55 = vsel %vm4916_vm1, %v2649_v44, 0.0  ;;  %v2690_v12 = vsel %vm4916_vm1, %v2672_v50, %v7446_v2  ;;  %v2902_v21 = vsel %vm4916_vm1, 0.0, %v2870_v28 }
 0x333   : > { %v2749_v10 = vadd.f32 %v7306_v31, %v2727_v27  ;;  %v2770_v46 = vadd.f32 %v2762_v29, %v2748_v11  ;;  %v2784_v59 = vmul.f32 %v7346_v15, %v2681_v39  ;;  %v2828_v18 = vmul.f32 %v7393_v33, %v2690_v12  ;;  %2952 = vrot.lane.b32.xlu0 %v2902_v21, %s4829_s25 }
 0x334   : > { %v2871_v1 = vsel %vm372_vm0, 0.0, %v2855_v16  ;;  %v7462_v52 = vmax.f32 %v2832_v43, 0.0  ;;  %v2825_v58 = vmul.f32 %v7393_v33, %v7370_v47  ;;  %v2812_v4 = vadd.f32 %v7378_v61, %v2790_v51 }
 0x335   : > { %v2792_v5 = vadd.f32 %v2784_v59, %v2770_v46  ;;  %v7469_v31 = vsel %vm4916_vm1, %v2870_v28, %v2871_v1  ;;  %v2791_v60 = vadd.f32 %v2783_v63, %v2769_v24  ;;  %v2827_v34 = vmul.f32 %v7393_v33, %v2689_v7  ;;  %v3070_v46 = vld [vmem:[%s8254_s6 + $0x128] sm:$0xff]  ;;  %v3063_v59 = vld [vmem:[%s8254_s6 + $0xf0] sm:$0xff] }
 0x336   : > { %v4780_v6 = vpack.i.bf16 %v7434_v13, %v7469_v31  ;;  %v2856_v14 = vrot.slane %v7462_v52, 7  ;;  %v2833_v45 = vadd.f32 %v2825_v58, %v2811_v38  ;;  %v2834_v56 = vadd.f32 %v7405_v19, %v2812_v4  ;;  %v3047_v38 = vld [vmem:[%s8254_s6 + $0x70] sm:$0xff]  ;;  %v3048_v58 = vld [vmem:[%s8254_s6 + $0x78] sm:$0xff] }
 0x337   : > { %v2813_v47 = vadd.f32 %v7402_v49, %v2791_v60  ;;  %v2814_v30 = vadd.f32 %v2806_v37, %v2792_v5  ;;  %v2691_v22 = vsel %vm4916_vm1, %v7446_v2, 0.0  ;;  %v2763_v24 = vmul.f32 %v7285_v32, %v2681_v39  ;;  %v3071_v4 = vld [vmem:[%s8254_s6 + $0x130] sm:$0xff]  ;;  %v3072_v60 = vld [vmem:[%s8254_s6 + $0x138] sm:$0xff] }
 0x338   : > { %4781 = vrot.lane.b32.xlu0 %v4780_v6, %s4829_s25  ;;  %v2872_v61 = vsel %vm372_vm0, 0.0, %v2856_v14  ;;  %v7483_v51 = vmax.f32 %v2833_v45, 0.0  ;;  %v2785_v20 = vmul.f32 %v7346_v15, %v2682_v55  ;;  %v7491_v49 = vmax.f32 %v2834_v56, 0.0 }
 0x339   : > { %v7489_v19 = vsel %vm4916_vm1, %v2871_v1, %v2872_v61  ;;  %v2835_v50 = vadd.f32 %v2827_v34, %v2813_v47  ;;  %v2836_v3 = vadd.f32 %v2828_v18, %v2814_v30  ;;  %v2771_v36 = vadd.f32 %v2763_v24, %v2749_v10  ;;  %v3069_v10 = vld [vmem:[%s8254_s6 + $0x120] sm:$0xff]  ;;  %v3064_v1 = vld [vmem:[%s8254_s6 + $0xf8] sm:$0xff] }
 0x33a   : > { %v4785_v23 = vpack.i.bf16 %v7462_v52, %v7489_v19  ;;  %v2857_v7 = vrot.slane %v7483_v51, 7  ;;  %v2881_v54 = vrot.slane %v7483_v51, 1  ;;  %v2882_v32 = vrot.slane %v7491_v49, 1 }
 0x33b   : > { %v2858_v15 = vrot.slane %v7491_v49, 7  ;;  %v7499_v48 = vmax.f32 %v2835_v50, 0.0  ;;  %v7501_v29 = vmax.f32 %v2836_v3, 0.0  ;;  %v2793_v53 = vadd.f32 %v2785_v20, %v2771_v36  ;;  %v3073_v20 = vld [vmem:[%s8254_s6 + $0x140] sm:$0xff]  ;;  %v3074_v50 = vld [vmem:[%s8254_s6 + $0x148] sm:$0xff] }
 0x33c   : > { %4786 = vrot.lane.b32.xlu1 %v4785_v23, %s4829_s25  ;;  %v2873_v63 = vsel %vm372_vm0, 0.0, %v2857_v7  ;;  %v2897_v37 = vsel %vm397_vm2, %v2881_v54, 0.0  ;;  %v2807_v57 = vmul.f32 %v7299_v0, %v2690_v12  ;;  %v7512_v41 = vsel %vm397_vm2, %v2882_v32, 0.0  ;;  %v3075_v32 = vld [vmem:[%s8254_s6 + $0x150] sm:$0xff] }
 0x33d   : > { %v7509_v17 = vsel %vm4916_vm1, %v2872_v61, %v2873_v63  ;;  %v2874_v8 = vsel %vm372_vm0, 0.0, %v2858_v15  ;;  %v2859_v40 = vrot.slane %v7499_v48, 7  ;;  %v7521_v16 = vsel %vm4916_vm1, %v2897_v37, %v7512_v41  ;;  %v3076_v15 = vld [vmem:[%s8254_s6 + $0x158] sm:$0xff] }
 0x33e   : > { %v4790_v28 = vpack.i.bf16 %v7483_v51, %v7509_v17  ;;  %v7525_v0 = vsel %vm4916_vm1, %v2873_v63, %v2874_v8  ;;  %v2860_v43 = vrot.slane %v7501_v29, 7  ;;  %3966 = vmatprep.mubr.msk.f32.mxu1 %vm3008_vm14, %v7521_v16  ;;  %v2815_v2 = vadd.f32 %v2807_v57, %v2793_v53 }
 0x33f   : > { %v4795_v35 = vpack.i.bf16 %v7491_v49, %v7525_v0  ;;  %v2875_v44 = vsel %vm372_vm0, 0.0, %v2859_v40  ;;  %v2829_v27 = vmul.f32 %v7393_v33, %v2691_v22  ;;  %v2878_v5 = vrot.slane %v7423_v62, 1  ;;  %v3078_v40 = vld [vmem:[%s8254_s6 + $0x168] sm:$0xff] }
 0x340   : > { %4791 = vrot.lane.b32.xlu0 %v4790_v28, %s4829_s25  ;;  %v7537_v11 = vsel %vm4916_vm1, %v2874_v8, %v2875_v44  ;;  %v2876_v39 = vsel %vm372_vm0, 0.0, %v2860_v43  ;;  %v7579_v14 = vpack.c.bf16 %v3070_v46, %v3069_v10  ;;  %v4698_v45 = vpack.c.bf16 %v3064_v1, %v3063_v59  ;;  %v3077_v8 = vld [vmem:[%s8254_s6 + $0x160] sm:$0xff]  ;;  %v3082_v46 = vld [vmem:[%s8254_s6 + $0x188] sm:$0xff]  ;;  %v3083_v1 = vld [vmem:[%s8254_s6 + $0x190] sm:$0xff] }
 0x341   : > { %4796 = vrot.lane.b32.xlu1 %v4795_v35, %s4829_s25  ;;  %v4800_v55 = vpack.i.bf16 %v7499_v48, %v7537_v11  ;;  %v7545_v12 = vsel %vm4916_vm1, %v2875_v44, %v2876_v39  ;;  %v2837_v21 = vadd.f32 %v2829_v27, %v2815_v2  ;;  %v4700_v34 = vpack.c.bf16 %v3048_v58, %v3047_v38  ;;  %v3079_v27 = vld [vmem:[%s8254_s6 + $0x170] sm:$0xff]  ;;  %v3081_v10 = vld [vmem:[%s8254_s6 + $0x180] sm:$0xff]  ;;  %v3084_v38 = vld [vmem:[%s8254_s6 + $0x198] sm:$0xff] }
 0x342   : > { %v4805_v33 = vpack.i.bf16 %v7501_v29, %v7545_v12  ;;  %v2880_v47 = vrot.slane %v7462_v52, 1  ;;  %4752 = vmatpush1.bf16.msra.mxu1 %v7579_v14  ;;  %v7586_v30 = vpack.c.bf16 %v3072_v60, %v3071_v4  ;;  %v2894_v22 = vsel %vm397_vm2, %v2878_v5, 0.0  ;;  %4699 = vmatprep.subr.bf16.mxu0 %v4698_v45  ;;  %v3085_v5 = vld [vmem:[%s8254_s6 + $0x1a0] sm:$0xff]  ;;  %v3086_v4 = vld [vmem:[%s8254_s6 + $0x1a8] sm:$0xff]  ;;  %v3088_v45 = vld [vmem:[%s8254_s6 + $0x1b8] sm:$0xff] }
 0x343   : > { %v7558_v18 = vmax.f32 %v2837_v21, 0.0  ;;  %v2879_v24 = vrot.slane %v7434_v13, 1  ;;  %4701 = vmatpush3.bf16.msra.mxu0 %v4700_v34  ;;  %4741 = vmatprep.subr.bf16.mxu1 %v4828_v25  ;;  %v2911_v3 = vsel %vm4916_vm1, 0.0, %v2894_v22  ;;  %v7611_v7 = vpack.c.bf16 %v3074_v50, %v3073_v20 }
 0x344   : > { %4801 = vrot.lane.b32.xlu0 %v4800_v55, %s4829_s25  ;;  %4702 = vmatprep.subr.bf16.mxu0 %v4828_v25  ;;  %v2896_v23 = vsel %vm397_vm2, %v2880_v47, 0.0  ;;  %v2883_v63 = vrot.slane %v7499_v48, 1  ;;  %v2884_v57 = vrot.slane %v7501_v29, 1  ;;  %v7655_v44 = vpack.c.bf16 %v3078_v40, %v3077_v8 }
 0x345   : > { %4806 = vrot.lane.b32.xlu1 %v4805_v33, %s4829_s25  ;;  %v2861_v6 = vrot.slane %v7558_v18, 7  ;;  %v2895_v54 = vsel %vm397_vm2, %v2879_v24, 0.0  ;;  %v7617_v36 = vsel %vm4916_vm1, %v2896_v23, %v2897_v37  ;;  %v7634_v37 = vpack.c.bf16 %v3076_v15, %v3075_v32 }
 0x346   : > { %4753 = vmatpush1.bf16.msra.mxu1 %v7586_v30  ;;  %v7631_v53 = vsel %vm4916_vm1, %v2894_v22, %v2895_v54  ;;  %v2899_v28 = vsel %vm397_vm2, %v2883_v63, 0.0  ;;  %v2885_v43 = vrot.slane %v7558_v18, 1  ;;  %v7652_v35 = vsel %vm4916_vm1, %v2895_v54, %v2896_v23 }
 0x347   : > { %v7582_v56 = vsel %vm372_vm0, 0.0, %v2861_v6  ;;  %4742 = vmatprep.subr.bf16.mxu1 %v4828_v25  ;;  %v2900_v2 = vsel %vm397_vm2, %v2884_v57, 0.0  ;;  %v7701_v59 = vpack.c.bf16 %v3082_v46, %v3081_v10  ;;  %v7711_v58 = vpack.c.bf16 %v3084_v38, %v3083_v1  ;;  %v3087_v6 = vld [vmem:[%s8254_s6 + $0x1b0] sm:$0xff] }
 0x348   : > { %2934 = vrot.lane.b32.xlu0 %v7558_v18, %s4829_s25  ;;  %v7594_v61 = vsel %vm4916_vm1, %v2876_v39, %v7582_v56  ;;  %v3080_v39 = vld [vmem:[%s8254_s6 + $0x178] sm:$0xff]  ;;  %v7675_v55 = vsel %vm397_vm2, %v2885_v43, 0.0  ;;  %v7721_v60 = vpack.c.bf16 %v3086_v4, %v3085_v5  ;;  %v7731_v34 = vpack.c.bf16 %v3088_v45, %v3087_v6 }
 0x349   : > { %2966 = vrot.lane.b32.xlu1 %v7594_v61, %s4829_s25  ;;  %v7682_v21 = vpack.c.bf16 %v3080_v39, %v3079_v27  ;;  %v7689_v33 = vsel %vm4916_vm1, %v2900_v2, %v7675_v55 }
 0x34a   : > { %4754 = vmatpush1.bf16.msra.mxu1 %v7611_v7 }
 0x34b   : > { %4743 = vmatprep.subr.bf16.mxu1 %v4828_v25 }
 0x34c   : > { %2984 = vrot.lane.b32.xlu0 %v2911_v3, %s4829_s25 }
 0x34d   : > { %2990 = vrot.lane.b32.xlu1 %v7617_v36, %s4829_s25 }
 0x34e   : > { %4755 = vmatpush1.bf16.msra.mxu1 %v7634_v37 }
 0x34f   : > { %4744 = vmatprep.subr.bf16.mxu1 %v4828_v25 }
 0x350   : > { %2986 = vrot.lane.b32.xlu0 %v7631_v53, %s4829_s25 }
 0x351   : > { %2992 = vrot.lane.b32.xlu1 %v7521_v16, %s4829_s25  ;;  %v7663_v16 = vsel %vm4916_vm1, %v7512_v41, %v2899_v28  ;;  %v7679_v41 = vsel %vm4916_vm1, %v2899_v28, %v2900_v2 }
 0x352   : > { %4756 = vmatpush1.bf16.msra.mxu1 %v7655_v44 }
 0x353   : > { %4745 = vmatprep.subr.bf16.mxu1 %v4828_v25 }
 0x354   : > { %2988 = vrot.lane.b32.xlu0 %v7652_v35, %s4829_s25 }
 0x355   : > { %2994 = vrot.lane.b32.xlu1 %v7663_v16, %s4829_s25 }
 0x356   : > { %4757 = vmatpush1.bf16.msra.mxu1 %v7682_v21 }
 0x357   : > { %4746 = vmatprep.subr.bf16.mxu1 %v4828_v25 }
 0x358   : > { %2996 = vrot.lane.b32.xlu0 %v7679_v41, %s4829_s25 }
 0x359   : > { %2998 = vrot.lane.b32.xlu1 %v7689_v33, %s4829_s25  ;;  %s328_s25 = scalar_lea.vmem %s8257_s9, %s8405_s10 }
 0x35a   : > { %4758 = vmatpush1.bf16.msra.mxu1 %v7701_v59 }
 0x35b   : > { %4747 = vmatprep.subr.bf16.mxu1 %v4828_v25 }
 0x35e   : > { %4759 = vmatpush1.bf16.msra.mxu1 %v7711_v58 }
 0x35f   : > { %4748 = vmatprep.subr.bf16.mxu1 %v4828_v25 }
 0x362   : > { %4760 = vmatpush1.bf16.msra.mxu1 %v7721_v60 }
 0x363   : > { %4749 = vmatprep.subr.bf16.mxu1 %v4828_v25 }
 0x366   : > { %4761 = vmatpush1.bf16.msra.mxu1 %v7731_v34 }
 0x3a0   : > { %v2921_v20 = vpop.permute.xlu1 %2920 }
 0x3a5   : > { %v2953_v47 = vpop.permute.xlu0 %2952 }
 0x3a6   : > { %v3017_v24 = vsel %vm3008_vm14, %v7434_v13, %v2953_v47 }
 0x3a7   : > { %3170 = vmatprep.mubr.f32.mxu0 %v3017_v24 }
 0x3a8   : > { %3960 = vmatmul.mubr.msk.f32.vlgmr.msra.gmra.mrb[64].mxu0 %vm7736_vm15, %v2921_v20 }
 0x3a9   : > { %4704 = vmatpush1.bf16.msra.mxu0 %v7183_v26 }
 0x3aa   : > { %4705 = vmatprep.subr.bf16.mxu0 %v4828_v25  ;;  %v4782_v50 = vpop.permute.xlu0 %4781 }
 0x3ab   : > { %v4784_v3 = vunpack.i.h.bf16 %v4782_v50  ;;  %v4783_v23 = vunpack.i.l.bf16 %v4782_v50 }
 0x3ad   : > { %4707 = vmatpush1.bf16.msra.mxu0 %v7207_v42  ;;  %v3018_v54 = vsel %vm3008_vm14, %v7462_v52, %v4783_v23  ;;  %v3010_v32 = vsel %vm3008_vm14, %v7423_v62, %v4784_v3 }
 0x3ae   : > { %v4787_v15 = vpop.permute.xlu1 %4786  ;;  %3175 = vmatprep.mubr.f32.mxu0 %v3018_v54  ;;  %4708 = vmatprep.subr.bf16.mxu0 %v4828_v25 }
 0x3af   : > { %v4789_v63 = vunpack.i.h.bf16 %v4787_v15  ;;  %v4788_v57 = vunpack.i.l.bf16 %v4787_v15  ;;  %3176 = vmatmul.mubr.f32.gmra.mrb[66].mxu0 %v3010_v32 }
 0x3b1   : > { %4710 = vmatpush1.bf16.msra.mxu0 %v7579_v14  ;;  %v3019_v26 = vsel %vm3008_vm14, %v7483_v51, %v4788_v57  ;;  %v3011_v42 = vsel %vm3008_vm14, %v7434_v13, %v4789_v63 }
 0x3b2   : > { %4711 = vmatprep.subr.bf16.mxu0 %v4828_v25  ;;  %v4792_v8 = vpop.permute.xlu0 %4791  ;;  %3180 = vmatprep.mubr.f32.mxu0 %v3019_v26 }
 0x3b3   : > { %v4794_v62 = vunpack.i.h.bf16 %v4792_v8  ;;  %v4793_v40 = vunpack.i.l.bf16 %v4792_v8  ;;  %3181 = vmatmul.mubr.f32.gmra.mrb[68].mxu0 %v3011_v42  ;;  %v4797_v28 = vpop.permute.xlu1 %4796 }
 0x3b4   : > { %v4799_v43 = vunpack.i.h.bf16 %v4797_v28  ;;  %v4798_v2 = vunpack.i.l.bf16 %v4797_v28 }
 0x3b5   : > { %4713 = vmatpush1.bf16.msra.mxu0 %v7586_v30  ;;  %v3020_v14 = vsel %vm3008_vm14, %v7491_v49, %v4793_v40  ;;  %v3012_v27 = vsel %vm3008_vm14, %v7462_v52, %v4794_v62 }
 0x3b6   : > { %3185 = vmatprep.mubr.f32.mxu0 %v3020_v14  ;;  %4714 = vmatprep.subr.bf16.mxu0 %v4828_v25  ;;  %v4802_v13 = vpop.permute.xlu0 %4801  ;;  %v3021_v39 = vsel %vm3008_vm14, %v7499_v48, %v4798_v2  ;;  %v3013_v30 = vsel %vm3008_vm14, %v7483_v51, %v4799_v43 }
 0x3b7   : > { %3186 = vmatmul.mubr.f32.gmra.mrb[70].mxu0 %v3012_v27  ;;  %v4803_v10 = vunpack.i.l.bf16 %v4802_v13  ;;  %v4807_v46 = vpop.permute.xlu1 %4806  ;;  %v4804_v1 = vunpack.i.h.bf16 %v4802_v13  ;;  %v7838_v13 = vld [vmem:[%s8255_s7] ss:$0 sm:$0xff] }
 0x3b8   : > { %3190 = vmatprep.mubr.f32.mxu0 %v3021_v39  ;;  %v4808_v38 = vunpack.i.l.bf16 %v4807_v46  ;;  %v4809_v6 = vunpack.i.h.bf16 %v4807_v46 }
 0x3b9   : > { %4716 = vmatpush1.bf16.msra.mxu0 %v7611_v7  ;;  %v3022_v52 = vsel %vm3008_vm14, %v7501_v29, %v4803_v10  ;;  %v3014_v45 = vsel %vm3008_vm14, %v7491_v49, %v4804_v1 }
 0x3ba   : > { %4717 = vmatprep.subr.bf16.mxu0 %v4828_v25  ;;  %v2935_v5 = vpop.permute.xlu0 %2934  ;;  %v3023_v51 = vsel %vm3008_vm14, %v7558_v18, %v4808_v38  ;;  %v3015_v24 = vsel %vm3008_vm14, %v7499_v48, %v4809_v6 }
 0x3bb   : > { %3191 = vmatmul.mubr.f32.gmra.mrb[72].mxu0 %v3013_v30  ;;  %v2967_v4 = vpop.permute.xlu1 %2966 }
 0x3bc   : > { %3195 = vmatprep.mubr.f32.mxu0 %v3022_v52  ;;  %v7843_v52 = vld [vmem:[%s8255_s7 + $0x1] ss:$0 sm:$0xff] }
 0x3bd   : > { %4719 = vmatpush1.bf16.msra.mxu0 %v7634_v37 }
 0x3be   : > { %4720 = vmatprep.subr.bf16.mxu0 %v4828_v25  ;;  %v2985_v7 = vpop.permute.xlu0 %2984 }
 0x3bf   : > { %3196 = vmatmul.mubr.f32.gmra.mrb[74].mxu0 %v3014_v45  ;;  %v2991_v47 = vpop.permute.xlu1 %2990 }
 0x3c0   : > { %3200 = vmatprep.mubr.f32.mxu0 %v3023_v51  ;;  %v3028_v20 = vsel %vm3008_vm14, %v7525_v0, %v2991_v47  ;;  %v3016_v0 = vsel %vm3008_vm14, %v7501_v29, %v2935_v5 }
 0x3c1   : > { %4722 = vmatpush1.bf16.msra.mxu0 %v7655_v44  ;;  %3291 = vmatmul.mubr.f32.vlgmr.msra.gmra.mrb[64].mxu1 %v3028_v20 }
 0x3c2   : > { %4723 = vmatprep.subr.bf16.mxu0 %v4828_v25  ;;  %v2987_v49 = vpop.permute.xlu0 %2986  ;;  %3967 = vmatprep.mubr.msk.f32.mxu1 %vm3008_vm14, %v7663_v16 }
 0x3c3   : > { %3201 = vmatmul.mubr.f32.gmra.mrb[76].mxu0 %v3015_v24  ;;  %v2993_v18 = vpop.permute.xlu1 %2992  ;;  %v7853_v24 = vld [vmem:[%s8255_s7 + $0x2] ss:$0 sm:$0xff] }
 0x3c4   : > { %3962 = vmatprep.mubr.msk.f32.mxu0 %vm7736_vm15, %v2967_v4  ;;  %v3029_v48 = vsel %vm3008_vm14, %v7537_v11, %v2993_v18 }
 0x3c5   : > { %4725 = vmatpush1.bf16.msra.mxu0 %v7682_v21  ;;  %3296 = vmatmul.mubr.f32.gmra.mrb[66].mxu1 %v3029_v48 }
 0x3c6   : > { %4726 = vmatprep.subr.bf16.mxu0 %v4828_v25  ;;  %v2989_v37 = vpop.permute.xlu0 %2988  ;;  %3968 = vmatprep.mubr.msk.f32.mxu1 %vm3008_vm14, %v7679_v41 }
 0x3c7   : > { %3206 = vmatmul.mubr.f32.gmra.mrb[78].mxu0 %v3016_v0  ;;  %v2995_v44 = vpop.permute.xlu1 %2994 }
 0x3c8   : > { %3963 = vmatprep.mubr.msk.f32.mxu0 %vm3008_vm14, %v7631_v53  ;;  %v3030_v11 = vsel %vm3008_vm14, %v7545_v12, %v2995_v44  ;;  %v2919_v12 = vsel %vm4916_vm1, %v7675_v55, 0.0  ;;  %v2910_v53 = vsel %vm4916_vm1, %v7582_v56, 0.0  ;;  %v3026_v55 = vsel %vm3008_vm14, %v7489_v19, %v2987_v49 }
 0x3c9   : > { %4728 = vmatpush1.bf16.msra.mxu0 %v7701_v59  ;;  %3301 = vmatmul.mubr.f32.gmra.mrb[68].mxu1 %v3030_v11  ;;  %v3027_v56 = vsel %vm3008_vm14, %v7509_v17, %v2989_v37 }
 0x3ca   : > { %4729 = vmatprep.subr.bf16.mxu0 %v4828_v25  ;;  %v2997_v16 = vpop.permute.xlu0 %2996  ;;  %3969 = vmatprep.mubr.msk.f32.mxu1 %vm3008_vm14, %v7689_v33 }
 0x3cb   : > { %v3031_v29 = vsel %vm3008_vm14, %v7594_v61, %v2997_v16  ;;  %v2999_v41 = vpop.permute.xlu1 %2998  ;;  %v3025_v61 = vsel %vm3008_vm14, %v7469_v31, %v2985_v7 }
 0x3cc   : > { %v3032_v21 = vsel %vm3008_vm14, %v2910_v53, %v2999_v41  ;;  %v7871_v41 = vld [vmem:[%s8256_s8] ss:$0 sm:$0xff]  ;;  %v7879_v53 = vmul.f32 0.0, %v7838_v13 }
 0x3cd   : > { %4731 = vmatpush1.bf16.msra.mxu0 %v7711_v58  ;;  %3306 = vmatmul.mubr.f32.gmra.mrb[70].mxu1 %v3031_v29 }
 0x3ce   : > { %4732 = vmatprep.subr.bf16.mxu0 %v4828_v25  ;;  %3970 = vmatprep.mubr.msk.f32.mxu1 %vm3008_vm14, %v2919_v12  ;;  %v7876_v12 = vld [vmem:[%s8255_s7 + $0x3] ss:$0 sm:$0xff] }
 0x3d1   : > { %4734 = vmatpush1.bf16.msra.mxu0 %v7721_v60  ;;  %3311 = vmatmul.mubr.f32.gmra.mrb[72].mxu1 %v3032_v21  ;;  %v7882_v21 = vmul.f32 0.0, %v7853_v24 }
 0x3d2   : > { %4735 = vmatprep.subr.bf16.mxu0 %v4828_v25 }
 0x3d5   : > { %4737 = vmatpush1.bf16.msra.mxu0 %v7731_v34 }
 0x3d8   : > { %3276 = vmatmul.mubr.f32.vlgmr.msra.gmra.mrb[80].mxu0 %v3025_v61  ;;  %v7885_v61 = vmul.f32 0.0, %v7871_v41 }
 0x3d9   : > { %3964 = vmatprep.mubr.msk.f32.mxu0 %vm3008_vm14, %v7652_v35 }
 0x3dc   : > { %3281 = vmatmul.mubr.f32.gmra.mrb[82].mxu0 %v3026_v55 }
 0x3dd   : > { %3965 = vmatprep.mubr.msk.f32.mxu0 %vm3008_vm14, %v7617_v36 }
 0x3e0   : > { %3286 = vmatmul.mubr.f32.gmra.mrb[84].mxu0 %v3027_v56 }
 0x47b   : > { %v4412_v25 = vpop.f32.mrb[64].mxu0 }
 0x47c   : > { %v4413_v33 = vpop.f32.mrb[65].mxu0 }
 0x47d   : > { %v7829_v59 = vadd.f32 %v4413_v33, %v4412_v25 }
 0x482   : > { %v4415_v31 = vpop.f32.mrb[66].mxu0 }
 0x483   : > { %v4416_v58 = vpop.f32.mrb[67].mxu0 }
 0x484   : > { %v7831_v60 = vadd.f32 %v4416_v58, %v4415_v31  ;;  %v7894_v31 = vld [vmem:[%s8255_s7 + $0x5] ss:$0 sm:$0xff] }
 0x486   : > { %v4418_v35 = vpop.f32.mrb[68].mxu0 }
 0x487   : > { %v4419_v34 = vpop.f32.mrb[69].mxu0 }
 0x488   : > { %v7833_v22 = vadd.f32 %v4419_v34, %v4418_v35 }
 0x48a   : > { %v4421_v19 = vpop.f32.mrb[70].mxu0 }
 0x48b   : > { %v4422_v50 = vpop.f32.mrb[71].mxu0 }
 0x48c   : > { %v4423_v3 = vadd.f32 %v4422_v50, %v4421_v19 }
 0x48e   : > { %v4424_v36 = vpop.f32.mrb[72].mxu0 }
 0x48f   : > { %v4425_v23 = vpop.f32.mrb[73].mxu0 }
 0x490   : > { %v4426_v54 = vadd.f32 %v4425_v23, %v4424_v36  ;;  %v7910_v23 = vld [vmem:[%s8255_s7 + $0x4] ss:$0 sm:$0xff] }
 0x492   : > { %v4427_v17 = vpop.f32.mrb[74].mxu0 }
 0x493   : > { %v4428_v32 = vpop.f32.mrb[75].mxu0 }
 0x494   : > { %v4429_v15 = vadd.f32 %v4428_v32, %v4427_v17  ;;  %v3292_v63 = vpop.f32.mrb[64].mxu1 }
 0x495   : > { %v3293_v57 = vadd.f32 %v4423_v3, %v3292_v63  ;;  %v3294_v26 = vpop.f32.mrb[65].mxu1 }
 0x496   : > { %v4430_v42 = vpop.f32.mrb[76].mxu0 }
 0x497   : > { %v4431_v8 = vpop.f32.mrb[77].mxu0  ;;  %v3319_v62 = vmax.f32 %v3293_v57, 0.0 }
 0x498   : > { %v4432_v40 = vadd.f32 %v4431_v8, %v4430_v42  ;;  %v3297_v28 = vpop.f32.mrb[66].mxu1 }
 0x499   : > { %v3299_v43 = vpop.f32.mrb[67].mxu1  ;;  %v3298_v14 = vadd.f32 %v4426_v54, %v3297_v28  ;;  %v3342_v39 = vrot.slane %v3319_v62, 7  ;;  %v3366_v46 = vrot.slane %v3319_v62, 1  ;;  %v3415_v4 = vmul.f32 %v7838_v13, %v3319_v62  ;;  %v7924_v28 = vld [vmem:[%s8255_s7 + $0x6] ss:$0 sm:$0xff] }
 0x49a   : > { %v4433_v2 = vpop.f32.mrb[78].mxu0  ;;  %v7902_v3 = vmul.f32 %v7843_v52, %v3319_v62  ;;  %v7905_v36 = vmul.f32 %v7853_v24, %v3319_v62 }
 0x49b   : > { %v4434_v27 = vpop.f32.mrb[79].mxu0  ;;  %v3320_v1 = vmax.f32 %v3298_v14, 0.0  ;;  %v7848_v7 = vsel %vm372_vm0, 0.0, %v3342_v39  ;;  %v7856_v20 = vsel %vm397_vm2, %v3366_v46, 0.0 }
 0x49c   : > { %v4435_v10 = vadd.f32 %v4434_v27, %v4433_v2  ;;  %v3302_v30 = vpop.f32.mrb[68].mxu1 }
 0x49d   : > { %v3303_v38 = vadd.f32 %v4429_v15, %v3302_v30  ;;  %v3304_v5 = vpop.f32.mrb[69].mxu1  ;;  %v3343_v6 = vrot.slane %v3320_v1, 7  ;;  %v3367_v45 = vrot.slane %v3320_v1, 1  ;;  %v3429_v51 = vmul.f32 %v7843_v52, %v3320_v1 }
 0x49e   : > { %v3416_v55 = vmul.f32 %v7838_v13, %v3320_v1  ;;  %v7915_v42 = vmul.f32 %v7853_v24, %v3320_v1 }
 0x49f   : > { %v3321_v47 = vmax.f32 %v3303_v38, 0.0  ;;  %v3359_v49 = vsel %vm372_vm0, 0.0, %v3343_v6  ;;  %v3383_v18 = vsel %vm397_vm2, %v3367_v45, 0.0  ;;  %v3437_v48 = vadd.f32 %v3429_v51, %v3415_v4 }
 0x4a0   : > { %v3307_v0 = vpop.f32.mrb[70].mxu1  ;;  %v3391_v37 = vsel %vm4916_vm1, %v7848_v7, %v3359_v49  ;;  %v7866_v44 = vsel %vm4916_vm1, %v7856_v20, %v3383_v18 }
 0x4a1   : > { %v3344_v11 = vrot.slane %v3321_v47, 7  ;;  %v3368_v16 = vrot.slane %v3321_v47, 1  ;;  %v3309_v29 = vpop.f32.mrb[71].mxu1  ;;  %v3430_v33 = vmul.f32 %v7843_v52, %v3321_v47  ;;  %v3451_v34 = vmul.f32 %v7853_v24, %v3321_v47 }
 0x4a2   : > { %v3308_v19 = vadd.f32 %v4432_v40, %v3307_v0  ;;  %v3473_v54 = vmul.f32 %v7876_v12, %v3391_v37  ;;  %v3517_v8 = vmul.f32 %v7894_v31, %v7866_v44  ;;  %v3417_v62 = vmul.f32 %v7838_v13, %v3321_v47 }
 0x4a3   : > { %v3360_v56 = vsel %vm372_vm0, 0.0, %v3344_v11  ;;  %v3384_v25 = vsel %vm397_vm2, %v3368_v16, 0.0  ;;  %v3438_v17 = vadd.f32 %v3430_v33, %v3416_v55  ;;  %v3459_v15 = vadd.f32 %v3451_v34, %v3437_v48 }
 0x4a4   : > { %v3392_v58 = vsel %vm4916_vm1, %v3359_v49, %v3360_v56  ;;  %v3401_v35 = vsel %vm4916_vm1, %v3383_v18, %v3384_v25  ;;  %v3312_v50 = vpop.f32.mrb[72].mxu1  ;;  %v3322_v57 = vmax.f32 %v3308_v19, 0.0  ;;  %v7942_v34 = vmul.f32 %v7910_v23, %v3391_v37 }
 0x4a5   : > { %v3314_v32 = vpop.f32.mrb[73].mxu1  ;;  %v3495_v63 = vmul.f32 %v7910_v23, %v3392_v58  ;;  %v3313_v26 = vadd.f32 %v4435_v10, %v3312_v50  ;;  %v3474_v40 = vmul.f32 %v7876_v12, %v3392_v58  ;;  %v3481_v43 = vadd.f32 %v3473_v54, %v3459_v15 }
 0x4a6   : > { %v3345_v2 = vrot.slane %v3322_v57, 7  ;;  %v3369_v14 = vrot.slane %v3322_v57, 1  ;;  %v3431_v27 = vmul.f32 %v7843_v52, %v3322_v57  ;;  %v3539_v39 = vmul.f32 %v7924_v28, %v3401_v35 }
 0x4a7   : > { %v3452_v10 = vmul.f32 %v7853_v24, %v3322_v57  ;;  %v3323_v46 = vmax.f32 %v3313_v26, 0.0  ;;  %v3418_v1 = vmul.f32 %v7838_v13, %v3322_v57  ;;  %v3503_v30 = vadd.f32 %v3495_v63, %v3481_v43 }
 0x4a8   : > { %v3361_v38 = vsel %vm372_vm0, 0.0, %v3345_v2  ;;  %v3385_v5 = vsel %vm397_vm2, %v3369_v14, 0.0  ;;  %v3439_v4 = vadd.f32 %v3431_v27, %v3417_v62  ;;  %v3518_v15 = vmul.f32 %v7894_v31, %v3401_v35 }
 0x4a9   : > { %v3460_v6 = vadd.f32 %v3452_v10, %v3438_v17  ;;  %v3346_v51 = vrot.slane %v3323_v46, 7  ;;  %v3370_v47 = vrot.slane %v3323_v46, 1  ;;  %v3393_v49 = vsel %vm4916_vm1, %v3360_v56, %v3361_v38 }
 0x4aa   : > { %v3525_v18 = vadd.f32 %v3517_v8, %v3503_v30  ;;  %v3402_v11 = vsel %vm4916_vm1, %v3384_v25, %v3385_v5  ;;  %v3432_v16 = vmul.f32 %v7843_v52, %v3323_v46  ;;  %v3453_v58 = vmul.f32 %v7853_v24, %v3323_v46 }
 0x4ab   : > { %v3277_v45 = vpop.f32.mrb[80].mxu0  ;;  %v3482_v29 = vadd.f32 %v3474_v40, %v3460_v6  ;;  %v3362_v55 = vsel %vm372_vm0, 0.0, %v3346_v51  ;;  %v3386_v33 = vsel %vm397_vm2, %v3370_v47, 0.0  ;;  %v7948_v25 = vmul.f32 %v7924_v28, %v7866_v44 }
 0x4ac   : > { %v3278_v48 = vadd.f32 %v7829_v59, %v3277_v45  ;;  %v3279_v0 = vpop.f32.mrb[81].mxu0  ;;  %v3547_v56 = vadd.f32 %v3539_v39, %v3525_v18  ;;  %v3394_v59 = vsel %vm4916_vm1, %v3361_v38, %v3362_v55  ;;  %v3403_v50 = vsel %vm4916_vm1, %v3385_v5, %v3386_v33 }
 0x4ad   : > { %v3440_v54 = vadd.f32 %v3432_v16, %v3418_v1  ;;  %v3461_v17 = vadd.f32 %v3453_v58, %v3439_v4  ;;  %v3395_v57 = vsel %vm4916_vm1, %v3362_v55, 0.0  ;;  %v3475_v44 = vmul.f32 %v7876_v12, %v3393_v49 }
 0x4ae   : > { %v3316_v19 = vmax.f32 %v3278_v48, 0.0  ;;  %v3476_v40 = vmul.f32 %v7876_v12, %v3394_v59  ;;  %v3496_v35 = vmul.f32 %v7910_v23, %v3393_v49  ;;  %v3497_v14 = vmul.f32 %v7910_v23, %v3394_v59 }
 0x4af   : > { %v3282_v32 = vpop.f32.mrb[82].mxu0  ;;  %v3462_v62 = vadd.f32 %v7882_v21, %v3440_v54  ;;  %v7963_v27 = vmax.f32 %v3547_v56, 0.0  ;;  %v3404_v10 = vsel %vm4916_vm1, %v3386_v33, 0.0  ;;  %v3483_v21 = vadd.f32 %v3475_v44, %v3461_v17 }
 0x4b0   : > { %v3339_v63 = vrot.slane %v3316_v19, 7  ;;  %v3363_v37 = vrot.slane %v3316_v19, 1  ;;  %v3284_v26 = vpop.f32.mrb[83].mxu0  ;;  %v3425_v8 = vmul.f32 %v7843_v52, %v3316_v19  ;;  %v3412_v39 = vmul.f32 %v7838_v13, %v3316_v19 }
 0x4b1   : > { %v3484_v38 = vadd.f32 %v3476_v40, %v3462_v62  ;;  %v3498_v5 = vmul.f32 %v7910_v23, %v3395_v57  ;;  %v3504_v45 = vadd.f32 %v3496_v35, %v3482_v29  ;;  %v3505_v51 = vadd.f32 %v3497_v14, %v3483_v21 }
 0x4b2   : > { %v3355_v43 = vsel %vm372_vm0, 0.0, %v3339_v63  ;;  %v3379_v2 = vsel %vm397_vm2, %v3363_v37, 0.0  ;;  %v3433_v6 = vadd.f32 %v3425_v8, %v7879_v53  ;;  %v3519_v47 = vmul.f32 %v7894_v31, %v3402_v11  ;;  %v7983_v53 = vld [vmem:[%s8256_s8 + $0x1] ss:$0 sm:$0xff] }
 0x4b3   : > { %v3287_v46 = vpop.f32.mrb[84].mxu0  ;;  %v3387_v1 = vsel %vm4916_vm1, 0.0, %v3355_v43  ;;  %v3396_v30 = vsel %vm4916_vm1, 0.0, %v3379_v2  ;;  %v3506_v49 = vadd.f32 %v3498_v5, %v3484_v38  ;;  %v3520_v18 = vmul.f32 %v7894_v31, %v3403_v50 }
 0x4b4   : > { %v3289_v4 = vpop.f32.mrb[85].mxu0  ;;  %v3540_v48 = vmul.f32 %v7924_v28, %v3402_v11  ;;  %v3541_v0 = vmul.f32 %v7924_v28, %v3403_v50  ;;  %v3526_v16 = vadd.f32 %v3518_v15, %v3504_v45  ;;  %v3527_v55 = vadd.f32 %v3519_v47, %v3505_v51 }
 0x4b5   : > { %v3283_v33 = vadd.f32 %v7831_v60, %v3282_v32  ;;  %v3288_v58 = vadd.f32 %v7833_v22, %v3287_v46  ;;  %v3528_v29 = vadd.f32 %v3520_v18, %v3506_v49  ;;  %v3542_v56 = vmul.f32 %v7924_v28, %v3404_v10  ;;  %v7991_v60 = vld [vmem:[%s8256_s8 + $0x2] ss:$0 sm:$0xff] }
 0x4b6   : > { %v3571_v19 = vrot.slane %v7963_v27, 7  ;;  %v3595_v11 = vrot.slane %v7963_v27, 1  ;;  %v3548_v59 = vadd.f32 %v3540_v48, %v3526_v16  ;;  %v3549_v50 = vadd.f32 %v3541_v0, %v3527_v55 }
 0x4b7   : > { %v3317_v54 = vmax.f32 %v3283_v33, 0.0  ;;  %v3318_v17 = vmax.f32 %v3288_v58, 0.0  ;;  %v3469_v22 = vmul.f32 %v7876_v12, %v3387_v1  ;;  %v3513_v32 = vmul.f32 %v7894_v31, %v3396_v30 }
 0x4b8   : > { %v3550_v15 = vadd.f32 %v3542_v56, %v3528_v29  ;;  %v7997_v63 = vmul.f32 %v7983_v53, %v7963_v27  ;;  %v8000_v26 = vsel %vm372_vm0, 0.0, %v3571_v19  ;;  %v8003_v8 = vsel %vm397_vm2, %v3595_v11, 0.0 }
 0x4b9   : > { %v3340_v37 = vrot.slane %v3317_v54, 7  ;;  %v3364_v57 = vrot.slane %v3317_v54, 1  ;;  %v8005_v62 = vmax.f32 %v3548_v59, 0.0  ;;  %v3426_v44 = vmul.f32 %v7843_v52, %v3317_v54 }
 0x4ba   : > { %v3447_v40 = vmul.f32 %v7853_v24, %v3317_v54  ;;  %v8011_v35 = vmul.f32 %v7991_v60, %v7963_v27  ;;  %v3341_v21 = vrot.slane %v3318_v17, 7  ;;  %v3365_v46 = vrot.slane %v3318_v17, 1 }
 0x4bb   : > { %v3356_v14 = vsel %vm372_vm0, 0.0, %v3340_v37  ;;  %v3380_v10 = vsel %vm397_vm2, %v3364_v57, 0.0  ;;  %v3434_v38 = vadd.f32 %v3426_v44, %v3412_v39  ;;  %v8019_v4 = vmax.f32 %v3549_v50, 0.0 }
 0x4bc   : > { %v3388_v1 = vsel %vm4916_vm1, %v3355_v43, %v3356_v14  ;;  %v3397_v30 = vsel %vm4916_vm1, %v3379_v2, %v3380_v10  ;;  %v3455_v5 = vadd.f32 %v3447_v40, %v3433_v6  ;;  %v8021_v45 = vmax.f32 %v3550_v15, 0.0 }
 0x4bd   : > { %v3413_v51 = vmul.f32 %v7838_v13, %v3317_v54  ;;  %v3491_v47 = vmul.f32 %v7910_v23, %v3388_v1  ;;  %v3357_v18 = vsel %vm372_vm0, 0.0, %v3341_v21  ;;  %v3381_v48 = vsel %vm397_vm2, %v3365_v46, 0.0 }
 0x4be   : > { %v3477_v49 = vadd.f32 %v3469_v22, %v3455_v5  ;;  %v3414_v43 = vmul.f32 %v7838_v13, %v3318_v17  ;;  %v3389_v2 = vsel %vm4916_vm1, %v3356_v14, %v3357_v18  ;;  %v3390_v39 = vsel %vm4916_vm1, %v3357_v18, %v7848_v7 }
 0x4bf   : > { %v3398_v6 = vsel %vm4916_vm1, %v3380_v10, %v3381_v48  ;;  %v3399_v0 = vsel %vm4916_vm1, %v3381_v48, %v7856_v20  ;;  %v3427_v55 = vmul.f32 %v7843_v52, %v3318_v17  ;;  %v3448_v13 = vmul.f32 %v7853_v24, %v3318_v17 }
 0x4c0   : > { %v3499_v16 = vadd.f32 %v3491_v47, %v3477_v49  ;;  %v3436_v33 = vadd.f32 %v7902_v3, %v3414_v43  ;;  %v3470_v58 = vmul.f32 %v7876_v12, %v3388_v1  ;;  %v3514_v29 = vmul.f32 %v7894_v31, %v3397_v30  ;;  %v8083_v49 = vld [vmem:[%s8256_s8 + $0x4] ss:$0 sm:$0xff] }
 0x4c1   : > { %v3471_v7 = vmul.f32 %v7876_v12, %v3389_v2  ;;  %v3472_v56 = vmul.f32 %v7876_v12, %v3390_v39  ;;  %v3435_v19 = vadd.f32 %v3427_v55, %v3413_v51  ;;  %v3456_v11 = vadd.f32 %v3448_v13, %v3434_v38 }
 0x4c2   : > { %v3458_v59 = vadd.f32 %v7915_v42, %v3436_v33  ;;  %v3492_v20 = vmul.f32 %v7910_v23, %v3389_v2  ;;  %v3535_v52 = vmul.f32 %v7924_v28, %v3397_v30  ;;  %v3493_v3 = vmul.f32 %v7910_v23, %v3390_v39 }
 0x4c3   : > { %v3515_v24 = vmul.f32 %v7894_v31, %v3398_v6  ;;  %v3521_v50 = vadd.f32 %v3513_v32, %v3499_v16  ;;  %v3457_v54 = vadd.f32 %v7905_v36, %v3435_v19  ;;  %v3478_v17 = vadd.f32 %v3470_v58, %v3456_v11 }
 0x4c4   : > { %v3480_v22 = vadd.f32 %v3472_v56, %v3458_v59  ;;  %v3572_v15 = vrot.slane %v8005_v62, 7  ;;  %v3516_v12 = vmul.f32 %v7894_v31, %v3399_v0  ;;  %v3536_v37 = vmul.f32 %v7924_v28, %v3398_v6  ;;  %v8109_v59 = vld [vmem:[%s8256_s8 + $0x5] ss:$0 sm:$0xff] }
 0x4c5   : > { %v3543_v42 = vadd.f32 %v3535_v52, %v3521_v50  ;;  %v3596_v57 = vrot.slane %v8005_v62, 1  ;;  %v3479_v44 = vadd.f32 %v3471_v7, %v3457_v54  ;;  %v3500_v40 = vadd.f32 %v3492_v20, %v3478_v17 }
 0x4c6   : > { %v3502_v23 = vadd.f32 %v7942_v34, %v3480_v22  ;;  %v8057_v14 = vsel %vm372_vm0, 0.0, %v3572_v15  ;;  %v3537_v36 = vmul.f32 %v7924_v28, %v3399_v0  ;;  %v8078_v5 = vmul.f32 %v7991_v60, %v8005_v62 }
 0x4c7   : > { %v3551_v32 = vmax.f32 %v3543_v42, 0.0  ;;  %v8061_v10 = vsel %vm397_vm2, %v3596_v57, 0.0  ;;  %v8067_v31 = vsel %vm4916_vm1, %v8000_v26, %v8057_v14  ;;  %v3501_v21 = vadd.f32 %v3493_v3, %v3479_v44 }
 0x4c8   : > { %v3522_v46 = vadd.f32 %v3514_v29, %v3500_v40  ;;  %v3524_v1 = vadd.f32 %v3516_v12, %v3502_v23  ;;  %v8073_v34 = vsel %vm4916_vm1, %v8003_v8, %v8061_v10  ;;  %v3573_v48 = vrot.slane %v8019_v4, 7 }
 0x4c9   : > { %v3567_v28 = vrot.slane %v3551_v32, 7  ;;  %v3591_v30 = vrot.slane %v3551_v32, 1  ;;  %v3660_v38 = vmul.f32 %v7983_v53, %v3551_v32  ;;  %v3523_v51 = vadd.f32 %v3515_v24, %v3501_v21 }
 0x4ca   : > { %v3544_v47 = vadd.f32 %v3536_v37, %v3522_v46  ;;  %v3546_v18 = vadd.f32 %v7948_v25, %v3524_v1  ;;  %v3647_v39 = vmul.f32 %v7871_v41, %v3551_v32  ;;  %v3574_v6 = vrot.slane %v8021_v45, 7  ;;  %v8098_v25 = vld [vmem:[%s8256_s8 + $0x3] ss:$0 sm:$0xff] }
 0x4cb   : > { %v3583_v43 = vsel %vm372_vm0, 0.0, %v3567_v28  ;;  %v3607_v2 = vsel %vm397_vm2, %v3591_v30, 0.0  ;;  %v3545_v0 = vadd.f32 %v3537_v36, %v3523_v51  ;;  %v3668_v13 = vadd.f32 %v3660_v38, %v7885_v61  ;;  %v8126_v36 = vld [vmem:[%s8256_s8 + $0x6] ss:$0 sm:$0xff] }
 0x4cc   : > { %v3552_v16 = vmax.f32 %v3544_v47, 0.0  ;;  %v3615_v55 = vsel %vm4916_vm1, 0.0, %v3583_v43  ;;  %v3624_v33 = vsel %vm4916_vm1, 0.0, %v3607_v2  ;;  %v3554_v29 = vmax.f32 %v3546_v18, 0.0 }
 0x4cd   : > { %v3704_v58 = vmul.f32 %v8098_v25, %v3615_v55  ;;  %v8104_v7 = vmul.f32 %v8083_v49, %v8067_v31  ;;  %v3553_v56 = vmax.f32 %v3545_v0, 0.0  ;;  %v3748_v52 = vmul.f32 %v8109_v59, %v3624_v33 }
 0x4ce   : > { %v3568_v19 = vrot.slane %v3552_v16, 7  ;;  %v3592_v11 = vrot.slane %v3552_v16, 1  ;;  %v3682_v20 = vmul.f32 %v7991_v60, %v3552_v16  ;;  %v3661_v61 = vmul.f32 %v7983_v53, %v3552_v16 }
 0x4cf   : > { %v3570_v3 = vrot.slane %v3554_v29, 7  ;;  %v3594_v24 = vrot.slane %v3554_v29, 1  ;;  %v3569_v22 = vrot.slane %v3553_v56, 7  ;;  %v3593_v37 = vrot.slane %v3553_v56, 1 }
 0x4d0   : > { %v3584_v50 = vsel %vm372_vm0, 0.0, %v3568_v19  ;;  %v3608_v54 = vsel %vm397_vm2, %v3592_v11, 0.0  ;;  %v3690_v17 = vadd.f32 %v3682_v20, %v3668_v13  ;;  %v3669_v42 = vadd.f32 %v3661_v61, %v3647_v39 }
 0x4d1   : > { %v3616_v15 = vsel %vm4916_vm1, %v3583_v43, %v3584_v50  ;;  %v3625_v12 = vsel %vm4916_vm1, %v3607_v2, %v3608_v54  ;;  %v3585_v40 = vsel %vm372_vm0, 0.0, %v3569_v22  ;;  %v3589_v23 = vsel %vm372_vm0, 0.0, %v3573_v48 }
 0x4d2   : > { %v3712_v57 = vadd.f32 %v3704_v58, %v3690_v17  ;;  %v3726_v44 = vmul.f32 %v8083_v49, %v3616_v15  ;;  %v3609_v32 = vsel %vm397_vm2, %v3593_v37, 0.0  ;;  %v3617_v21 = vsel %vm4916_vm1, %v3584_v50, %v3585_v40 }
 0x4d3   : > { %v3683_v46 = vmul.f32 %v7991_v60, %v3553_v56  ;;  %v3705_v1 = vmul.f32 %v8098_v25, %v3616_v15  ;;  %v3770_v30 = vmul.f32 %v8126_v36, %v3625_v12  ;;  %v3626_v38 = vsel %vm4916_vm1, %v3608_v54, %v3609_v32 }
 0x4d4   : > { %v3734_v28 = vadd.f32 %v3726_v44, %v3712_v57  ;;  %v3648_v51 = vmul.f32 %v7871_v41, %v3552_v16  ;;  %v3727_v18 = vmul.f32 %v8083_v49, %v3617_v21  ;;  %v3586_v48 = vsel %vm372_vm0, 0.0, %v3570_v3 }
 0x4d5   : > { %v3691_v47 = vadd.f32 %v3683_v46, %v3669_v42  ;;  %v3610_v43 = vsel %vm397_vm2, %v3594_v24, 0.0  ;;  %v3618_v39 = vsel %vm4916_vm1, %v3585_v40, %v3586_v48  ;;  %v3662_v55 = vmul.f32 %v7983_v53, %v3553_v56 }
 0x4d6   : > { %v3756_v2 = vadd.f32 %v3748_v52, %v3734_v28  ;;  %v3627_v0 = vsel %vm4916_vm1, %v3609_v32, %v3610_v43  ;;  %v3749_v13 = vmul.f32 %v8109_v59, %v3625_v12  ;;  %v3771_v16 = vmul.f32 %v8126_v36, %v3626_v38 }
 0x4d7   : > { %v3713_v33 = vadd.f32 %v3705_v1, %v3691_v47  ;;  %v3684_v58 = vmul.f32 %v7991_v60, %v3554_v29  ;;  %v3670_v11 = vadd.f32 %v3662_v55, %v3648_v51  ;;  %v3706_v20 = vmul.f32 %v8098_v25, %v3617_v21 }
 0x4d8   : > { %v3778_v19 = vadd.f32 %v3770_v30, %v3756_v2  ;;  %v3728_v52 = vmul.f32 %v8083_v49, %v3618_v39  ;;  %v3619_v3 = vsel %vm4916_vm1, %v3586_v48, %v8000_v26  ;;  %v3628_v24 = vsel %vm4916_vm1, %v3610_v43, %v8003_v8 }
 0x4d9   : > { %v3735_v61 = vadd.f32 %v3727_v18, %v3713_v33  ;;  %v3650_v50 = vmul.f32 %v7871_v41, %v3554_v29  ;;  %v3692_v17 = vadd.f32 %v3684_v58, %v3670_v11  ;;  %v3750_v22 = vmul.f32 %v8109_v59, %v3626_v38 }
 0x4da   : > { %v3786_v54 = vsel %vm826_vm7, %v3778_v19, 0.0  ;;  %v3708_v15 = vmul.f32 %v8098_v25, %v3619_v3  ;;  %v3649_v42 = vmul.f32 %v7871_v41, %v3553_v56  ;;  %v3663_v26 = vmul.f32 %v7983_v53, %v3554_v29 }
 0x4db   : > { %3787 = vadd.xlane.f32.xlu0 %v3786_v54  ;;  %v3757_v12 = vadd.f32 %v3749_v13, %v3735_v61  ;;  %v3672_v37 = vadd.f32 %v7997_v63, %v3650_v50  ;;  %v3714_v57 = vadd.f32 %v3706_v20, %v3692_v17  ;;  %v3772_v8 = vmul.f32 %v8126_v36, %v3627_v0 }
 0x4dc   : > { %v3752_v44 = vmul.f32 %v8109_v59, %v3628_v24  ;;  %v3707_v40 = vmul.f32 %v8098_v25, %v3618_v39  ;;  %v3671_v46 = vadd.f32 %v3663_v26, %v3649_v42  ;;  %v3729_v1 = vmul.f32 %v8083_v49, %v3619_v3 }
 0x4dd   : > { %v3779_v32 = vadd.f32 %v3771_v16, %v3757_v12  ;;  %v3694_v21 = vadd.f32 %v8078_v5, %v3672_v37  ;;  %v3736_v28 = vadd.f32 %v3728_v52, %v3714_v57  ;;  %v8171_v63 = vsel %vm372_vm0, 0.0, %v3574_v6 }
 0x4de   : > { %v3597_v29 = vrot.slane %v8019_v4, 1  ;;  %v3598_v56 = vrot.slane %v8021_v45, 1  ;;  %v3693_v51 = vadd.f32 %v8011_v35, %v3671_v46  ;;  %v3621_v5 = vsel %vm4916_vm1, %v8057_v14, %v3589_v23 }
 0x4df   : > { %v3789_v30 = vsel %vm826_vm7, %v3779_v32, 0.0  ;;  %v3716_v38 = vadd.f32 %v3708_v15, %v3694_v21  ;;  %v3758_v47 = vadd.f32 %v3750_v22, %v3736_v28  ;;  %v3622_v48 = vsel %vm4916_vm1, %v3589_v23, %v8171_v63 }
 0x4e0   : > { %3790 = vadd.xlane.f32.xlu1 %v3789_v30  ;;  %v3613_v18 = vsel %vm397_vm2, %v3597_v29, 0.0  ;;  %v8182_v6 = vsel %vm397_vm2, %v3598_v56, 0.0  ;;  %v3715_v2 = vadd.f32 %v3707_v40, %v3693_v51  ;;  %v3652_v55 = vmul.f32 %v7871_v41, %v8005_v62 }
 0x4e1   : > { %v3738_v43 = vadd.f32 %v8104_v7, %v3716_v38  ;;  %v3630_v35 = vsel %vm4916_vm1, %v8061_v10, %v3613_v18  ;;  %v3631_v14 = vsel %vm4916_vm1, %v3613_v18, %v8182_v6  ;;  %v3780_v39 = vadd.f32 %v3772_v8, %v3758_v47 }
 0x4e2   : > { %v3666_v33 = vmul.f32 %v7983_v53, %v8019_v4  ;;  %v3688_v23 = vmul.f32 %v7991_v60, %v8021_v45  ;;  %v3774_v13 = vmul.f32 %v8126_v36, %v8073_v34  ;;  %v3737_v16 = vadd.f32 %v3729_v1, %v3715_v2 }
 0x4e3   : > { %v3760_v7 = vadd.f32 %v3752_v44, %v3738_v43  ;;  %v3751_v10 = vmul.f32 %v8109_v59, %v3627_v0  ;;  %v3792_v58 = vsel %vm826_vm7, %v3780_v39, 0.0  ;;  %v3773_v19 = vmul.f32 %v8126_v36, %v3628_v24 }
 0x4e4   : > { %v3674_v11 = vadd.f32 %v3666_v33, %v3652_v55  ;;  %v3710_v20 = vmul.f32 %v8098_v25, %v3621_v5  ;;  %3793 = vadd.xlane.f32.xlu0 %v3792_v58  ;;  %v3651_v3 = vmul.f32 %v7871_v41, %v7963_v27  ;;  %v3665_v50 = vmul.f32 %v7983_v53, %v8005_v62 }
 0x4e5   : > { %v3782_v52 = vadd.f32 %v3774_v13, %v3760_v7  ;;  %v3759_v61 = vadd.f32 %v3751_v10, %v3737_v16  ;;  %v3732_v17 = vmul.f32 %v8083_v49, %v3622_v48  ;;  %v3687_v0 = vmul.f32 %v7991_v60, %v8019_v4 }
 0x4e6   : > { %v3696_v54 = vadd.f32 %v3688_v23, %v3674_v11  ;;  %v3673_v15 = vadd.f32 %v3665_v50, %v3651_v3  ;;  %v3709_v37 = vmul.f32 %v8098_v25, %v8067_v31  ;;  %v3731_v27 = vmul.f32 %v8083_v49, %v3621_v5 }
 0x4e7   : > { %v3798_v24 = vsel %vm826_vm7, %v3782_v52, 0.0  ;;  %v3781_v22 = vadd.f32 %v3773_v19, %v3759_v61  ;;  %v3689_v42 = vmul.f32 0.0, %v7991_v60  ;;  %v3653_v57 = vmul.f32 %v7871_v41, %v8019_v4 }
 0x4e8   : > { %3799 = vadd.xlane.f32.xlu1 %v3798_v24  ;;  %v3718_v12 = vadd.f32 %v3710_v20, %v3696_v54  ;;  %v3695_v26 = vadd.f32 %v3687_v0, %v3673_v15  ;;  %v3667_v8 = vmul.f32 %v7983_v53, %v8021_v45  ;;  %v3754_v40 = vmul.f32 %v8109_v59, %v3630_v35 }
 0x4e9   : > { %v3795_v62 = vsel %vm826_vm7, %v3781_v22, 0.0  ;;  %v3711_v31 = vmul.f32 %v8098_v25, %v3622_v48  ;;  %v3776_v60 = vmul.f32 %v8126_v36, %v3631_v14  ;;  %v3623_v1 = vsel %vm4916_vm1, %v8171_v63, 0.0 }
 0x4ea   : > { %3796 = vadd.xlane.f32.xlu0 %v3795_v62  ;;  %v3740_v44 = vadd.f32 %v3732_v17, %v3718_v12  ;;  %v3717_v32 = vadd.f32 %v3709_v37, %v3695_v26  ;;  %v3675_v21 = vadd.f32 %v3667_v8, %v3653_v57  ;;  %v3753_v41 = vmul.f32 %v8109_v59, %v8073_v34 }
 0x4eb   : > { %v3775_v29 = vmul.f32 %v8126_v36, %v3630_v35  ;;  %v3733_v30 = vmul.f32 %v8083_v49, %v3623_v1  ;;  %v3632_v38 = vsel %vm4916_vm1, %v8182_v6, 0.0  ;;  %v3755_v5 = vmul.f32 %v8109_v59, %v3631_v14 }
 0x4ec   : > { %v3762_v46 = vadd.f32 %v3754_v40, %v3740_v44  ;;  %v3739_v28 = vadd.f32 %v3731_v27, %v3717_v32  ;;  %v3697_v53 = vadd.f32 %v3689_v42, %v3675_v21  ;;  %v3777_v18 = vmul.f32 %v8126_v36, %v3632_v38 }
 0x4ed   : > { %vm3867_vm0 = vcmask 0  }
 0x4ee   : > { %v3784_v4 = vadd.f32 %v3776_v60, %v3762_v46  ;;  %v3761_v45 = vadd.f32 %v3753_v41, %v3739_v28  ;;  %v3719_v56 = vadd.f32 %v3711_v31, %v3697_v53 }
 0x4f0   : > { %v3804_v25 = vsel %vm826_vm7, %v3784_v4, 0.0  ;;  %v3783_v63 = vadd.f32 %v3775_v29, %v3761_v45  ;;  %v3741_v51 = vadd.f32 %v3733_v30, %v3719_v56 }
 0x4f1   : > { %3805 = vadd.xlane.f32.xlu1 %v3804_v25 }
 0x4f2   : > { %v3801_v34 = vsel %vm826_vm7, %v3783_v63, 0.0  ;;  %v3763_v47 = vadd.f32 %v3755_v5, %v3741_v51 }
 0x4f3   : > { %3802 = vadd.xlane.f32.xlu0 %v3801_v34 }
 0x4f4   : > { %v3785_v48 = vadd.f32 %v3777_v18, %v3763_v47 }
 0x4f6   : > { %v3807_v49 = vsel %vm826_vm7, %v3785_v48, 0.0 }
 0x4f7   : > { %3808 = vadd.xlane.f32.xlu0 %v3807_v49 }
 0x568   : > { %v3788_v43 = vpop.xlane.xlu0 %3787 }
 0x569   : > { %v3810_v2 = vrot.slane %v3788_v43, 4 }
 0x56b   : > { %v3811_v9 = vadd.f32 %v3810_v2, %v3788_v43 }
 0x56d   : > { %v3791_v35 = vpop.xlane.xlu1 %3790  ;;  %v3812_v55 = vrot.slane %v3811_v9, 2 }
 0x56e   : > { %v3816_v6 = vrot.slane %v3791_v35, 4 }
 0x56f   : > { %v3813_v16 = vadd.f32 %v3812_v55, %v3811_v9 }
 0x570   : > { %v3817_v39 = vadd.f32 %v3816_v6, %v3791_v35 }
 0x571   : > { %v3794_v23 = vpop.xlane.xlu0 %3793  ;;  %v3814_v61 = vrot.slane %v3813_v16, 1 }
 0x572   : > { %v3818_v33 = vrot.slane %v3817_v39, 2  ;;  %v3822_v59 = vrot.slane %v3794_v23, 4 }
 0x573   : > { %v3815_v24 = vadd.f32 %v3814_v61, %v3813_v16 }
 0x574   : > { %v3819_v14 = vadd.f32 %v3818_v33, %v3817_v39  ;;  %v3823_v7 = vadd.f32 %v3822_v59, %v3794_v23 }
 0x575   : > { %v3800_v13 = vpop.xlane.xlu1 %3799 }
 0x576   : > { %v3834_v36 = vrot.slane %v3800_v13, 4  ;;  %v3824_v10 = vrot.slane %v3823_v7, 2  ;;  %v3820_v19 = vrot.slane %v3819_v14, 1 }
 0x577   : > { %v3797_v58 = vpop.xlane.xlu0 %3796 }
 0x578   : > { %v3835_v11 = vadd.f32 %v3834_v36, %v3800_v13  ;;  %v3828_v20 = vrot.slane %v3797_v58, 4  ;;  %v3825_v52 = vadd.f32 %v3824_v10, %v3823_v7  ;;  %v3821_v50 = vadd.f32 %v3820_v19, %v3819_v14 }
 0x57a   : > { %v3829_v3 = vadd.f32 %v3828_v20, %v3797_v58  ;;  %v3826_v54 = vrot.slane %v3825_v52, 1  ;;  %v3836_v17 = vrot.slane %v3835_v11, 2  ;;  %v3858_v37 = vadd.f32 %v3821_v50, %v3815_v24 }
 0x57c   : > { %v3830_v0 = vrot.slane %v3829_v3, 2  ;;  %v3827_v27 = vadd.f32 %v3826_v54, %v3825_v52  ;;  %v3837_v42 = vadd.f32 %v3836_v17, %v3835_v11 }
 0x57e   : > { %v3831_v22 = vadd.f32 %v3830_v0, %v3829_v3  ;;  %v3806_v15 = vpop.xlane.xlu1 %3805  ;;  %v3859_v32 = vadd.f32 %v3858_v37, %v3827_v27  ;;  %v3838_v21 = vrot.slane %v3837_v42, 1 }
 0x57f   : > { %v3846_v12 = vrot.slane %v3806_v15, 4 }
 0x580   : > { %v3832_v62 = vrot.slane %v3831_v22, 1  ;;  %v3803_v57 = vpop.xlane.xlu0 %3802  ;;  %v3839_v53 = vadd.f32 %v3838_v21, %v3837_v42 }
 0x581   : > { %v3847_v26 = vadd.f32 %v3846_v12, %v3806_v15  ;;  %v3840_v44 = vrot.slane %v3803_v57, 4 }
 0x582   : > { %v3833_v8 = vadd.f32 %v3832_v62, %v3831_v22 }
 0x583   : > { %v3848_v40 = vrot.slane %v3847_v26, 2  ;;  %v3841_v31 = vadd.f32 %v3840_v44, %v3803_v57 }
 0x584   : > { %v3809_v46 = vpop.xlane.xlu0 %3808  ;;  %v3860_v60 = vadd.f32 %v3859_v32, %v3833_v8 }
 0x585   : > { %v3849_v1 = vadd.f32 %v3848_v40, %v3847_v26  ;;  %v3842_v28 = vrot.slane %v3841_v31, 2  ;;  %v3852_v41 = vrot.slane %v3809_v46, 4 }
 0x586   : > { %v3861_v56 = vadd.f32 %v3860_v60, %v3839_v53 }
 0x587   : > { %v3843_v4 = vadd.f32 %v3842_v28, %v3841_v31  ;;  %v3853_v45 = vadd.f32 %v3852_v41, %v3809_v46  ;;  %v3850_v29 = vrot.slane %v3849_v1, 1 }
 0x589   : > { %v3844_v30 = vrot.slane %v3843_v4, 1  ;;  %v3854_v25 = vrot.slane %v3853_v45, 2  ;;  %v3851_v51 = vadd.f32 %v3850_v29, %v3849_v1 }
 0x58b   : > { %v3845_v38 = vadd.f32 %v3844_v30, %v3843_v4  ;;  %v3855_v63 = vadd.f32 %v3854_v25, %v3853_v45 }
 0x58d   : > { %v3862_v5 = vadd.f32 %v3861_v56, %v3845_v38  ;;  %v3856_v34 = vrot.slane %v3855_v63, 1 }
 0x58f   : > { %v3857_v47 = vadd.f32 %v3856_v34, %v3855_v63  ;;  %v3863_v18 = vadd.f32 %v3862_v5, %v3851_v51 }
 0x591   : > { %v3864_v48 = vadd.f32 %v3863_v18, %v3857_v47 }
 0x593   : > { %v3865_v49 = vmul.f32 0.015625, %v3864_v48 }
 0x595   : > { %4810 = vtanh.f32 %v3865_v49 }
 0x59f   : > { %v4811_v43 = vpop.eup %4810 }
 0x5a0   : > { %3868 = vst.msk [vmem:[%s328_s25] sm:$0x1] %vm3867_vm0, %v4811_v43 }
 0x5a1 PF: > { %s19_s30 = sadd.s32 1, %s4818_s30  }
 0x5a2   : > { %p16_p4 = scmp.ge.s32.totalorder %s19_s30, 4  }
 0x5a4   :  { %18 = sbr.rel (!%p16_p4) target bundleno = 1 (0x1), region = 86 }

</bundles_post_ra>
